<compile_context>
chip_gen: v5e
topology: v5e:2x2
jax: 0.10.0
libtpu: 0.0.40
codegen_flags: <defaults>
</compile_context>

<pallas_src>
import functools

import jax
import jax.numpy as jnp
from jax.experimental import pallas as pl
from jax.experimental.pallas import tpu as pltpu

_NP = 128          # lane width for weight / offset packing (Cout <= 64 everywhere)
_BN_EPS = 1e-5


# ------------------------------- helpers ----------------------------------- #

def _tile_m(m):
    """Row tile: whole extent for small layers, >=2 tiles (multiple of 8) for big ones."""
    if m < 128 or m % 16:
        return m
    tm = min(256, m // 2)
    tm -= tm % 8
    while m % tm:
        tm -= 8
    return tm


def _act(y, act):
    if act == "leaky_relu":
        return jnp.where(y > 0, y, 0.2 * y)
    if act == "relu":
        return jnp.maximum(y, 0.0)
    return y


def _pad_lanes(x):
    c = x.shape[-1]
    return jnp.zeros(x.shape[:-1] + (_NP,), x.dtype).at[..., :c].set(x)


# ----------------------------- Pallas kernels ------------------------------ #

def _enc_kernel(x_ref, w_ref, off_ref, o_ref, *, act, cout):
    # bf16 x bf16 -> f32 accumulate on the MXU; epilogue (offset + activation) in f32.
    y = jnp.dot(x_ref[...], w_ref[...], preferred_element_type=jnp.float32)
    y = _act(y + off_ref[...], act)
    o_ref[...] = y[:, :cout].astype(o_ref.dtype)      # store only the real channels


def _dec_kernel(*refs, act, has_skip):
    # Sub-pixel transposed conv: one grid step handles both rx phases of one ry
    # phase, accumulating skip + prev contributions (skip ReLU fused in-kernel).
    o_ref, off_ref = refs[-1], refs[-2]
    if has_skip:
        s0, s1, p0, p1, ws0, ws1, wp0, wp1 = refs[:8]
    else:
        p0, p1, wp0, wp1 = refs[:4]
        s0 = s1 = ws0 = ws1 = None

    def half(s, p, ws, wp):
        y = jnp.dot(p[...], wp[...], preferred_element_type=jnp.float32)
        if s is not None:   # relu(leaky_relu(h)) == relu(h): re-activate the skip here
            y = y + jnp.dot(jnp.maximum(s[...], 0), ws[...],
                            preferred_element_type=jnp.float32)
        return _act(y + off_ref[...], act).astype(o_ref.dtype)

    o_ref[:, 0:_NP] = half(s0, p0, ws0, wp0)           # rx = 0
    o_ref[:, _NP:2 * _NP] = half(s1, p1, ws1, wp1)     # rx = 1


# --------------------- conv glue (bf16 im2col in XLA, NHWC) ----------------- #

def _im2col(x, k, stride, pad):
    B, H, W, C = x.shape
    xp = jnp.pad(x, ((0, 0), (pad, pad), (pad, pad), (0, 0)))
    Ho = (H + 2 * pad - k) // stride + 1
    Wo = (W + 2 * pad - k) // stride + 1
    cols = [xp[:, i:i + stride * Ho:stride, j:j + stride * Wo:stride, :]
            for i in range(k) for j in range(k)]
    p = jnp.stack(cols, axis=3)                        # (B, Ho, Wo, k*k, C)
    return p.reshape(B * Ho * Wo, k * k * C), Ho, Wo


def conv2d_down(x, w, off, cout, act):
    """nn.Conv2d(Cin, Cout, k=4, s=2, p=1) [+ folded BN] + fused next-block activation."""
    B = x.shape[0]
    patches, Ho, Wo = _im2col(x, 4, 2, 1)              # (M, 16*Cin) bf16
    M, K = patches.shape
    tm = _tile_m(M)
    out = pl.pallas_call(
        functools.partial(_enc_kernel, act=act, cout=cout),
        out_shape=jax.ShapeDtypeStruct((M, cout), jnp.bfloat16),
        grid=(M // tm,),
        in_specs=[
            pl.BlockSpec((tm, K), lambda i: (i, 0)),
            pl.BlockSpec((K, _NP), lambda i: (0, 0)),
            pl.BlockSpec((1, _NP), lambda i: (0, 0)),
        ],
        out_specs=pl.BlockSpec((tm, cout), lambda i: (i, 0)),
        compiler_params=pltpu.CompilerParams(dimension_semantics=("parallel",)),
    )(patches, w, off)
    return out.reshape(B, Ho, Wo, cout)


def _convT_patches(x):
    """Sub-pixel patches for ConvTranspose2d(k=4, s=2, p=1).
    Returns [rx=0, rx=1], each (2, B*H*W, 4*C) with ry on the leading axis."""
    B, H, W, C = x.shape
    xp = jnp.pad(x, ((0, 0), (1, 1), (1, 1), (0, 0)))
    out = []
    for rx in range(2):
        per_ry = []
        for ry in range(2):
            cols = [xp[:, ry + di:ry + di + H, rx + dj:rx + dj + W, :]
                    for di in range(2) for dj in range(2)]
            per_ry.append(jnp.stack(cols, axis=3).reshape(B * H * W, 4 * C))
        out.append(jnp.stack(per_ry, axis=0))
    return out


def conv_transpose2d_up(prev, skip, wp, ws, off, cout, act):
    """nn.ConvTranspose2d(Cs+Cp, Cout, k=4, s=2, p=1) via 4-phase sub-pixel GEMMs.
    `skip` may be None (innermost block).  Skip ReLU + concat happen in-kernel."""
    B, H, W, Cp = prev.shape
    M = B * H * W
    tm = _tile_m(M)
    Kp = 4 * Cp
    p0, p1 = _convT_patches(prev)                      # (2, M, 4*Cp) each

    operands, in_specs = [], []
    if skip is not None:
        Ks = 4 * skip.shape[-1]
        s0, s1 = _convT_patches(skip)
        operands += [s0, s1]
        in_specs += [pl.BlockSpec((None, tm, Ks), lambda r, i: (r, i, 0))] * 2
    operands += [p0, p1]
    in_specs += [pl.BlockSpec((None, tm, Kp), lambda r, i: (r, i, 0))] * 2
    if skip is not None:
        operands += [ws[0], ws[1]]
        in_specs += [pl.BlockSpec((None, Ks, _NP), lambda r, i: (r, 0, 0))] * 2
    operands += [wp[0], wp[1]]
    in_specs += [pl.BlockSpec((None, Kp, _NP), lambda r, i: (r, 0, 0))] * 2
    operands += [off]
    in_specs += [pl.BlockSpec((1, _NP), lambda r, i: (0, 0))]

    out = pl.pallas_call(
        functools.partial(_dec_kernel, act=act, has_skip=skip is not None),
        out_shape=jax.ShapeDtypeStruct((2, M, 2 * _NP), jnp.bfloat16),
        grid=(2, M // tm),
        in_specs=in_specs,
        out_specs=pl.BlockSpec((None, tm, 2 * _NP), lambda r, i: (r, i, 0)),
        compiler_params=pltpu.CompilerParams(
            dimension_semantics=("parallel", "parallel")),
    )(*operands)

    # (ry, (b,h,w), (rx,c)) -> (b, 2h+ry, 2w+rx, c): transpose moves W*256-contiguous chunks.
    y = out.reshape(2, B, H, W, 2, _NP).transpose(1, 2, 0, 3, 4, 5)
    return y.reshape(B, 2 * H, 2 * W, _NP)[..., :cout]


# ------------------------------ parameters --------------------------------- #

def _init_conv(key, cout, cin, k):
    kw_, kb = jax.random.split(key)
    bound = 1.0 / jnp.sqrt(cin * k * k)
    w = jax.random.uniform(kw_, (cout, cin, k, k), jnp.float32, -bound, bound)
    b = jax.random.uniform(kb, (cout,), jnp.float32, -bound, bound)
    return w, b


def _init_bn(key, c):
    k1, k2, k3, k4 = jax.random.split(key, 4)
    gamma = jax.random.uniform(k1, (c,), jnp.float32, 0.5, 1.5)
    beta = 0.1 * jax.random.normal(k2, (c,), jnp.float32)
    mean = 0.1 * jax.random.normal(k3, (c,), jnp.float32)
    var = jax.random.uniform(k4, (c,), jnp.float32, 0.5, 1.5)
    return gamma, beta, mean, var


def _fold_affine(bias, bn):
    """Fold conv bias + eval-mode BatchNorm into per-channel (scale, offset)."""
    if bn is None:
        return jnp.ones_like(bias), bias
    gamma, beta, mean, var = bn
    s = gamma / jnp.sqrt(var + _BN_EPS)
    return s, s * bias + (beta - mean * s)


def _pack_enc_weight(w, scale):
    """(Cout,Cin,4,4) -> (16*Cin, 128) bf16, im2col K order (kh,kw,cin), BN scale folded."""
    cout, cin = w.shape[0], w.shape[1]
    wmat = jnp.transpose(w, (2, 3, 1, 0)).reshape(16 * cin, cout) * scale[None, :]
    return _pad_lanes(wmat).astype(jnp.bfloat16)


def _pack_dec_weight(wt_part, scale):
    """(Csrc,Cout,4,4) -> [rx0, rx1], each (2, 4*Csrc, 128) bf16 (ry-major), scale folded.
    Sub-pixel: output (2m+ry, 2n+rx) uses input rows {m-1+ry, m+ry} with taps 3-2*di-ry."""
    c_src, cout = wt_part.shape[0], wt_part.shape[1]
    per_rx = []
    for rx in range(2):
        per_ry = []
        for ry in range(2):
            taps = [wt_part[:, :, 3 - 2 * di - ry, 3 - 2 * dj - rx]
                    for di in range(2) for dj in range(2)]
            m = jnp.stack(taps, axis=0).reshape(4 * c_src, cout) * scale[None, :]
            per_ry.append(_pad_lanes(m))
        per_rx.append(jnp.stack(per_ry, axis=0).astype(jnp.bfloat16))
    return per_rx


def build_params(key, input_nc=3, num_classes=2, ngf=8, num_downs=5):
    # encoder: (cin, cout, has_batchnorm)
    enc_io = [(input_nc, ngf, True), (ngf, ngf * 2, True),
              (ngf * 2, ngf * 4, True), (ngf * 4, ngf * 8, True)]
    for _ in range(num_downs - 5):
        enc_io.append((ngf * 8, ngf * 8, True))
    enc_io.append((ngf * 8, ngf * 8, False))                  # innermost: no norm

    # decoder: (skip channels, prev channels, cout, has_batchnorm)
    dec_io = [(0, ngf * 8, ngf * 8, True)]                    # innermost
    for _ in range(num_downs - 5):
        dec_io.append((ngf * 8, ngf * 8, ngf * 8, True))
    dec_io += [(ngf * 8, ngf * 8, ngf * 4, True),
               (ngf * 4, ngf * 4, ngf * 2, True),
               (ngf * 2, ngf * 2, ngf, True),
               (ngf, ngf, num_classes, False)]                # outermost: no norm

    keys = jax.random.split(key, len(enc_io) + len(dec_io))
    ki = 0
    enc_p, enc_c, dec_p, dec_c = [], [], [], []

    for li, (cin, cout, has_bn) in enumerate(enc_io):
        k1, k2 = jax.random.split(keys[ki]); ki += 1
        w, b = _init_conv(k1, cout, cin, 4)
        s, off = _fold_affine(b, _init_bn(k2, cout) if has_bn else None)
        # Fused epilogue = next consumer's pre-activation (LeakyReLU for encoder chain,
        # ReLU for the innermost output which feeds the innermost up block).
        act = "relu" if li == len(enc_io) - 1 else "leaky_relu"
        enc_p.append(dict(w=_pack_enc_weight(w, s), off=_pad_lanes(off)[None, :]))
        enc_c.append((cout, act))

    for li, (cs, cp, cout, has_bn) in enumerate(dec_io):
        k1, k2 = jax.random.split(keys[ki]); ki += 1
        kw_, kb = jax.random.split(k1)
        cin = cs + cp
        bound = 1.0 / jnp.sqrt(cin * 16)
        wt = jax.random.uniform(kw_, (cin, cout, 4, 4), jnp.float32, -bound, bound)
        b = jax.random.uniform(kb, (cout,), jnp.float32, -bound, bound)
        s, off = _fold_affine(b, _init_bn(k2, cout) if has_bn else None)
        ws = _pack_dec_weight(wt[:cs], s) if cs else None     # rows 0..cs-1 = skip half
        wp = _pack_dec_weight(wt[cs:], s)                     # rows cs..    = prev half
        act = "none" if li == len(dec_io) - 1 else "relu"
        dec_p.append(dict(ws=ws, wp=wp, off=_pad_lanes(off)[None, :]))
        dec_c.append((cout, act))

    params = dict(enc=enc_p, dec=dec_p)
    config = dict(enc=tuple(enc_c), dec=tuple(dec_c))         # static (cout, act)
    return params, config


# -------------------------------- forward ----------------------------------- #

def unet_forward(x_nchw, params, config):
    x = jnp.transpose(x_nchw, (0, 2, 3, 1)).astype(jnp.bfloat16)   # NCHW -> NHWC, bf16 once
    enc_p, dec_p = params["enc"], params["dec"]
    enc_c, dec_c = config["enc"], config["dec"]

    # encoder: every stored output already carries its consumer's pre-activation
    skips, out = [], x
    for i, (p, (cout, act)) in enumerate(zip(enc_p, enc_c)):
        out = conv2d_down(out, p["w"], p["off"], cout, act)
        if i != len(enc_p) - 1:
            skips.append(out)             # leaky-activated; decoder re-ReLUs it in-kernel

    # decoder: skip = skip_connections[-i]; concat + skip ReLU are fused into the kernel
    y = out
    for i, (p, (cout, act)) in enumerate(zip(dec_p, dec_c)):
        skip = None if i == 0 else skips[-i]
        y = conv_transpose2d_up(y, skip, p["wp"], p["ws"], p["off"], cout, act)

    return jnp.transpose(y, (0, 3, 1, 2)).astype(jnp.float32)      # NHWC -> NCHW


if __name__ == "__main__":
    key = jax.random.PRNGKey(0)
    kp, kx = jax.random.split(key)

    # args: num_downs=5, ngf=8, down_type=STRIDECONV, refine_network=False,
    # num_classes=2, input_nc=3 ; 32x32 input -> 1x1 bottleneck with 5 downs
    params, config = build_params(kp, input_nc=3, num_classes=2, ngf=8, num_downs=5)
    x = jax.random.normal(kx, (2, 3, 32, 32), jnp.float32)

    fwd = jax.jit(functools.partial(unet_forward, config=config))
    out = jax.block_until_ready(fwd(x, params))

    assert out.shape == (2, 2, 32, 32), out.shape
    assert bool(jnp.all(jnp.isfinite(out)))
    print("KERNEL_OK")
</pallas_src>

<mosaic_0001>
module attributes {stable_mosaic.version = 11 : i64} {
  func.func @_enc_kernel(%arg0: i32, %arg1: memref<256x48xbf16, #tpu.memory_space<vmem>>, %arg2: memref<48x128xbf16, #tpu.memory_space<vmem>>, %arg3: memref<1x128xf32, #tpu.memory_space<vmem>>, %arg4: memref<256x8xbf16, #tpu.memory_space<vmem>>) attributes {dimension_semantics = [#tpu.dimension_semantics<parallel>], iteration_bounds = array<i64: 2>, scalar_prefetch = 0 : i64, scratch_operands = 0 : i64, tpu.core_type = #tpu.core_type<tc>, window_params = [{transform_indices = @transform_0, window_bounds = array<i64: 256, 48>}, {pipeline_mode = #tpu.pipeline_mode<synchronous>, transform_indices = @transform_1, window_bounds = array<i64: 48, 128>}, {pipeline_mode = #tpu.pipeline_mode<synchronous>, transform_indices = @transform_2, window_bounds = array<i64: 1, 128>}, {transform_indices = @transform_3, window_bounds = array<i64: 256, 8>}]} {
    %c0 = arith.constant 0 : index
    %c0_0 = arith.constant 0 : index
    %0 = vector.load %arg1[%c0, %c0_0] : memref<256x48xbf16, #tpu.memory_space<vmem>>, vector<256x48xbf16>
    %c0_1 = arith.constant 0 : index
    %c0_2 = arith.constant 0 : index
    %1 = vector.load %arg2[%c0_1, %c0_2] : memref<48x128xbf16, #tpu.memory_space<vmem>>, vector<48x128xbf16>
    %cst = arith.constant dense<0.000000e+00> : vector<256x128xf32>
    %2 = tpu.matmul %0, %1, %cst {dimension_numbers = #tpu.dot_dimension_numbers<[1], [0], [0], [1], [0, 0, 1, 1], [], []>} : vector<256x48xbf16>, vector<48x128xbf16>, vector<256x128xf32> -> vector<256x128xf32>
    %c0_3 = arith.constant 0 : index
    %c0_4 = arith.constant 0 : index
    %3 = vector.load %arg3[%c0_3, %c0_4] : memref<1x128xf32, #tpu.memory_space<vmem>>, vector<1x128xf32>
    %4 = vector.broadcast %3 : vector<1x128xf32> to vector<256x128xf32>
    %5 = arith.addf %2, %4 : vector<256x128xf32>
    %cst_5 = arith.constant 0.000000e+00 : f32
    %6 = vector.broadcast %cst_5 : f32 to vector<256x128xf32>
    %7 = arith.cmpf ogt, %5, %6 : vector<256x128xf32>
    %cst_6 = arith.constant 2.000000e-01 : f32
    %8 = vector.broadcast %cst_6 : f32 to vector<256x128xf32>
    %9 = arith.mulf %8, %5 : vector<256x128xf32>
    %10 = arith.select %7, %5, %9 : vector<256x128xi1>, vector<256x128xf32>
    %11 = vector.extract_strided_slice %10 {offsets = [0, 0], sizes = [256, 8], strides = [1, 1]} : vector<256x128xf32> to vector<256x8xf32>
    %12 = arith.truncf %11 : vector<256x8xf32> to vector<256x8xbf16>
    %c0_7 = arith.constant 0 : index
    %c0_8 = arith.constant 0 : index
    %13 = vector.load %arg4[%c0_7, %c0_8] : memref<256x8xbf16, #tpu.memory_space<vmem>>, vector<256x8xbf16>
    tpu.vector_store %arg4[%c0_7, %c0_8], %12 {strides = array<i32>} : memref<256x8xbf16, #tpu.memory_space<vmem>>, vector<256x8xbf16>,
    return
  }
  func.func @transform_0(%arg0: i32) -> (i32, i32) {
    %c0_i32 = arith.constant 0 : i32
    %c0_i32_0 = arith.constant 0 : i32
    return %arg0, %c0_i32 : i32, i32
  }
  func.func @transform_1(%arg0: i32) -> (i32, i32) {
    %c0_i32 = arith.constant 0 : i32
    %c0_i32_0 = arith.constant 0 : i32
    %c0_i32_1 = arith.constant 0 : i32
    return %c0_i32, %c0_i32_0 : i32, i32
  }
  func.func @transform_2(%arg0: i32) -> (i32, i32) {
    %c0_i32 = arith.constant 0 : i32
    %c0_i32_0 = arith.constant 0 : i32
    %c0_i32_1 = arith.constant 0 : i32
    return %c0_i32, %c0_i32_0 : i32, i32
  }
  func.func @transform_3(%arg0: i32) -> (i32, i32) {
    %c0_i32 = arith.constant 0 : i32
    %c0_i32_0 = arith.constant 0 : i32
    return %arg0, %c0_i32 : i32, i32
  }
}

module attributes {stable_mosaic.version = 11 : i64} {
  func.func @_enc_kernel(%arg0: i32, %arg1: memref<64x128xbf16, #tpu.memory_space<vmem>>, %arg2: memref<128x128xbf16, #tpu.memory_space<vmem>>, %arg3: memref<1x128xf32, #tpu.memory_space<vmem>>, %arg4: memref<64x16xbf16, #tpu.memory_space<vmem>>) attributes {dimension_semantics = [#tpu.dimension_semantics<parallel>], iteration_bounds = array<i64: 2>, scalar_prefetch = 0 : i64, scratch_operands = 0 : i64, tpu.core_type = #tpu.core_type<tc>, window_params = [{transform_indices = @transform_0, window_bounds = array<i64: 64, 128>}, {pipeline_mode = #tpu.pipeline_mode<synchronous>, transform_indices = @transform_1, window_bounds = array<i64: 128, 128>}, {pipeline_mode = #tpu.pipeline_mode<synchronous>, transform_indices = @transform_2, window_bounds = array<i64: 1, 128>}, {transform_indices = @transform_3, window_bounds = array<i64: 64, 16>}]} {
    %c0 = arith.constant 0 : index
    %c0_0 = arith.constant 0 : index
    %0 = vector.load %arg1[%c0, %c0_0] : memref<64x128xbf16, #tpu.memory_space<vmem>>, vector<64x128xbf16>
    %c0_1 = arith.constant 0 : index
    %c0_2 = arith.constant 0 : index
    %1 = vector.load %arg2[%c0_1, %c0_2] : memref<128x128xbf16, #tpu.memory_space<vmem>>, vector<128x128xbf16>
    %cst = arith.constant dense<0.000000e+00> : vector<64x128xf32>
    %2 = tpu.matmul %0, %1, %cst {dimension_numbers = #tpu.dot_dimension_numbers<[1], [0], [0], [1], [0, 0, 1, 1], [], []>} : vector<64x128xbf16>, vector<128x128xbf16>, vector<64x128xf32> -> vector<64x128xf32>
    %c0_3 = arith.constant 0 : index
    %c0_4 = arith.constant 0 : index
    %3 = vector.load %arg3[%c0_3, %c0_4] : memref<1x128xf32, #tpu.memory_space<vmem>>, vector<1x128xf32>
    %4 = vector.broadcast %3 : vector<1x128xf32> to vector<64x128xf32>
    %5 = arith.addf %2, %4 : vector<64x128xf32>
    %cst_5 = arith.constant 0.000000e+00 : f32
    %6 = vector.broadcast %cst_5 : f32 to vector<64x128xf32>
    %7 = arith.cmpf ogt, %5, %6 : vector<64x128xf32>
    %cst_6 = arith.constant 2.000000e-01 : f32
    %8 = vector.broadcast %cst_6 : f32 to vector<64x128xf32>
    %9 = arith.mulf %8, %5 : vector<64x128xf32>
    %10 = arith.select %7, %5, %9 : vector<64x128xi1>, vector<64x128xf32>
    %11 = vector.extract_strided_slice %10 {offsets = [0, 0], sizes = [64, 16], strides = [1, 1]} : vector<64x128xf32> to vector<64x16xf32>
    %12 = arith.truncf %11 : vector<64x16xf32> to vector<64x16xbf16>
    %c0_7 = arith.constant 0 : index
    %c0_8 = arith.constant 0 : index
    %13 = vector.load %arg4[%c0_7, %c0_8] : memref<64x16xbf16, #tpu.memory_space<vmem>>, vector<64x16xbf16>
    tpu.vector_store %arg4[%c0_7, %c0_8], %12 {strides = array<i32>} : memref<64x16xbf16, #tpu.memory_space<vmem>>, vector<64x16xbf16>,
    return
  }
  func.func @transform_0(%arg0: i32) -> (i32, i32) {
    %c0_i32 = arith.constant 0 : i32
    %c0_i32_0 = arith.constant 0 : i32
    return %arg0, %c0_i32 : i32, i32
  }
  func.func @transform_1(%arg0: i32) -> (i32, i32) {
    %c0_i32 = arith.constant 0 : i32
    %c0_i32_0 = arith.constant 0 : i32
    %c0_i32_1 = arith.constant 0 : i32
    return %c0_i32, %c0_i32_0 : i32, i32
  }
  func.func @transform_2(%arg0: i32) -> (i32, i32) {
    %c0_i32 = arith.constant 0 : i32
    %c0_i32_0 = arith.constant 0 : i32
    %c0_i32_1 = arith.constant 0 : i32
    return %c0_i32, %c0_i32_0 : i32, i32
  }
  func.func @transform_3(%arg0: i32) -> (i32, i32) {
    %c0_i32 = arith.constant 0 : i32
    %c0_i32_0 = arith.constant 0 : i32
    return %arg0, %c0_i32 : i32, i32
  }
}

module attributes {stable_mosaic.version = 11 : i64} {
  func.func @_enc_kernel(%arg0: i32, %arg1: memref<32x256xbf16, #tpu.memory_space<vmem>>, %arg2: memref<256x128xbf16, #tpu.memory_space<vmem>>, %arg3: memref<1x128xf32, #tpu.memory_space<vmem>>, %arg4: memref<32x32xbf16, #tpu.memory_space<vmem>>) attributes {dimension_semantics = [#tpu.dimension_semantics<parallel>], iteration_bounds = array<i64: 1>, scalar_prefetch = 0 : i64, scratch_operands = 0 : i64, tpu.core_type = #tpu.core_type<tc>, window_params = [{transform_indices = @transform_0, window_bounds = array<i64: 32, 256>}, {pipeline_mode = #tpu.pipeline_mode<synchronous>, transform_indices = @transform_1, window_bounds = array<i64: 256, 128>}, {pipeline_mode = #tpu.pipeline_mode<synchronous>, transform_indices = @transform_2, window_bounds = array<i64: 1, 128>}, {transform_indices = @transform_3, window_bounds = array<i64: 32, 32>}]} {
    %c0 = arith.constant 0 : index
    %c0_0 = arith.constant 0 : index
    %0 = vector.load %arg1[%c0, %c0_0] : memref<32x256xbf16, #tpu.memory_space<vmem>>, vector<32x256xbf16>
    %c0_1 = arith.constant 0 : index
    %c0_2 = arith.constant 0 : index
    %1 = vector.load %arg2[%c0_1, %c0_2] : memref<256x128xbf16, #tpu.memory_space<vmem>>, vector<256x128xbf16>
    %cst = arith.constant dense<0.000000e+00> : vector<32x128xf32>
    %2 = tpu.matmul %0, %1, %cst {dimension_numbers = #tpu.dot_dimension_numbers<[1], [0], [0], [1], [0, 0, 1, 1], [], []>} : vector<32x256xbf16>, vector<256x128xbf16>, vector<32x128xf32> -> vector<32x128xf32>
    %c0_3 = arith.constant 0 : index
    %c0_4 = arith.constant 0 : index
    %3 = vector.load %arg3[%c0_3, %c0_4] : memref<1x128xf32, #tpu.memory_space<vmem>>, vector<1x128xf32>
    %4 = vector.broadcast %3 : vector<1x128xf32> to vector<32x128xf32>
    %5 = arith.addf %2, %4 : vector<32x128xf32>
    %cst_5 = arith.constant 0.000000e+00 : f32
    %6 = vector.broadcast %cst_5 : f32 to vector<32x128xf32>
    %7 = arith.cmpf ogt, %5, %6 : vector<32x128xf32>
    %cst_6 = arith.constant 2.000000e-01 : f32
    %8 = vector.broadcast %cst_6 : f32 to vector<32x128xf32>
    %9 = arith.mulf %8, %5 : vector<32x128xf32>
    %10 = arith.select %7, %5, %9 : vector<32x128xi1>, vector<32x128xf32>
    %11 = vector.extract_strided_slice %10 {offsets = [0, 0], sizes = [32, 32], strides = [1, 1]} : vector<32x128xf32> to vector<32x32xf32>
    %12 = arith.truncf %11 : vector<32x32xf32> to vector<32x32xbf16>
    %c0_7 = arith.constant 0 : index
    %c0_8 = arith.constant 0 : index
    %13 = vector.load %arg4[%c0_7, %c0_8] : memref<32x32xbf16, #tpu.memory_space<vmem>>, vector<32x32xbf16>
    tpu.vector_store %arg4[%c0_7, %c0_8], %12 {strides = array<i32>} : memref<32x32xbf16, #tpu.memory_space<vmem>>, vector<32x32xbf16>,
    return
  }
  func.func @transform_0(%arg0: i32) -> (i32, i32) {
    %c0_i32 = arith.constant 0 : i32
    %c0_i32_0 = arith.constant 0 : i32
    return %arg0, %c0_i32 : i32, i32
  }
  func.func @transform_1(%arg0: i32) -> (i32, i32) {
    %c0_i32 = arith.constant 0 : i32
    %c0_i32_0 = arith.constant 0 : i32
    %c0_i32_1 = arith.constant 0 : i32
    return %c0_i32, %c0_i32_0 : i32, i32
  }
  func.func @transform_2(%arg0: i32) -> (i32, i32) {
    %c0_i32 = arith.constant 0 : i32
    %c0_i32_0 = arith.constant 0 : i32
    %c0_i32_1 = arith.constant 0 : i32
    return %c0_i32, %c0_i32_0 : i32, i32
  }
  func.func @transform_3(%arg0: i32) -> (i32, i32) {
    %c0_i32 = arith.constant 0 : i32
    %c0_i32_0 = arith.constant 0 : i32
    return %arg0, %c0_i32 : i32, i32
  }
}

module attributes {stable_mosaic.version = 11 : i64} {
  func.func @_enc_kernel(%arg0: i32, %arg1: memref<8x512xbf16, #tpu.memory_space<vmem>>, %arg2: memref<512x128xbf16, #tpu.memory_space<vmem>>, %arg3: memref<1x128xf32, #tpu.memory_space<vmem>>, %arg4: memref<8x64xbf16, #tpu.memory_space<vmem>>) attributes {dimension_semantics = [#tpu.dimension_semantics<parallel>], iteration_bounds = array<i64: 1>, scalar_prefetch = 0 : i64, scratch_operands = 0 : i64, tpu.core_type = #tpu.core_type<tc>, window_params = [{transform_indices = @transform_0, window_bounds = array<i64: 8, 512>}, {pipeline_mode = #tpu.pipeline_mode<synchronous>, transform_indices = @transform_1, window_bounds = array<i64: 512, 128>}, {pipeline_mode = #tpu.pipeline_mode<synchronous>, transform_indices = @transform_2, window_bounds = array<i64: 1, 128>}, {transform_indices = @transform_3, window_bounds = array<i64: 8, 64>}]} {
    %c0 = arith.constant 0 : index
    %c0_0 = arith.constant 0 : index
    %0 = vector.load %arg1[%c0, %c0_0] : memref<8x512xbf16, #tpu.memory_space<vmem>>, vector<8x512xbf16>
    %c0_1 = arith.constant 0 : index
    %c0_2 = arith.constant 0 : index
    %1 = vector.load %arg2[%c0_1, %c0_2] : memref<512x128xbf16, #tpu.memory_space<vmem>>, vector<512x128xbf16>
    %cst = arith.constant dense<0.000000e+00> : vector<8x128xf32>
    %2 = tpu.matmul %0, %1, %cst {dimension_numbers = #tpu.dot_dimension_numbers<[1], [0], [0], [1], [0, 0, 1, 1], [], []>} : vector<8x512xbf16>, vector<512x128xbf16>, vector<8x128xf32> -> vector<8x128xf32>
    %c0_3 = arith.constant 0 : index
    %c0_4 = arith.constant 0 : index
    %3 = vector.load %arg3[%c0_3, %c0_4] : memref<1x128xf32, #tpu.memory_space<vmem>>, vector<1x128xf32>
    %4 = vector.broadcast %3 : vector<1x128xf32> to vector<8x128xf32>
    %5 = arith.addf %2, %4 : vector<8x128xf32>
    %cst_5 = arith.constant 0.000000e+00 : f32
    %6 = vector.broadcast %cst_5 : f32 to vector<8x128xf32>
    %7 = arith.cmpf ogt, %5, %6 : vector<8x128xf32>
    %cst_6 = arith.constant 2.000000e-01 : f32
    %8 = vector.broadcast %cst_6 : f32 to vector<8x128xf32>
    %9 = arith.mulf %8, %5 : vector<8x128xf32>
    %10 = arith.select %7, %5, %9 : vector<8x128xi1>, vector<8x128xf32>
    %11 = vector.extract_strided_slice %10 {offsets = [0, 0], sizes = [8, 64], strides = [1, 1]} : vector<8x128xf32> to vector<8x64xf32>
    %12 = arith.truncf %11 : vector<8x64xf32> to vector<8x64xbf16>
    %c0_7 = arith.constant 0 : index
    %c0_8 = arith.constant 0 : index
    %13 = vector.load %arg4[%c0_7, %c0_8] : memref<8x64xbf16, #tpu.memory_space<vmem>>, vector<8x64xbf16>
    tpu.vector_store %arg4[%c0_7, %c0_8], %12 {strides = array<i32>} : memref<8x64xbf16, #tpu.memory_space<vmem>>, vector<8x64xbf16>,
    return
  }
  func.func @transform_0(%arg0: i32) -> (i32, i32) {
    %c0_i32 = arith.constant 0 : i32
    %c0_i32_0 = arith.constant 0 : i32
    return %arg0, %c0_i32 : i32, i32
  }
  func.func @transform_1(%arg0: i32) -> (i32, i32) {
    %c0_i32 = arith.constant 0 : i32
    %c0_i32_0 = arith.constant 0 : i32
    %c0_i32_1 = arith.constant 0 : i32
    return %c0_i32, %c0_i32_0 : i32, i32
  }
  func.func @transform_2(%arg0: i32) -> (i32, i32) {
    %c0_i32 = arith.constant 0 : i32
    %c0_i32_0 = arith.constant 0 : i32
    %c0_i32_1 = arith.constant 0 : i32
    return %c0_i32, %c0_i32_0 : i32, i32
  }
  func.func @transform_3(%arg0: i32) -> (i32, i32) {
    %c0_i32 = arith.constant 0 : i32
    %c0_i32_0 = arith.constant 0 : i32
    return %arg0, %c0_i32 : i32, i32
  }
}

module attributes {stable_mosaic.version = 11 : i64} {
  func.func @_enc_kernel(%arg0: i32, %arg1: memref<2x1024xbf16, #tpu.memory_space<vmem>>, %arg2: memref<1024x128xbf16, #tpu.memory_space<vmem>>, %arg3: memref<1x128xf32, #tpu.memory_space<vmem>>, %arg4: memref<2x64xbf16, #tpu.memory_space<vmem>>) attributes {dimension_semantics = [#tpu.dimension_semantics<parallel>], iteration_bounds = array<i64: 1>, scalar_prefetch = 0 : i64, scratch_operands = 0 : i64, tpu.core_type = #tpu.core_type<tc>, window_params = [{transform_indices = @transform_0, window_bounds = array<i64: 2, 1024>}, {pipeline_mode = #tpu.pipeline_mode<synchronous>, transform_indices = @transform_1, window_bounds = array<i64: 1024, 128>}, {pipeline_mode = #tpu.pipeline_mode<synchronous>, transform_indices = @transform_2, window_bounds = array<i64: 1, 128>}, {transform_indices = @transform_3, window_bounds = array<i64: 2, 64>}]} {
    %c0 = arith.constant 0 : index
    %c0_0 = arith.constant 0 : index
    %0 = vector.load %arg1[%c0, %c0_0] : memref<2x1024xbf16, #tpu.memory_space<vmem>>, vector<2x1024xbf16>
    %c0_1 = arith.constant 0 : index
    %c0_2 = arith.constant 0 : index
    %1 = vector.load %arg2[%c0_1, %c0_2] : memref<1024x128xbf16, #tpu.memory_space<vmem>>, vector<1024x128xbf16>
    %cst = arith.constant dense<0.000000e+00> : vector<2x128xf32>
    %2 = tpu.matmul %0, %1, %cst {dimension_numbers = #tpu.dot_dimension_numbers<[1], [0], [0], [1], [0, 0, 1, 1], [], []>} : vector<2x1024xbf16>, vector<1024x128xbf16>, vector<2x128xf32> -> vector<2x128xf32>
    %c0_3 = arith.constant 0 : index
    %c0_4 = arith.constant 0 : index
    %3 = vector.load %arg3[%c0_3, %c0_4] : memref<1x128xf32, #tpu.memory_space<vmem>>, vector<1x128xf32>
    %4 = vector.broadcast %3 : vector<1x128xf32> to vector<2x128xf32>
    %5 = arith.addf %2, %4 : vector<2x128xf32>
    %cst_5 = arith.constant 0.000000e+00 : f32
    %6 = vector.broadcast %cst_5 : f32 to vector<2x128xf32>
    %7 = arith.maximumf %5, %6 : vector<2x128xf32>
    %8 = vector.extract_strided_slice %7 {offsets = [0, 0], sizes = [2, 64], strides = [1, 1]} : vector<2x128xf32> to vector<2x64xf32>
    %9 = arith.truncf %8 : vector<2x64xf32> to vector<2x64xbf16>
    %c0_6 = arith.constant 0 : index
    %c0_7 = arith.constant 0 : index
    %10 = vector.load %arg4[%c0_6, %c0_7] : memref<2x64xbf16, #tpu.memory_space<vmem>>, vector<2x64xbf16>
    tpu.vector_store %arg4[%c0_6, %c0_7], %9 {strides = array<i32>} : memref<2x64xbf16, #tpu.memory_space<vmem>>, vector<2x64xbf16>,
    return
  }
  func.func @transform_0(%arg0: i32) -> (i32, i32) {
    %c0_i32 = arith.constant 0 : i32
    %c0_i32_0 = arith.constant 0 : i32
    return %arg0, %c0_i32 : i32, i32
  }
  func.func @transform_1(%arg0: i32) -> (i32, i32) {
    %c0_i32 = arith.constant 0 : i32
    %c0_i32_0 = arith.constant 0 : i32
    %c0_i32_1 = arith.constant 0 : i32
    return %c0_i32, %c0_i32_0 : i32, i32
  }
  func.func @transform_2(%arg0: i32) -> (i32, i32) {
    %c0_i32 = arith.constant 0 : i32
    %c0_i32_0 = arith.constant 0 : i32
    %c0_i32_1 = arith.constant 0 : i32
    return %c0_i32, %c0_i32_0 : i32, i32
  }
  func.func @transform_3(%arg0: i32) -> (i32, i32) {
    %c0_i32 = arith.constant 0 : i32
    %c0_i32_0 = arith.constant 0 : i32
    return %arg0, %c0_i32 : i32, i32
  }
}

module attributes {stable_mosaic.version = 11 : i64} {
  func.func @_dec_kernel(%arg0: i32, %arg1: i32, %arg2: memref<1x2x256xbf16, #tpu.memory_space<vmem>>, %arg3: memref<1x2x256xbf16, #tpu.memory_space<vmem>>, %arg4: memref<1x256x128xbf16, #tpu.memory_space<vmem>>, %arg5: memref<1x256x128xbf16, #tpu.memory_space<vmem>>, %arg6: memref<1x128xf32, #tpu.memory_space<vmem>>, %arg7: memref<1x2x256xbf16, #tpu.memory_space<vmem>>) attributes {dimension_semantics = [#tpu.dimension_semantics<parallel>, #tpu.dimension_semantics<parallel>], iteration_bounds = array<i64: 2, 1>, scalar_prefetch = 0 : i64, scratch_operands = 0 : i64, tpu.core_type = #tpu.core_type<tc>, window_params = [{transform_indices = @transform_0, window_bounds = array<i64: 1, 2, 256>}, {transform_indices = @transform_1, window_bounds = array<i64: 1, 2, 256>}, {transform_indices = @transform_2, window_bounds = array<i64: 1, 256, 128>}, {transform_indices = @transform_3, window_bounds = array<i64: 1, 256, 128>}, {pipeline_mode = #tpu.pipeline_mode<synchronous>, transform_indices = @transform_4, window_bounds = array<i64: 1, 128>}, {transform_indices = @transform_5, window_bounds = array<i64: 1, 2, 256>}]} {
    %c0 = arith.constant 0 : index
    %c0_0 = arith.constant 0 : index
    %c0_1 = arith.constant 0 : index
    %0 = vector.load %arg2[%c0, %c0_0, %c0_1] : memref<1x2x256xbf16, #tpu.memory_space<vmem>>, vector<1x2x256xbf16>
    %1 = vector.shape_cast %0 : vector<1x2x256xbf16> to vector<2x256xbf16>
    %c0_2 = arith.constant 0 : index
    %c0_3 = arith.constant 0 : index
    %c0_4 = arith.constant 0 : index
    %2 = vector.load %arg4[%c0_2, %c0_3, %c0_4] : memref<1x256x128xbf16, #tpu.memory_space<vmem>>, vector<1x256x128xbf16>
    %3 = vector.shape_cast %2 : vector<1x256x128xbf16> to vector<256x128xbf16>
    %cst = arith.constant dense<0.000000e+00> : vector<2x128xf32>
    %4 = tpu.matmul %1, %3, %cst {dimension_numbers = #tpu.dot_dimension_numbers<[1], [0], [0], [1], [0, 0, 1, 1], [], []>} : vector<2x256xbf16>, vector<256x128xbf16>, vector<2x128xf32> -> vector<2x128xf32>
    %c0_5 = arith.constant 0 : index
    %c0_6 = arith.constant 0 : index
    %5 = vector.load %arg6[%c0_5, %c0_6] : memref<1x128xf32, #tpu.memory_space<vmem>>, vector<1x128xf32>
    %6 = vector.broadcast %5 : vector<1x128xf32> to vector<2x128xf32>
    %7 = arith.addf %4, %6 : vector<2x128xf32>
    %cst_7 = arith.constant 0.000000e+00 : f32
    %8 = vector.broadcast %cst_7 : f32 to vector<2x128xf32>
    %9 = arith.maximumf %7, %8 : vector<2x128xf32>
    %10 = arith.truncf %9 : vector<2x128xf32> to vector<2x128xbf16>
    %c0_8 = arith.constant 0 : index
    %c0_9 = arith.constant 0 : index
    %c0_10 = arith.constant 0 : index
    %11 = vector.load %arg7[%c0_8, %c0_9, %c0_10] : memref<1x2x256xbf16, #tpu.memory_space<vmem>>, vector<1x2x128xbf16>
    %12 = vector.shape_cast %11 : vector<1x2x128xbf16> to vector<2x128xbf16>
    %13 = vector.shape_cast %10 : vector<2x128xbf16> to vector<1x2x128xbf16>
    tpu.vector_store %arg7[%c0_8, %c0_9, %c0_10], %13 {strides = array<i32>} : memref<1x2x256xbf16, #tpu.memory_space<vmem>>, vector<1x2x128xbf16>,
    %c0_11 = arith.constant 0 : index
    %c0_12 = arith.constant 0 : index
    %c0_13 = arith.constant 0 : index
    %14 = vector.load %arg3[%c0_11, %c0_12, %c0_13] : memref<1x2x256xbf16, #tpu.memory_space<vmem>>, vector<1x2x256xbf16>
    %15 = vector.shape_cast %14 : vector<1x2x256xbf16> to vector<2x256xbf16>
    %c0_14 = arith.constant 0 : index
    %c0_15 = arith.constant 0 : index
    %c0_16 = arith.constant 0 : index
    %16 = vector.load %arg5[%c0_14, %c0_15, %c0_16] : memref<1x256x128xbf16, #tpu.memory_space<vmem>>, vector<1x256x128xbf16>
    %17 = vector.shape_cast %16 : vector<1x256x128xbf16> to vector<256x128xbf16>
    %cst_17 = arith.constant dense<0.000000e+00> : vector<2x128xf32>
    %18 = tpu.matmul %15, %17, %cst_17 {dimension_numbers = #tpu.dot_dimension_numbers<[1], [0], [0], [1], [0, 0, 1, 1], [], []>} : vector<2x256xbf16>, vector<256x128xbf16>, vector<2x128xf32> -> vector<2x128xf32>
    %c0_18 = arith.constant 0 : index
    %c0_19 = arith.constant 0 : index
    %19 = vector.load %arg6[%c0_18, %c0_19] : memref<1x128xf32, #tpu.memory_space<vmem>>, vector<1x128xf32>
    %20 = vector.broadcast %19 : vector<1x128xf32> to vector<2x128xf32>
    %21 = arith.addf %18, %20 : vector<2x128xf32>
    %cst_20 = arith.constant 0.000000e+00 : f32
    %22 = vector.broadcast %cst_20 : f32 to vector<2x128xf32>
    %23 = arith.maximumf %21, %22 : vector<2x128xf32>
    %24 = arith.truncf %23 : vector<2x128xf32> to vector<2x128xbf16>
    %c0_21 = arith.constant 0 : index
    %c0_22 = arith.constant 0 : index
    %c128 = arith.constant 128 : index
    %25 = vector.load %arg7[%c0_21, %c0_22, %c128] : memref<1x2x256xbf16, #tpu.memory_space<vmem>>, vector<1x2x128xbf16>
    %26 = vector.shape_cast %25 : vector<1x2x128xbf16> to vector<2x128xbf16>
    %27 = vector.shape_cast %24 : vector<2x128xbf16> to vector<1x2x128xbf16>
    tpu.vector_store %arg7[%c0_21, %c0_22, %c128], %27 {strides = array<i32>} : memref<1x2x256xbf16, #tpu.memory_space<vmem>>, vector<1x2x128xbf16>,
    return
  }
  func.func @transform_0(%arg0: i32, %arg1: i32) -> (i32, i32, i32) {
    %c0_i32 = arith.constant 0 : i32
    %c0_i32_0 = arith.constant 0 : i32
    return %arg0, %arg1, %c0_i32 : i32, i32, i32
  }
  func.func @transform_1(%arg0: i32, %arg1: i32) -> (i32, i32, i32) {
    %c0_i32 = arith.constant 0 : i32
    %c0_i32_0 = arith.constant 0 : i32
    return %arg0, %arg1, %c0_i32 : i32, i32, i32
  }
  func.func @transform_2(%arg0: i32, %arg1: i32) -> (i32, i32, i32) {
    %c0_i32 = arith.constant 0 : i32
    %c0_i32_0 = arith.constant 0 : i32
    %c0_i32_1 = arith.constant 0 : i32
    return %arg0, %c0_i32, %c0_i32_0 : i32, i32, i32
  }
  func.func @transform_3(%arg0: i32, %arg1: i32) -> (i32, i32, i32) {
    %c0_i32 = arith.constant 0 : i32
    %c0_i32_0 = arith.constant 0 : i32
    %c0_i32_1 = arith.constant 0 : i32
    return %arg0, %c0_i32, %c0_i32_0 : i32, i32, i32
  }
  func.func @transform_4(%arg0: i32, %arg1: i32) -> (i32, i32) {
    %c0_i32 = arith.constant 0 : i32
    %c0_i32_0 = arith.constant 0 : i32
    %c0_i32_1 = arith.constant 0 : i32
    return %c0_i32, %c0_i32_0 : i32, i32
  }
  func.func @transform_5(%arg0: i32, %arg1: i32) -> (i32, i32, i32) {
    %c0_i32 = arith.constant 0 : i32
    %c0_i32_0 = arith.constant 0 : i32
    return %arg0, %arg1, %c0_i32 : i32, i32, i32
  }
}

module attributes {stable_mosaic.version = 11 : i64} {
  func.func @_dec_kernel(%arg0: i32, %arg1: i32, %arg2: memref<1x8x256xbf16, #tpu.memory_space<vmem>>, %arg3: memref<1x8x256xbf16, #tpu.memory_space<vmem>>, %arg4: memref<1x8x256xbf16, #tpu.memory_space<vmem>>, %arg5: memref<1x8x256xbf16, #tpu.memory_space<vmem>>, %arg6: memref<1x256x128xbf16, #tpu.memory_space<vmem>>, %arg7: memref<1x256x128xbf16, #tpu.memory_space<vmem>>, %arg8: memref<1x256x128xbf16, #tpu.memory_space<vmem>>, %arg9: memref<1x256x128xbf16, #tpu.memory_space<vmem>>, %arg10: memref<1x128xf32, #tpu.memory_space<vmem>>, %arg11: memref<1x8x256xbf16, #tpu.memory_space<vmem>>) attributes {dimension_semantics = [#tpu.dimension_semantics<parallel>, #tpu.dimension_semantics<parallel>], iteration_bounds = array<i64: 2, 1>, scalar_prefetch = 0 : i64, scratch_operands = 0 : i64, tpu.core_type = #tpu.core_type<tc>, window_params = [{transform_indices = @transform_0, window_bounds = array<i64: 1, 8, 256>}, {transform_indices = @transform_1, window_bounds = array<i64: 1, 8, 256>}, {transform_indices = @transform_2, window_bounds = array<i64: 1, 8, 256>}, {transform_indices = @transform_3, window_bounds = array<i64: 1, 8, 256>}, {transform_indices = @transform_4, window_bounds = array<i64: 1, 256, 128>}, {transform_indices = @transform_5, window_bounds = array<i64: 1, 256, 128>}, {transform_indices = @transform_6, window_bounds = array<i64: 1, 256, 128>}, {transform_indices = @transform_7, window_bounds = array<i64: 1, 256, 128>}, {pipeline_mode = #tpu.pipeline_mode<synchronous>, transform_indices = @transform_8, window_bounds = array<i64: 1, 128>}, {transform_indices = @transform_9, window_bounds = array<i64: 1, 8, 256>}]} {
    %c0 = arith.constant 0 : index
    %c0_0 = arith.constant 0 : index
    %c0_1 = arith.constant 0 : index
    %0 = vector.load %arg4[%c0, %c0_0, %c0_1] : memref<1x8x256xbf16, #tpu.memory_space<vmem>>, vector<1x8x256xbf16>
    %1 = vector.shape_cast %0 : vector<1x8x256xbf16> to vector<8x256xbf16>
    %c0_2 = arith.constant 0 : index
    %c0_3 = arith.constant 0 : index
    %c0_4 = arith.constant 0 : index
    %2 = vector.load %arg8[%c0_2, %c0_3, %c0_4] : memref<1x256x128xbf16, #tpu.memory_space<vmem>>, vector<1x256x128xbf16>
    %3 = vector.shape_cast %2 : vector<1x256x128xbf16> to vector<256x128xbf16>
    %cst = arith.constant dense<0.000000e+00> : vector<8x128xf32>
    %4 = tpu.matmul %1, %3, %cst {dimension_numbers = #tpu.dot_dimension_numbers<[1], [0], [0], [1], [0, 0, 1, 1], [], []>} : vector<8x256xbf16>, vector<256x128xbf16>, vector<8x128xf32> -> vector<8x128xf32>
    %c0_5 = arith.constant 0 : index
    %c0_6 = arith.constant 0 : index
    %c0_7 = arith.constant 0 : index
    %5 = vector.load %arg2[%c0_5, %c0_6, %c0_7] : memref<1x8x256xbf16, #tpu.memory_space<vmem>>, vector<1x8x256xbf16>
    %6 = vector.shape_cast %5 : vector<1x8x256xbf16> to vector<8x256xbf16>
    %cst_8 = arith.constant 0.000000e+00 : bf16
    %7 = vector.broadcast %cst_8 : bf16 to vector<8x256xbf16>
    %8 = arith.maximumf %6, %7 : vector<8x256xbf16>
    %c0_9 = arith.constant 0 : index
    %c0_10 = arith.constant 0 : index
    %c0_11 = arith.constant 0 : index
    %9 = vector.load %arg6[%c0_9, %c0_10, %c0_11] : memref<1x256x128xbf16, #tpu.memory_space<vmem>>, vector<1x256x128xbf16>
    %10 = vector.shape_cast %9 : vector<1x256x128xbf16> to vector<256x128xbf16>
    %cst_12 = arith.constant dense<0.000000e+00> : vector<8x128xf32>
    %11 = tpu.matmul %8, %10, %cst_12 {dimension_numbers = #tpu.dot_dimension_numbers<[1], [0], [0], [1], [0, 0, 1, 1], [], []>} : vector<8x256xbf16>, vector<256x128xbf16>, vector<8x128xf32> -> vector<8x128xf32>
    %12 = arith.addf %4, %11 : vector<8x128xf32>
    %c0_13 = arith.constant 0 : index
    %c0_14 = arith.constant 0 : index
    %13 = vector.load %arg10[%c0_13, %c0_14] : memref<1x128xf32, #tpu.memory_space<vmem>>, vector<1x128xf32>
    %14 = vector.broadcast %13 : vector<1x128xf32> to vector<8x128xf32>
    %15 = arith.addf %12, %14 : vector<8x128xf32>
    %cst_15 = arith.constant 0.000000e+00 : f32
    %16 = vector.broadcast %cst_15 : f32 to vector<8x128xf32>
    %17 = arith.maximumf %15, %16 : vector<8x128xf32>
    %18 = arith.truncf %17 : vector<8x128xf32> to vector<8x128xbf16>
    %c0_16 = arith.constant 0 : index
    %c0_17 = arith.constant 0 : index
    %c0_18 = arith.constant 0 : index
    %19 = vector.load %arg11[%c0_16, %c0_17, %c0_18] : memref<1x8x256xbf16, #tpu.memory_space<vmem>>, vector<1x8x128xbf16>
    %20 = vector.shape_cast %19 : vector<1x8x128xbf16> to vector<8x128xbf16>
    %21 = vector.shape_cast %18 : vector<8x128xbf16> to vector<1x8x128xbf16>
    tpu.vector_store %arg11[%c0_16, %c0_17, %c0_18], %21 {strides = array<i32>} : memref<1x8x256xbf16, #tpu.memory_space<vmem>>, vector<1x8x128xbf16>,
    %c0_19 = arith.constant 0 : index
    %c0_20 = arith.constant 0 : index
    %c0_21 = arith.constant 0 : index
    %22 = vector.load %arg5[%c0_19, %c0_20, %c0_21] : memref<1x8x256xbf16, #tpu.memory_space<vmem>>, vector<1x8x256xbf16>
    %23 = vector.shape_cast %22 : vector<1x8x256xbf16> to vector<8x256xbf16>
    %c0_22 = arith.constant 0 : index
    %c0_23 = arith.constant 0 : index
    %c0_24 = arith.constant 0 : index
    %24 = vector.load %arg9[%c0_22, %c0_23, %c0_24] : memref<1x256x128xbf16, #tpu.memory_space<vmem>>, vector<1x256x128xbf16>
    %25 = vector.shape_cast %24 : vector<1x256x128xbf16> to vector<256x128xbf16>
    %cst_25 = arith.constant dense<0.000000e+00> : vector<8x128xf32>
    %26 = tpu.matmul %23, %25, %cst_25 {dimension_numbers = #tpu.dot_dimension_numbers<[1], [0], [0], [1], [0, 0, 1, 1], [], []>} : vector<8x256xbf16>, vector<256x128xbf16>, vector<8x128xf32> -> vector<8x128xf32>
    %c0_26 = arith.constant 0 : index
    %c0_27 = arith.constant 0 : index
    %c0_28 = arith.constant 0 : index
    %27 = vector.load %arg3[%c0_26, %c0_27, %c0_28] : memref<1x8x256xbf16, #tpu.memory_space<vmem>>, vector<1x8x256xbf16>
    %28 = vector.shape_cast %27 : vector<1x8x256xbf16> to vector<8x256xbf16>
    %cst_29 = arith.constant 0.000000e+00 : bf16
    %29 = vector.broadcast %cst_29 : bf16 to vector<8x256xbf16>
    %30 = arith.maximumf %28, %29 : vector<8x256xbf16>
    %c0_30 = arith.constant 0 : index
    %c0_31 = arith.constant 0 : index
    %c0_32 = arith.constant 0 : index
    %31 = vector.load %arg7[%c0_30, %c0_31, %c0_32] : memref<1x256x128xbf16, #tpu.memory_space<vmem>>, vector<1x256x128xbf16>
    %32 = vector.shape_cast %31 : vector<1x256x128xbf16> to vector<256x128xbf16>
    %cst_33 = arith.constant dense<0.000000e+00> : vector<8x128xf32>
    %33 = tpu.matmul %30, %32, %cst_33 {dimension_numbers = #tpu.dot_dimension_numbers<[1], [0], [0], [1], [0, 0, 1, 1], [], []>} : vector<8x256xbf16>, vector<256x128xbf16>, vector<8x128xf32> -> vector<8x128xf32>
    %34 = arith.addf %26, %33 : vector<8x128xf32>
    %c0_34 = arith.constant 0 : index
    %c0_35 = arith.constant 0 : index
    %35 = vector.load %arg10[%c0_34, %c0_35] : memref<1x128xf32, #tpu.memory_space<vmem>>, vector<1x128xf32>
    %36 = vector.broadcast %35 : vector<1x128xf32> to vector<8x128xf32>
    %37 = arith.addf %34, %36 : vector<8x128xf32>
    %cst_36 = arith.constant 0.000000e+00 : f32
    %38 = vector.broadcast %cst_36 : f32 to vector<8x128xf32>
    %39 = arith.maximumf %37, %38 : vector<8x128xf32>
    %40 = arith.truncf %39 : vector<8x128xf32> to vector<8x128xbf16>
    %c0_37 = arith.constant 0 : index
    %c0_38 = arith.constant 0 : index
    %c128 = arith.constant 128 : index
    %41 = vector.load %arg11[%c0_37, %c0_38, %c128] : memref<1x8x256xbf16, #tpu.memory_space<vmem>>, vector<1x8x128xbf16>
    %42 = vector.shape_cast %41 : vector<1x8x128xbf16> to vector<8x128xbf16>
    %43 = vector.shape_cast %40 : vector<8x128xbf16> to vector<1x8x128xbf16>
    tpu.vector_store %arg11[%c0_37, %c0_38, %c128], %43 {strides = array<i32>} : memref<1x8x256xbf16, #tpu.memory_space<vmem>>, vector<1x8x128xbf16>,
    return
  }
  func.func @transform_0(%arg0: i32, %arg1: i32) -> (i32, i32, i32) {
    %c0_i32 = arith.constant 0 : i32
    %c0_i32_0 = arith.constant 0 : i32
    return %arg0, %arg1, %c0_i32 : i32, i32, i32
  }
  func.func @transform_1(%arg0: i32, %arg1: i32) -> (i32, i32, i32) {
    %c0_i32 = arith.constant 0 : i32
    %c0_i32_0 = arith.constant 0 : i32
    return %arg0, %arg1, %c0_i32 : i32, i32, i32
  }
  func.func @transform_2(%arg0: i32, %arg1: i32) -> (i32, i32, i32) {
    %c0_i32 = arith.constant 0 : i32
    %c0_i32_0 = arith.constant 0 : i32
    return %arg0, %arg1, %c0_i32 : i32, i32, i32
  }
  func.func @transform_3(%arg0: i32, %arg1: i32) -> (i32, i32, i32) {
    %c0_i32 = arith.constant 0 : i32
    %c0_i32_0 = arith.constant 0 : i32
    return %arg0, %arg1, %c0_i32 : i32, i32, i32
  }
  func.func @transform_4(%arg0: i32, %arg1: i32) -> (i32, i32, i32) {
    %c0_i32 = arith.constant 0 : i32
    %c0_i32_0 = arith.constant 0 : i32
    %c0_i32_1 = arith.constant 0 : i32
    return %arg0, %c0_i32, %c0_i32_0 : i32, i32, i32
  }
  func.func @transform_5(%arg0: i32, %arg1: i32) -> (i32, i32, i32) {
    %c0_i32 = arith.constant 0 : i32
    %c0_i32_0 = arith.constant 0 : i32
    %c0_i32_1 = arith.constant 0 : i32
    return %arg0, %c0_i32, %c0_i32_0 : i32, i32, i32
  }
  func.func @transform_6(%arg0: i32, %arg1: i32) -> (i32, i32, i32) {
    %c0_i32 = arith.constant 0 : i32
    %c0_i32_0 = arith.constant 0 : i32
    %c0_i32_1 = arith.constant 0 : i32
    return %arg0, %c0_i32, %c0_i32_0 : i32, i32, i32
  }
  func.func @transform_7(%arg0: i32, %arg1: i32) -> (i32, i32, i32) {
    %c0_i32 = arith.constant 0 : i32
    %c0_i32_0 = arith.constant 0 : i32
    %c0_i32_1 = arith.constant 0 : i32
    return %arg0, %c0_i32, %c0_i32_0 : i32, i32, i32
  }
  func.func @transform_8(%arg0: i32, %arg1: i32) -> (i32, i32) {
    %c0_i32 = arith.constant 0 : i32
    %c0_i32_0 = arith.constant 0 : i32
    %c0_i32_1 = arith.constant 0 : i32
    return %c0_i32, %c0_i32_0 : i32, i32
  }
  func.func @transform_9(%arg0: i32, %arg1: i32) -> (i32, i32, i32) {
    %c0_i32 = arith.constant 0 : i32
    %c0_i32_0 = arith.constant 0 : i32
    return %arg0, %arg1, %c0_i32 : i32, i32, i32
  }
}

module attributes {stable_mosaic.version = 11 : i64} {
  func.func @_dec_kernel(%arg0: i32, %arg1: i32, %arg2: memref<1x32x128xbf16, #tpu.memory_space<vmem>>, %arg3: memref<1x32x128xbf16, #tpu.memory_space<vmem>>, %arg4: memref<1x32x128xbf16, #tpu.memory_space<vmem>>, %arg5: memref<1x32x128xbf16, #tpu.memory_space<vmem>>, %arg6: memref<1x128x128xbf16, #tpu.memory_space<vmem>>, %arg7: memref<1x128x128xbf16, #tpu.memory_space<vmem>>, %arg8: memref<1x128x128xbf16, #tpu.memory_space<vmem>>, %arg9: memref<1x128x128xbf16, #tpu.memory_space<vmem>>, %arg10: memref<1x128xf32, #tpu.memory_space<vmem>>, %arg11: memref<1x32x256xbf16, #tpu.memory_space<vmem>>) attributes {dimension_semantics = [#tpu.dimension_semantics<parallel>, #tpu.dimension_semantics<parallel>], iteration_bounds = array<i64: 2, 1>, scalar_prefetch = 0 : i64, scratch_operands = 0 : i64, tpu.core_type = #tpu.core_type<tc>, window_params = [{transform_indices = @transform_0, window_bounds = array<i64: 1, 32, 128>}, {transform_indices = @transform_1, window_bounds = array<i64: 1, 32, 128>}, {transform_indices = @transform_2, window_bounds = array<i64: 1, 32, 128>}, {transform_indices = @transform_3, window_bounds = array<i64: 1, 32, 128>}, {transform_indices = @transform_4, window_bounds = array<i64: 1, 128, 128>}, {transform_indices = @transform_5, window_bounds = array<i64: 1, 128, 128>}, {transform_indices = @transform_6, window_bounds = array<i64: 1, 128, 128>}, {transform_indices = @transform_7, window_bounds = array<i64: 1, 128, 128>}, {pipeline_mode = #tpu.pipeline_mode<synchronous>, transform_indices = @transform_8, window_bounds = array<i64: 1, 128>}, {transform_indices = @transform_9, window_bounds = array<i64: 1, 32, 256>}]} {
    %c0 = arith.constant 0 : index
    %c0_0 = arith.constant 0 : index
    %c0_1 = arith.constant 0 : index
    %0 = vector.load %arg4[%c0, %c0_0, %c0_1] : memref<1x32x128xbf16, #tpu.memory_space<vmem>>, vector<1x32x128xbf16>
    %1 = vector.shape_cast %0 : vector<1x32x128xbf16> to vector<32x128xbf16>
    %c0_2 = arith.constant 0 : index
    %c0_3 = arith.constant 0 : index
    %c0_4 = arith.constant 0 : index
    %2 = vector.load %arg8[%c0_2, %c0_3, %c0_4] : memref<1x128x128xbf16, #tpu.memory_space<vmem>>, vector<1x128x128xbf16>
    %3 = vector.shape_cast %2 : vector<1x128x128xbf16> to vector<128x128xbf16>
    %cst = arith.constant dense<0.000000e+00> : vector<32x128xf32>
    %4 = tpu.matmul %1, %3, %cst {dimension_numbers = #tpu.dot_dimension_numbers<[1], [0], [0], [1], [0, 0, 1, 1], [], []>} : vector<32x128xbf16>, vector<128x128xbf16>, vector<32x128xf32> -> vector<32x128xf32>
    %c0_5 = arith.constant 0 : index
    %c0_6 = arith.constant 0 : index
    %c0_7 = arith.constant 0 : index
    %5 = vector.load %arg2[%c0_5, %c0_6, %c0_7] : memref<1x32x128xbf16, #tpu.memory_space<vmem>>, vector<1x32x128xbf16>
    %6 = vector.shape_cast %5 : vector<1x32x128xbf16> to vector<32x128xbf16>
    %cst_8 = arith.constant 0.000000e+00 : bf16
    %7 = vector.broadcast %cst_8 : bf16 to vector<32x128xbf16>
    %8 = arith.maximumf %6, %7 : vector<32x128xbf16>
    %c0_9 = arith.constant 0 : index
    %c0_10 = arith.constant 0 : index
    %c0_11 = arith.constant 0 : index
    %9 = vector.load %arg6[%c0_9, %c0_10, %c0_11] : memref<1x128x128xbf16, #tpu.memory_space<vmem>>, vector<1x128x128xbf16>
    %10 = vector.shape_cast %9 : vector<1x128x128xbf16> to vector<128x128xbf16>
    %cst_12 = arith.constant dense<0.000000e+00> : vector<32x128xf32>
    %11 = tpu.matmul %8, %10, %cst_12 {dimension_numbers = #tpu.dot_dimension_numbers<[1], [0], [0], [1], [0, 0, 1, 1], [], []>} : vector<32x128xbf16>, vector<128x128xbf16>, vector<32x128xf32> -> vector<32x128xf32>
    %12 = arith.addf %4, %11 : vector<32x128xf32>
    %c0_13 = arith.constant 0 : index
    %c0_14 = arith.constant 0 : index
    %13 = vector.load %arg10[%c0_13, %c0_14] : memref<1x128xf32, #tpu.memory_space<vmem>>, vector<1x128xf32>
    %14 = vector.broadcast %13 : vector<1x128xf32> to vector<32x128xf32>
    %15 = arith.addf %12, %14 : vector<32x128xf32>
    %cst_15 = arith.constant 0.000000e+00 : f32
    %16 = vector.broadcast %cst_15 : f32 to vector<32x128xf32>
    %17 = arith.maximumf %15, %16 : vector<32x128xf32>
    %18 = arith.truncf %17 : vector<32x128xf32> to vector<32x128xbf16>
    %c0_16 = arith.constant 0 : index
    %c0_17 = arith.constant 0 : index
    %c0_18 = arith.constant 0 : index
    %19 = vector.load %arg11[%c0_16, %c0_17, %c0_18] : memref<1x32x256xbf16, #tpu.memory_space<vmem>>, vector<1x32x128xbf16>
    %20 = vector.shape_cast %19 : vector<1x32x128xbf16> to vector<32x128xbf16>
    %21 = vector.shape_cast %18 : vector<32x128xbf16> to vector<1x32x128xbf16>
    tpu.vector_store %arg11[%c0_16, %c0_17, %c0_18], %21 {strides = array<i32>} : memref<1x32x256xbf16, #tpu.memory_space<vmem>>, vector<1x32x128xbf16>,
    %c0_19 = arith.constant 0 : index
    %c0_20 = arith.constant 0 : index
    %c0_21 = arith.constant 0 : index
    %22 = vector.load %arg5[%c0_19, %c0_20, %c0_21] : memref<1x32x128xbf16, #tpu.memory_space<vmem>>, vector<1x32x128xbf16>
    %23 = vector.shape_cast %22 : vector<1x32x128xbf16> to vector<32x128xbf16>
    %c0_22 = arith.constant 0 : index
    %c0_23 = arith.constant 0 : index
    %c0_24 = arith.constant 0 : index
    %24 = vector.load %arg9[%c0_22, %c0_23, %c0_24] : memref<1x128x128xbf16, #tpu.memory_space<vmem>>, vector<1x128x128xbf16>
    %25 = vector.shape_cast %24 : vector<1x128x128xbf16> to vector<128x128xbf16>
    %cst_25 = arith.constant dense<0.000000e+00> : vector<32x128xf32>
    %26 = tpu.matmul %23, %25, %cst_25 {dimension_numbers = #tpu.dot_dimension_numbers<[1], [0], [0], [1], [0, 0, 1, 1], [], []>} : vector<32x128xbf16>, vector<128x128xbf16>, vector<32x128xf32> -> vector<32x128xf32>
    %c0_26 = arith.constant 0 : index
    %c0_27 = arith.constant 0 : index
    %c0_28 = arith.constant 0 : index
    %27 = vector.load %arg3[%c0_26, %c0_27, %c0_28] : memref<1x32x128xbf16, #tpu.memory_space<vmem>>, vector<1x32x128xbf16>
    %28 = vector.shape_cast %27 : vector<1x32x128xbf16> to vector<32x128xbf16>
    %cst_29 = arith.constant 0.000000e+00 : bf16
    %29 = vector.broadcast %cst_29 : bf16 to vector<32x128xbf16>
    %30 = arith.maximumf %28, %29 : vector<32x128xbf16>
    %c0_30 = arith.constant 0 : index
    %c0_31 = arith.constant 0 : index
    %c0_32 = arith.constant 0 : index
    %31 = vector.load %arg7[%c0_30, %c0_31, %c0_32] : memref<1x128x128xbf16, #tpu.memory_space<vmem>>, vector<1x128x128xbf16>
    %32 = vector.shape_cast %31 : vector<1x128x128xbf16> to vector<128x128xbf16>
    %cst_33 = arith.constant dense<0.000000e+00> : vector<32x128xf32>
    %33 = tpu.matmul %30, %32, %cst_33 {dimension_numbers = #tpu.dot_dimension_numbers<[1], [0], [0], [1], [0, 0, 1, 1], [], []>} : vector<32x128xbf16>, vector<128x128xbf16>, vector<32x128xf32> -> vector<32x128xf32>
    %34 = arith.addf %26, %33 : vector<32x128xf32>
    %c0_34 = arith.constant 0 : index
    %c0_35 = arith.constant 0 : index
    %35 = vector.load %arg10[%c0_34, %c0_35] : memref<1x128xf32, #tpu.memory_space<vmem>>, vector<1x128xf32>
    %36 = vector.broadcast %35 : vector<1x128xf32> to vector<32x128xf32>
    %37 = arith.addf %34, %36 : vector<32x128xf32>
    %cst_36 = arith.constant 0.000000e+00 : f32
    %38 = vector.broadcast %cst_36 : f32 to vector<32x128xf32>
    %39 = arith.maximumf %37, %38 : vector<32x128xf32>
    %40 = arith.truncf %39 : vector<32x128xf32> to vector<32x128xbf16>
    %c0_37 = arith.constant 0 : index
    %c0_38 = arith.constant 0 : index
    %c128 = arith.constant 128 : index
    %41 = vector.load %arg11[%c0_37, %c0_38, %c128] : memref<1x32x256xbf16, #tpu.memory_space<vmem>>, vector<1x32x128xbf16>
    %42 = vector.shape_cast %41 : vector<1x32x128xbf16> to vector<32x128xbf16>
    %43 = vector.shape_cast %40 : vector<32x128xbf16> to vector<1x32x128xbf16>
    tpu.vector_store %arg11[%c0_37, %c0_38, %c128], %43 {strides = array<i32>} : memref<1x32x256xbf16, #tpu.memory_space<vmem>>, vector<1x32x128xbf16>,
    return
  }
  func.func @transform_0(%arg0: i32, %arg1: i32) -> (i32, i32, i32) {
    %c0_i32 = arith.constant 0 : i32
    %c0_i32_0 = arith.constant 0 : i32
    return %arg0, %arg1, %c0_i32 : i32, i32, i32
  }
  func.func @transform_1(%arg0: i32, %arg1: i32) -> (i32, i32, i32) {
    %c0_i32 = arith.constant 0 : i32
    %c0_i32_0 = arith.constant 0 : i32
    return %arg0, %arg1, %c0_i32 : i32, i32, i32
  }
  func.func @transform_2(%arg0: i32, %arg1: i32) -> (i32, i32, i32) {
    %c0_i32 = arith.constant 0 : i32
    %c0_i32_0 = arith.constant 0 : i32
    return %arg0, %arg1, %c0_i32 : i32, i32, i32
  }
  func.func @transform_3(%arg0: i32, %arg1: i32) -> (i32, i32, i32) {
    %c0_i32 = arith.constant 0 : i32
    %c0_i32_0 = arith.constant 0 : i32
    return %arg0, %arg1, %c0_i32 : i32, i32, i32
  }
  func.func @transform_4(%arg0: i32, %arg1: i32) -> (i32, i32, i32) {
    %c0_i32 = arith.constant 0 : i32
    %c0_i32_0 = arith.constant 0 : i32
    %c0_i32_1 = arith.constant 0 : i32
    return %arg0, %c0_i32, %c0_i32_0 : i32, i32, i32
  }
  func.func @transform_5(%arg0: i32, %arg1: i32) -> (i32, i32, i32) {
    %c0_i32 = arith.constant 0 : i32
    %c0_i32_0 = arith.constant 0 : i32
    %c0_i32_1 = arith.constant 0 : i32
    return %arg0, %c0_i32, %c0_i32_0 : i32, i32, i32
  }
  func.func @transform_6(%arg0: i32, %arg1: i32) -> (i32, i32, i32) {
    %c0_i32 = arith.constant 0 : i32
    %c0_i32_0 = arith.constant 0 : i32
    %c0_i32_1 = arith.constant 0 : i32
    return %arg0, %c0_i32, %c0_i32_0 : i32, i32, i32
  }
  func.func @transform_7(%arg0: i32, %arg1: i32) -> (i32, i32, i32) {
    %c0_i32 = arith.constant 0 : i32
    %c0_i32_0 = arith.constant 0 : i32
    %c0_i32_1 = arith.constant 0 : i32
    return %arg0, %c0_i32, %c0_i32_0 : i32, i32, i32
  }
  func.func @transform_8(%arg0: i32, %arg1: i32) -> (i32, i32) {
    %c0_i32 = arith.constant 0 : i32
    %c0_i32_0 = arith.constant 0 : i32
    %c0_i32_1 = arith.constant 0 : i32
    return %c0_i32, %c0_i32_0 : i32, i32
  }
  func.func @transform_9(%arg0: i32, %arg1: i32) -> (i32, i32, i32) {
    %c0_i32 = arith.constant 0 : i32
    %c0_i32_0 = arith.constant 0 : i32
    return %arg0, %arg1, %c0_i32 : i32, i32, i32
  }
}

module attributes {stable_mosaic.version = 11 : i64} {
  func.func @_dec_kernel(%arg0: i32, %arg1: i32, %arg2: memref<1x64x64xbf16, #tpu.memory_space<vmem>>, %arg3: memref<1x64x64xbf16, #tpu.memory_space<vmem>>, %arg4: memref<1x64x64xbf16, #tpu.memory_space<vmem>>, %arg5: memref<1x64x64xbf16, #tpu.memory_space<vmem>>, %arg6: memref<1x64x128xbf16, #tpu.memory_space<vmem>>, %arg7: memref<1x64x128xbf16, #tpu.memory_space<vmem>>, %arg8: memref<1x64x128xbf16, #tpu.memory_space<vmem>>, %arg9: memref<1x64x128xbf16, #tpu.memory_space<vmem>>, %arg10: memref<1x128xf32, #tpu.memory_space<vmem>>, %arg11: memref<1x64x256xbf16, #tpu.memory_space<vmem>>) attributes {dimension_semantics = [#tpu.dimension_semantics<parallel>, #tpu.dimension_semantics<parallel>], iteration_bounds = array<i64: 2, 2>, scalar_prefetch = 0 : i64, scratch_operands = 0 : i64, tpu.core_type = #tpu.core_type<tc>, window_params = [{transform_indices = @transform_0, window_bounds = array<i64: 1, 64, 64>}, {transform_indices = @transform_1, window_bounds = array<i64: 1, 64, 64>}, {transform_indices = @transform_2, window_bounds = array<i64: 1, 64, 64>}, {transform_indices = @transform_3, window_bounds = array<i64: 1, 64, 64>}, {transform_indices = @transform_4, window_bounds = array<i64: 1, 64, 128>}, {transform_indices = @transform_5, window_bounds = array<i64: 1, 64, 128>}, {transform_indices = @transform_6, window_bounds = array<i64: 1, 64, 128>}, {transform_indices = @transform_7, window_bounds = array<i64: 1, 64, 128>}, {pipeline_mode = #tpu.pipeline_mode<synchronous>, transform_indices = @transform_8, window_bounds = array<i64: 1, 128>}, {transform_indices = @transform_9, window_bounds = array<i64: 1, 64, 256>}]} {
    %c0 = arith.constant 0 : index
    %c0_0 = arith.constant 0 : index
    %c0_1 = arith.constant 0 : index
    %0 = vector.load %arg4[%c0, %c0_0, %c0_1] : memref<1x64x64xbf16, #tpu.memory_space<vmem>>, vector<1x64x64xbf16>
    %1 = vector.shape_cast %0 : vector<1x64x64xbf16> to vector<64x64xbf16>
    %c0_2 = arith.constant 0 : index
    %c0_3 = arith.constant 0 : index
    %c0_4 = arith.constant 0 : index
    %2 = vector.load %arg8[%c0_2, %c0_3, %c0_4] : memref<1x64x128xbf16, #tpu.memory_space<vmem>>, vector<1x64x128xbf16>
    %3 = vector.shape_cast %2 : vector<1x64x128xbf16> to vector<64x128xbf16>
    %cst = arith.constant dense<0.000000e+00> : vector<64x128xf32>
    %4 = tpu.matmul %1, %3, %cst {dimension_numbers = #tpu.dot_dimension_numbers<[1], [0], [0], [1], [0, 0, 1, 1], [], []>} : vector<64x64xbf16>, vector<64x128xbf16>, vector<64x128xf32> -> vector<64x128xf32>
    %c0_5 = arith.constant 0 : index
    %c0_6 = arith.constant 0 : index
    %c0_7 = arith.constant 0 : index
    %5 = vector.load %arg2[%c0_5, %c0_6, %c0_7] : memref<1x64x64xbf16, #tpu.memory_space<vmem>>, vector<1x64x64xbf16>
    %6 = vector.shape_cast %5 : vector<1x64x64xbf16> to vector<64x64xbf16>
    %cst_8 = arith.constant 0.000000e+00 : bf16
    %7 = vector.broadcast %cst_8 : bf16 to vector<64x64xbf16>
    %8 = arith.maximumf %6, %7 : vector<64x64xbf16>
    %c0_9 = arith.constant 0 : index
    %c0_10 = arith.constant 0 : index
    %c0_11 = arith.constant 0 : index
    %9 = vector.load %arg6[%c0_9, %c0_10, %c0_11] : memref<1x64x128xbf16, #tpu.memory_space<vmem>>, vector<1x64x128xbf16>
    %10 = vector.shape_cast %9 : vector<1x64x128xbf16> to vector<64x128xbf16>
    %cst_12 = arith.constant dense<0.000000e+00> : vector<64x128xf32>
    %11 = tpu.matmul %8, %10, %cst_12 {dimension_numbers = #tpu.dot_dimension_numbers<[1], [0], [0], [1], [0, 0, 1, 1], [], []>} : vector<64x64xbf16>, vector<64x128xbf16>, vector<64x128xf32> -> vector<64x128xf32>
    %12 = arith.addf %4, %11 : vector<64x128xf32>
    %c0_13 = arith.constant 0 : index
    %c0_14 = arith.constant 0 : index
    %13 = vector.load %arg10[%c0_13, %c0_14] : memref<1x128xf32, #tpu.memory_space<vmem>>, vector<1x128xf32>
    %14 = vector.broadcast %13 : vector<1x128xf32> to vector<64x128xf32>
    %15 = arith.addf %12, %14 : vector<64x128xf32>
    %cst_15 = arith.constant 0.000000e+00 : f32
    %16 = vector.broadcast %cst_15 : f32 to vector<64x128xf32>
    %17 = arith.maximumf %15, %16 : vector<64x128xf32>
    %18 = arith.truncf %17 : vector<64x128xf32> to vector<64x128xbf16>
    %c0_16 = arith.constant 0 : index
    %c0_17 = arith.constant 0 : index
    %c0_18 = arith.constant 0 : index
    %19 = vector.load %arg11[%c0_16, %c0_17, %c0_18] : memref<1x64x256xbf16, #tpu.memory_space<vmem>>, vector<1x64x128xbf16>
    %20 = vector.shape_cast %19 : vector<1x64x128xbf16> to vector<64x128xbf16>
    %21 = vector.shape_cast %18 : vector<64x128xbf16> to vector<1x64x128xbf16>
    tpu.vector_store %arg11[%c0_16, %c0_17, %c0_18], %21 {strides = array<i32>} : memref<1x64x256xbf16, #tpu.memory_space<vmem>>, vector<1x64x128xbf16>,
    %c0_19 = arith.constant 0 : index
    %c0_20 = arith.constant 0 : index
    %c0_21 = arith.constant 0 : index
    %22 = vector.load %arg5[%c0_19, %c0_20, %c0_21] : memref<1x64x64xbf16, #tpu.memory_space<vmem>>, vector<1x64x64xbf16>
    %23 = vector.shape_cast %22 : vector<1x64x64xbf16> to vector<64x64xbf16>
    %c0_22 = arith.constant 0 : index
    %c0_23 = arith.constant 0 : index
    %c0_24 = arith.constant 0 : index
    %24 = vector.load %arg9[%c0_22, %c0_23, %c0_24] : memref<1x64x128xbf16, #tpu.memory_space<vmem>>, vector<1x64x128xbf16>
    %25 = vector.shape_cast %24 : vector<1x64x128xbf16> to vector<64x128xbf16>
    %cst_25 = arith.constant dense<0.000000e+00> : vector<64x128xf32>
    %26 = tpu.matmul %23, %25, %cst_25 {dimension_numbers = #tpu.dot_dimension_numbers<[1], [0], [0], [1], [0, 0, 1, 1], [], []>} : vector<64x64xbf16>, vector<64x128xbf16>, vector<64x128xf32> -> vector<64x128xf32>
    %c0_26 = arith.constant 0 : index
    %c0_27 = arith.constant 0 : index
    %c0_28 = arith.constant 0 : index
    %27 = vector.load %arg3[%c0_26, %c0_27, %c0_28] : memref<1x64x64xbf16, #tpu.memory_space<vmem>>, vector<1x64x64xbf16>
    %28 = vector.shape_cast %27 : vector<1x64x64xbf16> to vector<64x64xbf16>
    %cst_29 = arith.constant 0.000000e+00 : bf16
    %29 = vector.broadcast %cst_29 : bf16 to vector<64x64xbf16>
    %30 = arith.maximumf %28, %29 : vector<64x64xbf16>
    %c0_30 = arith.constant 0 : index
    %c0_31 = arith.constant 0 : index
    %c0_32 = arith.constant 0 : index
    %31 = vector.load %arg7[%c0_30, %c0_31, %c0_32] : memref<1x64x128xbf16, #tpu.memory_space<vmem>>, vector<1x64x128xbf16>
    %32 = vector.shape_cast %31 : vector<1x64x128xbf16> to vector<64x128xbf16>
    %cst_33 = arith.constant dense<0.000000e+00> : vector<64x128xf32>
    %33 = tpu.matmul %30, %32, %cst_33 {dimension_numbers = #tpu.dot_dimension_numbers<[1], [0], [0], [1], [0, 0, 1, 1], [], []>} : vector<64x64xbf16>, vector<64x128xbf16>, vector<64x128xf32> -> vector<64x128xf32>
    %34 = arith.addf %26, %33 : vector<64x128xf32>
    %c0_34 = arith.constant 0 : index
    %c0_35 = arith.constant 0 : index
    %35 = vector.load %arg10[%c0_34, %c0_35] : memref<1x128xf32, #tpu.memory_space<vmem>>, vector<1x128xf32>
    %36 = vector.broadcast %35 : vector<1x128xf32> to vector<64x128xf32>
    %37 = arith.addf %34, %36 : vector<64x128xf32>
    %cst_36 = arith.constant 0.000000e+00 : f32
    %38 = vector.broadcast %cst_36 : f32 to vector<64x128xf32>
    %39 = arith.maximumf %37, %38 : vector<64x128xf32>
    %40 = arith.truncf %39 : vector<64x128xf32> to vector<64x128xbf16>
    %c0_37 = arith.constant 0 : index
    %c0_38 = arith.constant 0 : index
    %c128 = arith.constant 128 : index
    %41 = vector.load %arg11[%c0_37, %c0_38, %c128] : memref<1x64x256xbf16, #tpu.memory_space<vmem>>, vector<1x64x128xbf16>
    %42 = vector.shape_cast %41 : vector<1x64x128xbf16> to vector<64x128xbf16>
    %43 = vector.shape_cast %40 : vector<64x128xbf16> to vector<1x64x128xbf16>
    tpu.vector_store %arg11[%c0_37, %c0_38, %c128], %43 {strides = array<i32>} : memref<1x64x256xbf16, #tpu.memory_space<vmem>>, vector<1x64x128xbf16>,
    return
  }
  func.func @transform_0(%arg0: i32, %arg1: i32) -> (i32, i32, i32) {
    %c0_i32 = arith.constant 0 : i32
    %c0_i32_0 = arith.constant 0 : i32
    return %arg0, %arg1, %c0_i32 : i32, i32, i32
  }
  func.func @transform_1(%arg0: i32, %arg1: i32) -> (i32, i32, i32) {
    %c0_i32 = arith.constant 0 : i32
    %c0_i32_0 = arith.constant 0 : i32
    return %arg0, %arg1, %c0_i32 : i32, i32, i32
  }
  func.func @transform_2(%arg0: i32, %arg1: i32) -> (i32, i32, i32) {
    %c0_i32 = arith.constant 0 : i32
    %c0_i32_0 = arith.constant 0 : i32
    return %arg0, %arg1, %c0_i32 : i32, i32, i32
  }
  func.func @transform_3(%arg0: i32, %arg1: i32) -> (i32, i32, i32) {
    %c0_i32 = arith.constant 0 : i32
    %c0_i32_0 = arith.constant 0 : i32
    return %arg0, %arg1, %c0_i32 : i32, i32, i32
  }
  func.func @transform_4(%arg0: i32, %arg1: i32) -> (i32, i32, i32) {
    %c0_i32 = arith.constant 0 : i32
    %c0_i32_0 = arith.constant 0 : i32
    %c0_i32_1 = arith.constant 0 : i32
    return %arg0, %c0_i32, %c0_i32_0 : i32, i32, i32
  }
  func.func @transform_5(%arg0: i32, %arg1: i32) -> (i32, i32, i32) {
    %c0_i32 = arith.constant 0 : i32
    %c0_i32_0 = arith.constant 0 : i32
    %c0_i32_1 = arith.constant 0 : i32
    return %arg0, %c0_i32, %c0_i32_0 : i32, i32, i32
  }
  func.func @transform_6(%arg0: i32, %arg1: i32) -> (i32, i32, i32) {
    %c0_i32 = arith.constant 0 : i32
    %c0_i32_0 = arith.constant 0 : i32
    %c0_i32_1 = arith.constant 0 : i32
    return %arg0, %c0_i32, %c0_i32_0 : i32, i32, i32
  }
  func.func @transform_7(%arg0: i32, %arg1: i32) -> (i32, i32, i32) {
    %c0_i32 = arith.constant 0 : i32
    %c0_i32_0 = arith.constant 0 : i32
    %c0_i32_1 = arith.constant 0 : i32
    return %arg0, %c0_i32, %c0_i32_0 : i32, i32, i32
  }
  func.func @transform_8(%arg0: i32, %arg1: i32) -> (i32, i32) {
    %c0_i32 = arith.constant 0 : i32
    %c0_i32_0 = arith.constant 0 : i32
    %c0_i32_1 = arith.constant 0 : i32
    return %c0_i32, %c0_i32_0 : i32, i32
  }
  func.func @transform_9(%arg0: i32, %arg1: i32) -> (i32, i32, i32) {
    %c0_i32 = arith.constant 0 : i32
    %c0_i32_0 = arith.constant 0 : i32
    return %arg0, %arg1, %c0_i32 : i32, i32, i32
  }
}

module attributes {stable_mosaic.version = 11 : i64} {
  func.func @_dec_kernel(%arg0: i32, %arg1: i32, %arg2: memref<1x256x32xbf16, #tpu.memory_space<vmem>>, %arg3: memref<1x256x32xbf16, #tpu.memory_space<vmem>>, %arg4: memref<1x256x32xbf16, #tpu.memory_space<vmem>>, %arg5: memref<1x256x32xbf16, #tpu.memory_space<vmem>>, %arg6: memref<1x32x128xbf16, #tpu.memory_space<vmem>>, %arg7: memref<1x32x128xbf16, #tpu.memory_space<vmem>>, %arg8: memref<1x32x128xbf16, #tpu.memory_space<vmem>>, %arg9: memref<1x32x128xbf16, #tpu.memory_space<vmem>>, %arg10: memref<1x128xf32, #tpu.memory_space<vmem>>, %arg11: memref<1x256x256xbf16, #tpu.memory_space<vmem>>) attributes {dimension_semantics = [#tpu.dimension_semantics<parallel>, #tpu.dimension_semantics<parallel>], iteration_bounds = array<i64: 2, 2>, scalar_prefetch = 0 : i64, scratch_operands = 0 : i64, tpu.core_type = #tpu.core_type<tc>, window_params = [{transform_indices = @transform_0, window_bounds = array<i64: 1, 256, 32>}, {transform_indices = @transform_1, window_bounds = array<i64: 1, 256, 32>}, {transform_indices = @transform_2, window_bounds = array<i64: 1, 256, 32>}, {transform_indices = @transform_3, window_bounds = array<i64: 1, 256, 32>}, {transform_indices = @transform_4, window_bounds = array<i64: 1, 32, 128>}, {transform_indices = @transform_5, window_bounds = array<i64: 1, 32, 128>}, {transform_indices = @transform_6, window_bounds = array<i64: 1, 32, 128>}, {transform_indices = @transform_7, window_bounds = array<i64: 1, 32, 128>}, {pipeline_mode = #tpu.pipeline_mode<synchronous>, transform_indices = @transform_8, window_bounds = array<i64: 1, 128>}, {transform_indices = @transform_9, window_bounds = array<i64: 1, 256, 256>}]} {
    %c0 = arith.constant 0 : index
    %c0_0 = arith.constant 0 : index
    %c0_1 = arith.constant 0 : index
    %0 = vector.load %arg4[%c0, %c0_0, %c0_1] : memref<1x256x32xbf16, #tpu.memory_space<vmem>>, vector<1x256x32xbf16>
    %1 = vector.shape_cast %0 : vector<1x256x32xbf16> to vector<256x32xbf16>
    %c0_2 = arith.constant 0 : index
    %c0_3 = arith.constant 0 : index
    %c0_4 = arith.constant 0 : index
    %2 = vector.load %arg8[%c0_2, %c0_3, %c0_4] : memref<1x32x128xbf16, #tpu.memory_space<vmem>>, vector<1x32x128xbf16>
    %3 = vector.shape_cast %2 : vector<1x32x128xbf16> to vector<32x128xbf16>
    %cst = arith.constant dense<0.000000e+00> : vector<256x128xf32>
    %4 = tpu.matmul %1, %3, %cst {dimension_numbers = #tpu.dot_dimension_numbers<[1], [0], [0], [1], [0, 0, 1, 1], [], []>} : vector<256x32xbf16>, vector<32x128xbf16>, vector<256x128xf32> -> vector<256x128xf32>
    %c0_5 = arith.constant 0 : index
    %c0_6 = arith.constant 0 : index
    %c0_7 = arith.constant 0 : index
    %5 = vector.load %arg2[%c0_5, %c0_6, %c0_7] : memref<1x256x32xbf16, #tpu.memory_space<vmem>>, vector<1x256x32xbf16>
    %6 = vector.shape_cast %5 : vector<1x256x32xbf16> to vector<256x32xbf16>
    %cst_8 = arith.constant 0.000000e+00 : bf16
    %7 = vector.broadcast %cst_8 : bf16 to vector<256x32xbf16>
    %8 = arith.maximumf %6, %7 : vector<256x32xbf16>
    %c0_9 = arith.constant 0 : index
    %c0_10 = arith.constant 0 : index
    %c0_11 = arith.constant 0 : index
    %9 = vector.load %arg6[%c0_9, %c0_10, %c0_11] : memref<1x32x128xbf16, #tpu.memory_space<vmem>>, vector<1x32x128xbf16>
    %10 = vector.shape_cast %9 : vector<1x32x128xbf16> to vector<32x128xbf16>
    %cst_12 = arith.constant dense<0.000000e+00> : vector<256x128xf32>
    %11 = tpu.matmul %8, %10, %cst_12 {dimension_numbers = #tpu.dot_dimension_numbers<[1], [0], [0], [1], [0, 0, 1, 1], [], []>} : vector<256x32xbf16>, vector<32x128xbf16>, vector<256x128xf32> -> vector<256x128xf32>
    %12 = arith.addf %4, %11 : vector<256x128xf32>
    %c0_13 = arith.constant 0 : index
    %c0_14 = arith.constant 0 : index
    %13 = vector.load %arg10[%c0_13, %c0_14] : memref<1x128xf32, #tpu.memory_space<vmem>>, vector<1x128xf32>
    %14 = vector.broadcast %13 : vector<1x128xf32> to vector<256x128xf32>
    %15 = arith.addf %12, %14 : vector<256x128xf32>
    %16 = arith.truncf %15 : vector<256x128xf32> to vector<256x128xbf16>
    %c0_15 = arith.constant 0 : index
    %c0_16 = arith.constant 0 : index
    %c0_17 = arith.constant 0 : index
    %17 = vector.load %arg11[%c0_15, %c0_16, %c0_17] : memref<1x256x256xbf16, #tpu.memory_space<vmem>>, vector<1x256x128xbf16>
    %18 = vector.shape_cast %17 : vector<1x256x128xbf16> to vector<256x128xbf16>
    %19 = vector.shape_cast %16 : vector<256x128xbf16> to vector<1x256x128xbf16>
    tpu.vector_store %arg11[%c0_15, %c0_16, %c0_17], %19 {strides = array<i32>} : memref<1x256x256xbf16, #tpu.memory_space<vmem>>, vector<1x256x128xbf16>,
    %c0_18 = arith.constant 0 : index
    %c0_19 = arith.constant 0 : index
    %c0_20 = arith.constant 0 : index
    %20 = vector.load %arg5[%c0_18, %c0_19, %c0_20] : memref<1x256x32xbf16, #tpu.memory_space<vmem>>, vector<1x256x32xbf16>
    %21 = vector.shape_cast %20 : vector<1x256x32xbf16> to vector<256x32xbf16>
    %c0_21 = arith.constant 0 : index
    %c0_22 = arith.constant 0 : index
    %c0_23 = arith.constant 0 : index
    %22 = vector.load %arg9[%c0_21, %c0_22, %c0_23] : memref<1x32x128xbf16, #tpu.memory_space<vmem>>, vector<1x32x128xbf16>
    %23 = vector.shape_cast %22 : vector<1x32x128xbf16> to vector<32x128xbf16>
    %cst_24 = arith.constant dense<0.000000e+00> : vector<256x128xf32>
    %24 = tpu.matmul %21, %23, %cst_24 {dimension_numbers = #tpu.dot_dimension_numbers<[1], [0], [0], [1], [0, 0, 1, 1], [], []>} : vector<256x32xbf16>, vector<32x128xbf16>, vector<256x128xf32> -> vector<256x128xf32>
    %c0_25 = arith.constant 0 : index
    %c0_26 = arith.constant 0 : index
    %c0_27 = arith.constant 0 : index
    %25 = vector.load %arg3[%c0_25, %c0_26, %c0_27] : memref<1x256x32xbf16, #tpu.memory_space<vmem>>, vector<1x256x32xbf16>
    %26 = vector.shape_cast %25 : vector<1x256x32xbf16> to vector<256x32xbf16>
    %cst_28 = arith.constant 0.000000e+00 : bf16
    %27 = vector.broadcast %cst_28 : bf16 to vector<256x32xbf16>
    %28 = arith.maximumf %26, %27 : vector<256x32xbf16>
    %c0_29 = arith.constant 0 : index
    %c0_30 = arith.constant 0 : index
    %c0_31 = arith.constant 0 : index
    %29 = vector.load %arg7[%c0_29, %c0_30, %c0_31] : memref<1x32x128xbf16, #tpu.memory_space<vmem>>, vector<1x32x128xbf16>
    %30 = vector.shape_cast %29 : vector<1x32x128xbf16> to vector<32x128xbf16>
    %cst_32 = arith.constant dense<0.000000e+00> : vector<256x128xf32>
    %31 = tpu.matmul %28, %30, %cst_32 {dimension_numbers = #tpu.dot_dimension_numbers<[1], [0], [0], [1], [0, 0, 1, 1], [], []>} : vector<256x32xbf16>, vector<32x128xbf16>, vector<256x128xf32> -> vector<256x128xf32>
    %32 = arith.addf %24, %31 : vector<256x128xf32>
    %c0_33 = arith.constant 0 : index
    %c0_34 = arith.constant 0 : index
    %33 = vector.load %arg10[%c0_33, %c0_34] : memref<1x128xf32, #tpu.memory_space<vmem>>, vector<1x128xf32>
    %34 = vector.broadcast %33 : vector<1x128xf32> to vector<256x128xf32>
    %35 = arith.addf %32, %34 : vector<256x128xf32>
    %36 = arith.truncf %35 : vector<256x128xf32> to vector<256x128xbf16>
    %c0_35 = arith.constant 0 : index
    %c0_36 = arith.constant 0 : index
    %c128 = arith.constant 128 : index
    %37 = vector.load %arg11[%c0_35, %c0_36, %c128] : memref<1x256x256xbf16, #tpu.memory_space<vmem>>, vector<1x256x128xbf16>
    %38 = vector.shape_cast %37 : vector<1x256x128xbf16> to vector<256x128xbf16>
    %39 = vector.shape_cast %36 : vector<256x128xbf16> to vector<1x256x128xbf16>
    tpu.vector_store %arg11[%c0_35, %c0_36, %c128], %39 {strides = array<i32>} : memref<1x256x256xbf16, #tpu.memory_space<vmem>>, vector<1x256x128xbf16>,
    return
  }
  func.func @transform_0(%arg0: i32, %arg1: i32) -> (i32, i32, i32) {
    %c0_i32 = arith.constant 0 : i32
    %c0_i32_0 = arith.constant 0 : i32
    return %arg0, %arg1, %c0_i32 : i32, i32, i32
  }
  func.func @transform_1(%arg0: i32, %arg1: i32) -> (i32, i32, i32) {
    %c0_i32 = arith.constant 0 : i32
    %c0_i32_0 = arith.constant 0 : i32
    return %arg0, %arg1, %c0_i32 : i32, i32, i32
  }
  func.func @transform_2(%arg0: i32, %arg1: i32) -> (i32, i32, i32) {
    %c0_i32 = arith.constant 0 : i32
    %c0_i32_0 = arith.constant 0 : i32
    return %arg0, %arg1, %c0_i32 : i32, i32, i32
  }
  func.func @transform_3(%arg0: i32, %arg1: i32) -> (i32, i32, i32) {
    %c0_i32 = arith.constant 0 : i32
    %c0_i32_0 = arith.constant 0 : i32
    return %arg0, %arg1, %c0_i32 : i32, i32, i32
  }
  func.func @transform_4(%arg0: i32, %arg1: i32) -> (i32, i32, i32) {
    %c0_i32 = arith.constant 0 : i32
    %c0_i32_0 = arith.constant 0 : i32
    %c0_i32_1 = arith.constant 0 : i32
    return %arg0, %c0_i32, %c0_i32_0 : i32, i32, i32
  }
  func.func @transform_5(%arg0: i32, %arg1: i32) -> (i32, i32, i32) {
    %c0_i32 = arith.constant 0 : i32
    %c0_i32_0 = arith.constant 0 : i32
    %c0_i32_1 = arith.constant 0 : i32
    return %arg0, %c0_i32, %c0_i32_0 : i32, i32, i32
  }
  func.func @transform_6(%arg0: i32, %arg1: i32) -> (i32, i32, i32) {
    %c0_i32 = arith.constant 0 : i32
    %c0_i32_0 = arith.constant 0 : i32
    %c0_i32_1 = arith.constant 0 : i32
    return %arg0, %c0_i32, %c0_i32_0 : i32, i32, i32
  }
  func.func @transform_7(%arg0: i32, %arg1: i32) -> (i32, i32, i32) {
    %c0_i32 = arith.constant 0 : i32
    %c0_i32_0 = arith.constant 0 : i32
    %c0_i32_1 = arith.constant 0 : i32
    return %arg0, %c0_i32, %c0_i32_0 : i32, i32, i32
  }
  func.func @transform_8(%arg0: i32, %arg1: i32) -> (i32, i32) {
    %c0_i32 = arith.constant 0 : i32
    %c0_i32_0 = arith.constant 0 : i32
    %c0_i32_1 = arith.constant 0 : i32
    return %c0_i32, %c0_i32_0 : i32, i32
  }
  func.func @transform_9(%arg0: i32, %arg1: i32) -> (i32, i32, i32) {
    %c0_i32 = arith.constant 0 : i32
    %c0_i32_0 = arith.constant 0 : i32
    return %arg0, %arg1, %c0_i32 : i32, i32, i32
  }
}

</mosaic_0001>

<bundles_post_ra>
// kernel: unet_forward.10
= control target key start
LH: loop header
LB: loop body
LE: loop exit
PB: predicated region body
PF: predicated region fallthrough
CT: control target
= control target key end

     0   :  { %s838_s12 = smov 0   ;;  %s1008_s0 = inlined_call_operand.vmem [shape: bf16[512,48], index: 0, kind: input, shape index: {}]   ;;  %s1009_s1 = inlined_call_operand.vmem [shape: bf16[48,128], index: 1, kind: input, shape index: {}]   ;;  %s1010_s2 = inlined_call_operand.vmem [shape: f32[1,128], index: 2, kind: input, shape index: {}]   ;;  %s1011_s3 = inlined_call_operand.vmem [shape: bf16[512,8], index: 3, kind: output, shape index: {}]  }
   0x1 LB: > { %s670_s13 = sadd.s32 4294967295, %s816_s12   ;;  %p674_p0 = scmp.ge.s32.totalorder %s816_s12, 1  ;;  %s816_s12 = sphi %s838_s12, %s13_s12  }
   0x2   : > { %p138_p1 = scmp.lt.s32.totalorder %s816_s12, 3 }
   0x4   : > { %p139_p2 = pnand %p674_p0, %p138_p1 }
   0x5   : > { %s675_s16 = sshll.u32 (!%p139_p2), %s670_s13, 5 }
   0x6   : > { %142 = sbr.rel (%p139_p2) target bundleno = 221 (0xdd), region = 32  ;;  %p163_p3 = scmp.lt.s32.totalorder (!%p139_p2), %s675_s16, 63 }
   0xb   : > { %v791_v0 = vld [vmem:[%s1009_s1 + $0x10] sm:$0xff]  ;;  %v790_v1 = vld [vmem:[%s1009_s1 + $0x8] sm:$0xff]  ;;  %s1013_s16 = smov (!%p163_p3, %s675_s16), 63  ;;  %v789_v2 = vld [vmem:[%s1009_s1] sm:$0xff]  ;;  %vm315_vm0 = vcmask 392192   ;;  %vm581_vm3 = vcmask 60416  }
   0xc   : > { %369 = vmatpush.bf16.msra.mxu0 %v791_v0  ;;  %792 = vmatpush.bf16.msra.mxu1 %v791_v0  ;;  %s676_s19 = sshll.u32 %s1013_s16, 2  ;;  %v900_v19 = vld [vmem:[%s1010_s2] ss:$0 sm:$0xff] }
   0xd   : > { %793 = vmatpush.bf16.msra.mxu2 %v791_v0  ;;  %794 = vmatpush.bf16.msra.mxu3 %v791_v0  ;;  %s863_s24 = scalar_lea.vmem %s1008_s0, %s676_s19  ;;  %s909_s29 = scalar_lea.vmem %s1011_s3, %s676_s19 }
   0xe   : > { %v773_v3 = vld [vmem:[%s863_s24] sm:$0xff]  ;;  %v774_v7 = vld [vmem:[%s863_s24 + $0x8] sm:$0xff]  ;;  %v775_v11 = vld [vmem:[%s863_s24 + $0x10] sm:$0xff] }
   0xf   : > { %v777_v4 = vld [vmem:[%s863_s24 + $0x20] sm:$0xff]  ;;  %v778_v8 = vld [vmem:[%s863_s24 + $0x28] sm:$0xff]  ;;  %v779_v12 = vld [vmem:[%s863_s24 + $0x30] sm:$0xff] }
  0x10   : > { %370 = vmatpush.bf16.msra.mxu0 %v790_v1  ;;  %795 = vmatpush.bf16.msra.mxu1 %v790_v1  ;;  %v781_v5 = vld [vmem:[%s863_s24 + $0x40] sm:$0xff]  ;;  %v782_v9 = vld [vmem:[%s863_s24 + $0x48] sm:$0xff]  ;;  %v783_v13 = vld [vmem:[%s863_s24 + $0x50] sm:$0xff] }
  0x11   : > { %796 = vmatpush.bf16.msra.mxu2 %v790_v1  ;;  %797 = vmatpush.bf16.msra.mxu3 %v790_v1  ;;  %v785_v6 = vld [vmem:[%s863_s24 + $0x60] sm:$0xff]  ;;  %v786_v10 = vld [vmem:[%s863_s24 + $0x68] sm:$0xff]  ;;  %v787_v14 = vld [vmem:[%s863_s24 + $0x70] sm:$0xff] }
  0x12   : > { %v776_v15 = vld [vmem:[%s863_s24 + $0x18] sm:$0xff] }
  0x13   : > { %v780_v16 = vld [vmem:[%s863_s24 + $0x38] sm:$0xff] }
  0x14   : > { %371 = vmatpush.bf16.msra.mxu0 %v789_v2  ;;  %798 = vmatpush.bf16.msra.mxu1 %v789_v2  ;;  %v784_v17 = vld [vmem:[%s863_s24 + $0x58] sm:$0xff] }
  0x15   : > { %799 = vmatpush.bf16.msra.mxu2 %v789_v2  ;;  %800 = vmatpush.bf16.msra.mxu3 %v789_v2  ;;  %v788_v18 = vld [vmem:[%s863_s24 + $0x78] sm:$0xff] }
  0x17   : > { %755 = vmatmul.msk.bf16.vlgmr.msra.gmra.mxu0 %vm315_vm0, %v773_v3  ;;  %759 = vmatmul.msk.bf16.vlgmr.msra.gmra.mxu1 %vm315_vm0, %v777_v4 }
  0x18   : > { %763 = vmatmul.msk.bf16.vlgmr.msra.gmra.mxu2 %vm315_vm0, %v781_v5  ;;  %767 = vmatmul.msk.bf16.vlgmr.msra.gmra.mxu3 %vm315_vm0, %v785_v6 }
  0x27   : > { %756 = vmatmul.msk.bf16.gmra.mxu0 %vm315_vm0, %v774_v7  ;;  %760 = vmatmul.msk.bf16.gmra.mxu1 %vm315_vm0, %v778_v8 }
  0x28   : > { %764 = vmatmul.msk.bf16.gmra.mxu2 %vm315_vm0, %v782_v9  ;;  %768 = vmatmul.msk.bf16.gmra.mxu3 %vm315_vm0, %v786_v10 }
  0x37   : > { %757 = vmatmul.msk.bf16.gmra.mxu0 %vm315_vm0, %v775_v11  ;;  %761 = vmatmul.msk.bf16.gmra.mxu1 %vm315_vm0, %v779_v12 }
  0x38   : > { %765 = vmatmul.msk.bf16.gmra.mxu2 %vm315_vm0, %v783_v13  ;;  %769 = vmatmul.msk.bf16.gmra.mxu3 %vm315_vm0, %v787_v14 }
  0x47   : > { %758 = vmatmul.msk.bf16.gmra.mxu0 %vm315_vm0, %v776_v15  ;;  %762 = vmatmul.msk.bf16.gmra.mxu1 %vm315_vm0, %v780_v16 }
  0x48   : > { %766 = vmatmul.msk.bf16.gmra.mxu2 %vm315_vm0, %v784_v17  ;;  %770 = vmatmul.msk.bf16.gmra.mxu3 %vm315_vm0, %v788_v18 }
  0x94   : > { %v373_v20 = vpop.f32.mrf.mxu0  ;;  %v393_v21 = vpop.f32.mrf.mxu1 }
  0x95   : > { %v374_v22 = vadd.f32 %v900_v19, %v373_v20  ;;  %v394_v23 = vadd.f32 %v900_v19, %v393_v21 }
  0x97   : > { %vm453_vm1 = vcmp.gt.f32.partialorder %v374_v22, 0.0  ;;  %v485_v24 = vmul.f32 0.2, %v374_v22  ;;  %vm461_vm2 = vcmp.gt.f32.partialorder %v394_v23, 0.0  ;;  %v493_v25 = vmul.f32 0.2, %v394_v23 }
  0x99   : > { %v517_v26 = vsel %vm453_vm1, %v374_v22, %v485_v24  ;;  %v525_v27 = vsel %vm461_vm2, %v394_v23, %v493_v25 }
  0x9a   : > { %v549_v28 = vpack.c.bf16 %v517_v26, %v517_v26  ;;  %v557_v29 = vpack.c.bf16 %v525_v27, %v525_v27 }
  0x9b   : > { %v413_v30 = vpop.f32.mrf.mxu2  ;;  %v433_v31 = vpop.f32.mrf.mxu3 }
  0x9c   : > { %582 = vst.msk [vmem:[%s909_s29] sm:$0xf] %vm581_vm3, %v549_v28  ;;  %v414_v32 = vadd.f32 %v900_v19, %v413_v30  ;;  %v434_v33 = vadd.f32 %v900_v19, %v433_v31  ;;  %v375_v34 = vpop.f32.mrf.mxu0  ;;  %v395_v35 = vpop.f32.mrf.mxu1 }
  0x9d   : > { %590 = vst.msk [vmem:[%s909_s29 + $0x20] sm:$0xf] %vm581_vm3, %v557_v29  ;;  %v376_v36 = vadd.f32 %v900_v19, %v375_v34  ;;  %v396_v37 = vadd.f32 %v900_v19, %v395_v35 }
  0x9e   : > { %vm469_vm4 = vcmp.gt.f32.partialorder %v414_v32, 0.0  ;;  %v501_v38 = vmul.f32 0.2, %v414_v32  ;;  %vm477_vm5 = vcmp.gt.f32.partialorder %v434_v33, 0.0  ;;  %v509_v39 = vmul.f32 0.2, %v434_v33 }
  0x9f   : > { %vm454_vm6 = vcmp.gt.f32.partialorder %v376_v36, 0.0  ;;  %v486_v40 = vmul.f32 0.2, %v376_v36  ;;  %vm462_vm7 = vcmp.gt.f32.partialorder %v396_v37, 0.0  ;;  %v494_v41 = vmul.f32 0.2, %v396_v37 }
  0xa0   : > { %v533_v42 = vsel %vm469_vm4, %v414_v32, %v501_v38  ;;  %v541_v43 = vsel %vm477_vm5, %v434_v33, %v509_v39 }
  0xa1   : > { %v565_v44 = vpack.c.bf16 %v533_v42, %v533_v42  ;;  %v573_v45 = vpack.c.bf16 %v541_v43, %v541_v43  ;;  %v518_v46 = vsel %vm454_vm6, %v376_v36, %v486_v40  ;;  %v526_v47 = vsel %vm462_vm7, %v396_v37, %v494_v41 }
  0xa2   : > { %v550_v48 = vpack.c.bf16 %v518_v46, %v518_v46  ;;  %v558_v49 = vpack.c.bf16 %v526_v47, %v526_v47 }
  0xa3   : > { %598 = vst.msk [vmem:[%s909_s29 + $0x40] sm:$0xf] %vm581_vm3, %v565_v44  ;;  %v415_v50 = vpop.f32.mrf.mxu2  ;;  %v435_v51 = vpop.f32.mrf.mxu3 }
  0xa4   : > { %606 = vst.msk [vmem:[%s909_s29 + $0x60] sm:$0xf] %vm581_vm3, %v573_v45  ;;  %v416_v52 = vadd.f32 %v900_v19, %v415_v50  ;;  %v436_v53 = vadd.f32 %v900_v19, %v435_v51  ;;  %v378_v54 = vpop.f32.mrf.mxu0  ;;  %v398_v55 = vpop.f32.mrf.mxu1 }
  0xa5   : > { %583 = vst.msk [vmem:[%s909_s29 + $0x4] sm:$0xf] %vm581_vm3, %v550_v48  ;;  %v379_v56 = vadd.f32 %v900_v19, %v378_v54  ;;  %v399_v57 = vadd.f32 %v900_v19, %v398_v55 }
  0xa6   : > { %591 = vst.msk [vmem:[%s909_s29 + $0x24] sm:$0xf] %vm581_vm3, %v558_v49  ;;  %vm470_vm8 = vcmp.gt.f32.partialorder %v416_v52, 0.0  ;;  %v502_v58 = vmul.f32 0.2, %v416_v52  ;;  %vm478_vm9 = vcmp.gt.f32.partialorder %v436_v53, 0.0 }
  0xa7   : > { %v510_v59 = vmul.f32 0.2, %v436_v53  ;;  %vm455_vm10 = vcmp.gt.f32.partialorder %v379_v56, 0.0  ;;  %v487_v60 = vmul.f32 0.2, %v379_v56  ;;  %vm463_vm11 = vcmp.gt.f32.partialorder %v399_v57, 0.0 }
  0xa8   : > { %v534_v61 = vsel %vm470_vm8, %v416_v52, %v502_v58  ;;  %v495_v62 = vmul.f32 0.2, %v399_v57 }
  0xa9   : > { %v566_v63 = vpack.c.bf16 %v534_v61, %v534_v61  ;;  %v542_v0 = vsel %vm478_vm9, %v436_v53, %v510_v59  ;;  %v519_v1 = vsel %vm455_vm10, %v379_v56, %v487_v60 }
  0xaa   : > { %v574_v2 = vpack.c.bf16 %v542_v0, %v542_v0  ;;  %v551_v3 = vpack.c.bf16 %v519_v1, %v519_v1  ;;  %v527_v4 = vsel %vm463_vm11, %v399_v57, %v495_v62 }
  0xab   : > { %599 = vst.msk [vmem:[%s909_s29 + $0x44] sm:$0xf] %vm581_vm3, %v566_v63  ;;  %v559_v5 = vpack.c.bf16 %v527_v4, %v527_v4  ;;  %v418_v6 = vpop.f32.mrf.mxu2  ;;  %v438_v7 = vpop.f32.mrf.mxu3 }
  0xac   : > { %607 = vst.msk [vmem:[%s909_s29 + $0x64] sm:$0xf] %vm581_vm3, %v574_v2  ;;  %v419_v8 = vadd.f32 %v900_v19, %v418_v6  ;;  %v439_v9 = vadd.f32 %v900_v19, %v438_v7  ;;  %v380_v10 = vpop.f32.mrf.mxu0  ;;  %v400_v11 = vpop.f32.mrf.mxu1 }
  0xad   : > { %584 = vst.msk [vmem:[%s909_s29 + $0x8] sm:$0xf] %vm581_vm3, %v551_v3  ;;  %v381_v12 = vadd.f32 %v900_v19, %v380_v10  ;;  %v401_v13 = vadd.f32 %v900_v19, %v400_v11 }
  0xae   : > { %592 = vst.msk [vmem:[%s909_s29 + $0x28] sm:$0xf] %vm581_vm3, %v559_v5  ;;  %vm471_vm12 = vcmp.gt.f32.partialorder %v419_v8, 0.0  ;;  %v503_v14 = vmul.f32 0.2, %v419_v8  ;;  %vm479_vm13 = vcmp.gt.f32.partialorder %v439_v9, 0.0 }
  0xaf   : > { %v511_v15 = vmul.f32 0.2, %v439_v9  ;;  %vm456_vm14 = vcmp.gt.f32.partialorder %v381_v12, 0.0  ;;  %v488_v16 = vmul.f32 0.2, %v381_v12  ;;  %vm464_vm15 = vcmp.gt.f32.partialorder %v401_v13, 0.0 }
  0xb0   : > { %v535_v17 = vsel %vm471_vm12, %v419_v8, %v503_v14  ;;  %v496_v18 = vmul.f32 0.2, %v401_v13 }
  0xb1   : > { %v567_v20 = vpack.c.bf16 %v535_v17, %v535_v17  ;;  %v543_v21 = vsel %vm479_vm13, %v439_v9, %v511_v15  ;;  %v520_v22 = vsel %vm456_vm14, %v381_v12, %v488_v16 }
  0xb2   : > { %v575_v23 = vpack.c.bf16 %v543_v21, %v543_v21  ;;  %v552_v24 = vpack.c.bf16 %v520_v22, %v520_v22  ;;  %v528_v25 = vsel %vm464_vm15, %v401_v13, %v496_v18 }
  0xb3   : > { %600 = vst.msk [vmem:[%s909_s29 + $0x48] sm:$0xf] %vm581_vm3, %v567_v20  ;;  %v560_v26 = vpack.c.bf16 %v528_v25, %v528_v25  ;;  %v420_v27 = vpop.f32.mrf.mxu2  ;;  %v440_v28 = vpop.f32.mrf.mxu3 }
  0xb4   : > { %608 = vst.msk [vmem:[%s909_s29 + $0x68] sm:$0xf] %vm581_vm3, %v575_v23  ;;  %v421_v29 = vadd.f32 %v900_v19, %v420_v27  ;;  %v441_v30 = vadd.f32 %v900_v19, %v440_v28  ;;  %v383_v31 = vpop.f32.mrf.mxu0  ;;  %v403_v32 = vpop.f32.mrf.mxu1 }
  0xb5   : > { %585 = vst.msk [vmem:[%s909_s29 + $0xc] sm:$0xf] %vm581_vm3, %v552_v24  ;;  %v384_v33 = vadd.f32 %v900_v19, %v383_v31  ;;  %v404_v34 = vadd.f32 %v900_v19, %v403_v32 }
  0xb6   : > { %593 = vst.msk [vmem:[%s909_s29 + $0x2c] sm:$0xf] %vm581_vm3, %v560_v26  ;;  %vm472_vm0 = vcmp.gt.f32.partialorder %v421_v29, 0.0  ;;  %v504_v35 = vmul.f32 0.2, %v421_v29  ;;  %vm480_vm1 = vcmp.gt.f32.partialorder %v441_v30, 0.0 }
  0xb7   : > { %v512_v36 = vmul.f32 0.2, %v441_v30  ;;  %vm457_vm2 = vcmp.gt.f32.partialorder %v384_v33, 0.0  ;;  %v489_v37 = vmul.f32 0.2, %v384_v33  ;;  %vm465_vm4 = vcmp.gt.f32.partialorder %v404_v34, 0.0 }
  0xb8   : > { %v536_v38 = vsel %vm472_vm0, %v421_v29, %v504_v35  ;;  %v497_v39 = vmul.f32 0.2, %v404_v34 }
  0xb9   : > { %v568_v40 = vpack.c.bf16 %v536_v38, %v536_v38  ;;  %v544_v41 = vsel %vm480_vm1, %v441_v30, %v512_v36  ;;  %v521_v42 = vsel %vm457_vm2, %v384_v33, %v489_v37 }
  0xba   : > { %v576_v43 = vpack.c.bf16 %v544_v41, %v544_v41  ;;  %v553_v44 = vpack.c.bf16 %v521_v42, %v521_v42  ;;  %v529_v45 = vsel %vm465_vm4, %v404_v34, %v497_v39 }
  0xbb   : > { %601 = vst.msk [vmem:[%s909_s29 + $0x4c] sm:$0xf] %vm581_vm3, %v568_v40  ;;  %v561_v46 = vpack.c.bf16 %v529_v45, %v529_v45  ;;  %v423_v47 = vpop.f32.mrf.mxu2  ;;  %v443_v48 = vpop.f32.mrf.mxu3 }
  0xbc   : > { %609 = vst.msk [vmem:[%s909_s29 + $0x6c] sm:$0xf] %vm581_vm3, %v576_v43  ;;  %v424_v49 = vadd.f32 %v900_v19, %v423_v47  ;;  %v444_v50 = vadd.f32 %v900_v19, %v443_v48  ;;  %v385_v51 = vpop.f32.mrf.mxu0  ;;  %v405_v52 = vpop.f32.mrf.mxu1 }
  0xbd   : > { %586 = vst.msk [vmem:[%s909_s29 + $0x10] sm:$0xf] %vm581_vm3, %v553_v44  ;;  %v386_v53 = vadd.f32 %v900_v19, %v385_v51  ;;  %v406_v54 = vadd.f32 %v900_v19, %v405_v52 }
  0xbe   : > { %594 = vst.msk [vmem:[%s909_s29 + $0x30] sm:$0xf] %vm581_vm3, %v561_v46  ;;  %vm473_vm5 = vcmp.gt.f32.partialorder %v424_v49, 0.0  ;;  %v505_v55 = vmul.f32 0.2, %v424_v49  ;;  %vm481_vm6 = vcmp.gt.f32.partialorder %v444_v50, 0.0 }
  0xbf   : > { %v513_v56 = vmul.f32 0.2, %v444_v50  ;;  %vm458_vm7 = vcmp.gt.f32.partialorder %v386_v53, 0.0  ;;  %v490_v57 = vmul.f32 0.2, %v386_v53  ;;  %vm466_vm8 = vcmp.gt.f32.partialorder %v406_v54, 0.0 }
  0xc0   : > { %v537_v58 = vsel %vm473_vm5, %v424_v49, %v505_v55  ;;  %v498_v59 = vmul.f32 0.2, %v406_v54 }
  0xc1   : > { %v569_v60 = vpack.c.bf16 %v537_v58, %v537_v58  ;;  %v545_v61 = vsel %vm481_vm6, %v444_v50, %v513_v56  ;;  %v522_v62 = vsel %vm458_vm7, %v386_v53, %v490_v57 }
  0xc2   : > { %v577_v63 = vpack.c.bf16 %v545_v61, %v545_v61  ;;  %v554_v0 = vpack.c.bf16 %v522_v62, %v522_v62  ;;  %v530_v1 = vsel %vm466_vm8, %v406_v54, %v498_v59 }
  0xc3   : > { %602 = vst.msk [vmem:[%s909_s29 + $0x50] sm:$0xf] %vm581_vm3, %v569_v60  ;;  %v562_v2 = vpack.c.bf16 %v530_v1, %v530_v1  ;;  %v425_v3 = vpop.f32.mrf.mxu2  ;;  %v445_v4 = vpop.f32.mrf.mxu3 }
  0xc4   : > { %610 = vst.msk [vmem:[%s909_s29 + $0x70] sm:$0xf] %vm581_vm3, %v577_v63  ;;  %v426_v5 = vadd.f32 %v900_v19, %v425_v3  ;;  %v446_v6 = vadd.f32 %v900_v19, %v445_v4  ;;  %v388_v7 = vpop.f32.mrf.mxu0  ;;  %v408_v8 = vpop.f32.mrf.mxu1 }
  0xc5   : > { %587 = vst.msk [vmem:[%s909_s29 + $0x14] sm:$0xf] %vm581_vm3, %v554_v0  ;;  %v389_v9 = vadd.f32 %v900_v19, %v388_v7  ;;  %v409_v10 = vadd.f32 %v900_v19, %v408_v8 }
  0xc6   : > { %595 = vst.msk [vmem:[%s909_s29 + $0x34] sm:$0xf] %vm581_vm3, %v562_v2  ;;  %vm474_vm9 = vcmp.gt.f32.partialorder %v426_v5, 0.0  ;;  %v506_v11 = vmul.f32 0.2, %v426_v5  ;;  %vm482_vm10 = vcmp.gt.f32.partialorder %v446_v6, 0.0 }
  0xc7   : > { %v514_v12 = vmul.f32 0.2, %v446_v6  ;;  %vm459_vm11 = vcmp.gt.f32.partialorder %v389_v9, 0.0  ;;  %v491_v13 = vmul.f32 0.2, %v389_v9  ;;  %vm467_vm12 = vcmp.gt.f32.partialorder %v409_v10, 0.0 }
  0xc8   : > { %v538_v14 = vsel %vm474_vm9, %v426_v5, %v506_v11  ;;  %v499_v15 = vmul.f32 0.2, %v409_v10 }
  0xc9   : > { %v570_v16 = vpack.c.bf16 %v538_v14, %v538_v14  ;;  %v546_v17 = vsel %vm482_vm10, %v446_v6, %v514_v12  ;;  %v523_v18 = vsel %vm459_vm11, %v389_v9, %v491_v13 }
  0xca   : > { %v578_v20 = vpack.c.bf16 %v546_v17, %v546_v17  ;;  %v555_v21 = vpack.c.bf16 %v523_v18, %v523_v18  ;;  %v531_v22 = vsel %vm467_vm12, %v409_v10, %v499_v15 }
  0xcb   : > { %603 = vst.msk [vmem:[%s909_s29 + $0x54] sm:$0xf] %vm581_vm3, %v570_v16  ;;  %v563_v23 = vpack.c.bf16 %v531_v22, %v531_v22  ;;  %v428_v24 = vpop.f32.mrf.mxu2  ;;  %v448_v25 = vpop.f32.mrf.mxu3 }
  0xcc   : > { %611 = vst.msk [vmem:[%s909_s29 + $0x74] sm:$0xf] %vm581_vm3, %v578_v20  ;;  %v429_v26 = vadd.f32 %v900_v19, %v428_v24  ;;  %v449_v27 = vadd.f32 %v900_v19, %v448_v25  ;;  %v390_v28 = vpop.f32.mrf.mxu0  ;;  %v410_v29 = vpop.f32.mrf.mxu1 }
  0xcd   : > { %588 = vst.msk [vmem:[%s909_s29 + $0x18] sm:$0xf] %vm581_vm3, %v555_v21  ;;  %v391_v30 = vadd.f32 %v900_v19, %v390_v28  ;;  %v411_v31 = vadd.f32 %v900_v19, %v410_v29 }
  0xce   : > { %596 = vst.msk [vmem:[%s909_s29 + $0x38] sm:$0xf] %vm581_vm3, %v563_v23  ;;  %vm475_vm13 = vcmp.gt.f32.partialorder %v429_v26, 0.0  ;;  %v507_v32 = vmul.f32 0.2, %v429_v26  ;;  %vm483_vm14 = vcmp.gt.f32.partialorder %v449_v27, 0.0 }
  0xcf   : > { %v515_v33 = vmul.f32 0.2, %v449_v27  ;;  %vm460_vm15 = vcmp.gt.f32.partialorder %v391_v30, 0.0  ;;  %v492_v34 = vmul.f32 0.2, %v391_v30  ;;  %vm468_vm0 = vcmp.gt.f32.partialorder %v411_v31, 0.0 }
  0xd0   : > { %v539_v35 = vsel %vm475_vm13, %v429_v26, %v507_v32  ;;  %v500_v36 = vmul.f32 0.2, %v411_v31 }
  0xd1   : > { %v571_v37 = vpack.c.bf16 %v539_v35, %v539_v35  ;;  %v547_v38 = vsel %vm483_vm14, %v449_v27, %v515_v33  ;;  %v524_v39 = vsel %vm460_vm15, %v391_v30, %v492_v34 }
  0xd2   : > { %v579_v40 = vpack.c.bf16 %v547_v38, %v547_v38  ;;  %v556_v41 = vpack.c.bf16 %v524_v39, %v524_v39  ;;  %v532_v42 = vsel %vm468_vm0, %v411_v31, %v500_v36 }
  0xd3   : > { %604 = vst.msk [vmem:[%s909_s29 + $0x58] sm:$0xf] %vm581_vm3, %v571_v37  ;;  %v564_v43 = vpack.c.bf16 %v532_v42, %v532_v42  ;;  %v430_v44 = vpop.f32.mrf.mxu2  ;;  %v450_v45 = vpop.f32.mrf.mxu3 }
  0xd4   : > { %612 = vst.msk [vmem:[%s909_s29 + $0x78] sm:$0xf] %vm581_vm3, %v579_v40  ;;  %v431_v46 = vadd.f32 %v900_v19, %v430_v44  ;;  %v451_v47 = vadd.f32 %v900_v19, %v450_v45 }
  0xd5   : > { %589 = vst.msk [vmem:[%s909_s29 + $0x1c] sm:$0xf] %vm581_vm3, %v556_v41 }
  0xd6   : > { %597 = vst.msk [vmem:[%s909_s29 + $0x3c] sm:$0xf] %vm581_vm3, %v564_v43  ;;  %vm476_vm1 = vcmp.gt.f32.partialorder %v431_v46, 0.0  ;;  %v508_v48 = vmul.f32 0.2, %v431_v46  ;;  %vm484_vm2 = vcmp.gt.f32.partialorder %v451_v47, 0.0 }
  0xd7   : > { %v516_v49 = vmul.f32 0.2, %v451_v47 }
  0xd8   : > { %v540_v50 = vsel %vm476_vm1, %v431_v46, %v508_v48 }
  0xd9   : > { %v572_v51 = vpack.c.bf16 %v540_v50, %v540_v50  ;;  %v548_v52 = vsel %vm484_vm2, %v451_v47, %v516_v49 }
  0xda   : > { %v580_v53 = vpack.c.bf16 %v548_v52, %v548_v52 }
  0xdb   : > { %605 = vst.msk [vmem:[%s909_s29 + $0x5c] sm:$0xf] %vm581_vm3, %v572_v51 }
  0xdc   : > { %613 = vst.msk [vmem:[%s909_s29 + $0x7c] sm:$0xf] %vm581_vm3, %v580_v53 }
  0xdd PF: > { %s13_s12 = sadd.s32 1, %s816_s12  }
  0xde   : > { %p10_p4 = scmp.ge.s32.totalorder %s13_s12, 4  }
  0xe0   :  { %12 = sbr.rel (!%p10_p4) target bundleno = 1 (0x1), region = 62 }

// kernel: unet_forward.11
= control target key start
LH: loop header
LB: loop body
LE: loop exit
PB: predicated region body
PF: predicated region fallthrough
CT: control target
= control target key end

     0   :  { %s532_s12 = smov 0   ;;  %s597_s0 = inlined_call_operand.vmem [shape: bf16[128,128], index: 0, kind: input, shape index: {}]   ;;  %s598_s1 = inlined_call_operand.vmem [shape: bf16[128,128], index: 1, kind: input, shape index: {}]   ;;  %s599_s2 = inlined_call_operand.vmem [shape: f32[1,128], index: 2, kind: input, shape index: {}]   ;;  %s600_s3 = inlined_call_operand.vmem [shape: bf16[128,16], index: 3, kind: output, shape index: {}]  }
   0x1 LB: > { %s400_s13 = sadd.s32 4294967295, %s510_s12   ;;  %p404_p0 = scmp.ge.s32.totalorder %s510_s12, 1  ;;  %s510_s12 = sphi %s532_s12, %s13_s12  }
   0x2   : > { %p138_p1 = scmp.lt.s32.totalorder %s510_s12, 3 }
   0x4   : > { %p139_p2 = pnand %p404_p0, %p138_p1 }
   0x5   : > { %s405_s22 = sshll.u32 (!%p139_p2), %s400_s13, 3 }
   0x6   : > { %142 = sbr.rel (%p139_p2) target bundleno = 193 (0xc1), region = 32  ;;  %p163_p3 = scmp.lt.s32.totalorder (!%p139_p2), %s405_s22, 15 }
   0xb   : > { %v470_v0 = vld [vmem:[%s598_s1 + $0x38] sm:$0xff]  ;;  %v469_v1 = vld [vmem:[%s598_s1 + $0x30] sm:$0xff]  ;;  %v468_v2 = vld [vmem:[%s598_s1 + $0x28] sm:$0xff]  ;;  %s602_s22 = smov (!%p163_p3, %s405_s22), 15  ;;  %vm335_vm2 = vcmask 125952  }
   0xc   : > { %274 = vmatpush.bf16.msra.mxu0 %v470_v0  ;;  %471 = vmatpush.bf16.msra.mxu1 %v470_v0  ;;  %v467_v3 = vld [vmem:[%s598_s1 + $0x20] sm:$0xff]  ;;  %v466_v4 = vld [vmem:[%s598_s1 + $0x18] sm:$0xff]  ;;  %v465_v5 = vld [vmem:[%s598_s1 + $0x10] sm:$0xff]  ;;  %s406_s29 = sshll.u32 %s602_s22, 2 }
   0xd   : > { %472 = vmatpush.bf16.msra.mxu2 %v470_v0  ;;  %473 = vmatpush.bf16.msra.mxu3 %v470_v0  ;;  %v464_v6 = vld [vmem:[%s598_s1 + $0x8] sm:$0xff]  ;;  %v463_v7 = vld [vmem:[%s598_s1] sm:$0xff]  ;;  %s166_s7 = scalar_lea.vmem %s597_s0, %s406_s29  ;;  %s576_s13 = scalar_lea.vmem %s600_s3, %s406_s29 }
   0xe   : > { %v459_v8 = vld [vmem:[%s166_s7] sm:$0xff]  ;;  %v460_v9 = vld [vmem:[%s166_s7 + $0x8] sm:$0xff]  ;;  %v461_v10 = vld [vmem:[%s166_s7 + $0x10] sm:$0xff] }
   0xf   : > { %v462_v11 = vld [vmem:[%s166_s7 + $0x18] sm:$0xff]  ;;  %v503_v12 = vld [vmem:[%s599_s2] ss:$0 sm:$0xff] }
  0x10   : > { %275 = vmatpush.bf16.msra.mxu0 %v469_v1  ;;  %474 = vmatpush.bf16.msra.mxu1 %v469_v1 }
  0x11   : > { %475 = vmatpush.bf16.msra.mxu2 %v469_v1  ;;  %476 = vmatpush.bf16.msra.mxu3 %v469_v1 }
  0x14   : > { %276 = vmatpush.bf16.msra.mxu0 %v468_v2  ;;  %477 = vmatpush.bf16.msra.mxu1 %v468_v2 }
  0x15   : > { %478 = vmatpush.bf16.msra.mxu2 %v468_v2  ;;  %479 = vmatpush.bf16.msra.mxu3 %v468_v2 }
  0x18   : > { %277 = vmatpush.bf16.msra.mxu0 %v467_v3  ;;  %480 = vmatpush.bf16.msra.mxu1 %v467_v3 }
  0x19   : > { %481 = vmatpush.bf16.msra.mxu2 %v467_v3  ;;  %482 = vmatpush.bf16.msra.mxu3 %v467_v3 }
  0x1c   : > { %278 = vmatpush.bf16.msra.mxu0 %v466_v4  ;;  %483 = vmatpush.bf16.msra.mxu1 %v466_v4 }
  0x1d   : > { %484 = vmatpush.bf16.msra.mxu2 %v466_v4  ;;  %485 = vmatpush.bf16.msra.mxu3 %v466_v4 }
  0x20   : > { %279 = vmatpush.bf16.msra.mxu0 %v465_v5  ;;  %486 = vmatpush.bf16.msra.mxu1 %v465_v5 }
  0x21   : > { %487 = vmatpush.bf16.msra.mxu2 %v465_v5  ;;  %488 = vmatpush.bf16.msra.mxu3 %v465_v5 }
  0x24   : > { %280 = vmatpush.bf16.msra.mxu0 %v464_v6  ;;  %489 = vmatpush.bf16.msra.mxu1 %v464_v6 }
  0x25   : > { %490 = vmatpush.bf16.msra.mxu2 %v464_v6  ;;  %491 = vmatpush.bf16.msra.mxu3 %v464_v6 }
  0x28   : > { %281 = vmatpush.bf16.msra.mxu0 %v463_v7  ;;  %492 = vmatpush.bf16.msra.mxu1 %v463_v7 }
  0x29   : > { %493 = vmatpush.bf16.msra.mxu2 %v463_v7  ;;  %494 = vmatpush.bf16.msra.mxu3 %v463_v7 }
  0x2b   : > { %282 = vmatmul.bf16.vlgmr.msra.gmra.mxu0 %v459_v8  ;;  %287 = vmatmul.bf16.vlgmr.msra.gmra.mxu1 %v460_v9 }
  0x2c   : > { %292 = vmatmul.bf16.vlgmr.msra.gmra.mxu2 %v461_v10  ;;  %297 = vmatmul.bf16.vlgmr.msra.gmra.mxu3 %v462_v11 }
  0xa8   : > { %v283_v13 = vpop.f32.mrf.mxu0  ;;  %v288_v14 = vpop.f32.mrf.mxu1 }
  0xa9   : > { %v284_v15 = vadd.f32 %v503_v12, %v283_v13  ;;  %v289_v16 = vadd.f32 %v503_v12, %v288_v14 }
  0xab   : > { %vm303_vm0 = vcmp.gt.f32.partialorder %v284_v15, 0.0  ;;  %v311_v17 = vmul.f32 0.2, %v284_v15  ;;  %vm305_vm1 = vcmp.gt.f32.partialorder %v289_v16, 0.0  ;;  %v313_v18 = vmul.f32 0.2, %v289_v16 }
  0xad   : > { %v319_v19 = vsel %vm303_vm0, %v284_v15, %v311_v17  ;;  %v321_v20 = vsel %vm305_vm1, %v289_v16, %v313_v18 }
  0xae   : > { %v327_v21 = vpack.c.bf16 %v319_v19, %v319_v19  ;;  %v329_v22 = vpack.c.bf16 %v321_v20, %v321_v20 }
  0xaf   : > { %v293_v23 = vpop.f32.mrf.mxu2  ;;  %v298_v24 = vpop.f32.mrf.mxu3 }
  0xb0   : > { %336 = vst.msk [vmem:[%s576_s13] sm:$0xf] %vm335_vm2, %v327_v21  ;;  %v294_v25 = vadd.f32 %v503_v12, %v293_v23  ;;  %v299_v26 = vadd.f32 %v503_v12, %v298_v24  ;;  %v285_v27 = vpop.f32.mrf.mxu0  ;;  %v290_v28 = vpop.f32.mrf.mxu1 }
  0xb1   : > { %338 = vst.msk [vmem:[%s576_s13 + $0x8] sm:$0xf] %vm335_vm2, %v329_v22  ;;  %v286_v29 = vadd.f32 %v503_v12, %v285_v27  ;;  %v291_v30 = vadd.f32 %v503_v12, %v290_v28 }
  0xb2   : > { %vm307_vm3 = vcmp.gt.f32.partialorder %v294_v25, 0.0  ;;  %v315_v31 = vmul.f32 0.2, %v294_v25  ;;  %vm309_vm4 = vcmp.gt.f32.partialorder %v299_v26, 0.0  ;;  %v317_v32 = vmul.f32 0.2, %v299_v26 }
  0xb3   : > { %vm304_vm5 = vcmp.gt.f32.partialorder %v286_v29, 0.0  ;;  %v312_v33 = vmul.f32 0.2, %v286_v29  ;;  %vm306_vm6 = vcmp.gt.f32.partialorder %v291_v30, 0.0  ;;  %v314_v34 = vmul.f32 0.2, %v291_v30 }
  0xb4   : > { %v323_v35 = vsel %vm307_vm3, %v294_v25, %v315_v31  ;;  %v325_v36 = vsel %vm309_vm4, %v299_v26, %v317_v32 }
  0xb5   : > { %v331_v37 = vpack.c.bf16 %v323_v35, %v323_v35  ;;  %v333_v38 = vpack.c.bf16 %v325_v36, %v325_v36  ;;  %v320_v39 = vsel %vm304_vm5, %v286_v29, %v312_v33  ;;  %v322_v40 = vsel %vm306_vm6, %v291_v30, %v314_v34 }
  0xb6   : > { %v328_v41 = vpack.c.bf16 %v320_v39, %v320_v39  ;;  %v330_v42 = vpack.c.bf16 %v322_v40, %v322_v40 }
  0xb7   : > { %340 = vst.msk [vmem:[%s576_s13 + $0x10] sm:$0xf] %vm335_vm2, %v331_v37  ;;  %v295_v43 = vpop.f32.mrf.mxu2  ;;  %v300_v44 = vpop.f32.mrf.mxu3 }
  0xb8   : > { %342 = vst.msk [vmem:[%s576_s13 + $0x18] sm:$0xf] %vm335_vm2, %v333_v38  ;;  %v296_v45 = vadd.f32 %v503_v12, %v295_v43  ;;  %v301_v46 = vadd.f32 %v503_v12, %v300_v44 }
  0xb9   : > { %337 = vst.msk [vmem:[%s576_s13 + $0x4] sm:$0xf] %vm335_vm2, %v328_v41 }
  0xba   : > { %339 = vst.msk [vmem:[%s576_s13 + $0xc] sm:$0xf] %vm335_vm2, %v330_v42  ;;  %vm308_vm7 = vcmp.gt.f32.partialorder %v296_v45, 0.0  ;;  %v316_v47 = vmul.f32 0.2, %v296_v45  ;;  %vm310_vm8 = vcmp.gt.f32.partialorder %v301_v46, 0.0 }
  0xbb   : > { %v318_v48 = vmul.f32 0.2, %v301_v46 }
  0xbc   : > { %v324_v49 = vsel %vm308_vm7, %v296_v45, %v316_v47 }
  0xbd   : > { %v332_v50 = vpack.c.bf16 %v324_v49, %v324_v49  ;;  %v326_v51 = vsel %vm310_vm8, %v301_v46, %v318_v48 }
  0xbe   : > { %v334_v52 = vpack.c.bf16 %v326_v51, %v326_v51 }
  0xbf   : > { %341 = vst.msk [vmem:[%s576_s13 + $0x14] sm:$0xf] %vm335_vm2, %v332_v50 }
  0xc0   : > { %343 = vst.msk [vmem:[%s576_s13 + $0x1c] sm:$0xf] %vm335_vm2, %v334_v52 }
  0xc1 PF: > { %s13_s12 = sadd.s32 1, %s510_s12  }
  0xc2   : > { %p10_p4 = scmp.ge.s32.totalorder %s13_s12, 4  }
  0xc4   :  { %12 = sbr.rel (!%p10_p4) target bundleno = 1 (0x1), region = 62 }

// kernel: unet_forward.12
= control target key start
LH: loop header
LB: loop body
LE: loop exit
PB: predicated region body
PF: predicated region fallthrough
CT: control target
= control target key end

     0   :  { %vm224_vm1 = vcmask 257024   ;;  %s461_s1 = inlined_call_operand.vmem [shape: bf16[256,128], index: 1, kind: input, shape index: {}]   ;;  %s462_s2 = inlined_call_operand.vmem [shape: f32[1,128], index: 2, kind: input, shape index: {}]   ;;  %s463_s0 = inlined_call_operand.vmem [shape: bf16[32,256], index: 0, kind: input, shape index: {}]   ;;  %s464_s3 = inlined_call_operand.vmem [shape: bf16[32,32], index: 3, kind: output, shape index: {}]  }
   0x1   :  { %v324_v0 = vld [vmem:[%s461_s1 + $0x38] sm:$0xff]  ;;  %v323_v2 = vld [vmem:[%s461_s1 + $0x30] sm:$0xff]  ;;  %v322_v4 = vld [vmem:[%s461_s1 + $0x28] sm:$0xff] }
   0x2   :  { %v332_v1 = vld [vmem:[%s461_s1 + $0x78] sm:$0xff]  ;;  %170 = vmatpush.bf16.msra.mxu0 %v324_v0  ;;  %333 = vmatpush.bf16.msra.mxu2 %v324_v0  ;;  %v331_v3 = vld [vmem:[%s461_s1 + $0x70] sm:$0xff]  ;;  %v330_v5 = vld [vmem:[%s461_s1 + $0x68] sm:$0xff] }
   0x3   :  { %189 = vmatpush.bf16.msra.mxu1 %v332_v1  ;;  %341 = vmatpush.bf16.msra.mxu3 %v332_v1  ;;  %v321_v6 = vld [vmem:[%s461_s1 + $0x20] sm:$0xff]  ;;  %v320_v8 = vld [vmem:[%s461_s1 + $0x18] sm:$0xff]  ;;  %v319_v10 = vld [vmem:[%s461_s1 + $0x10] sm:$0xff] }
   0x4   :  { %v329_v7 = vld [vmem:[%s461_s1 + $0x60] sm:$0xff]  ;;  %v328_v9 = vld [vmem:[%s461_s1 + $0x58] sm:$0xff]  ;;  %v327_v11 = vld [vmem:[%s461_s1 + $0x50] sm:$0xff] }
   0x5   :  { %v318_v12 = vld [vmem:[%s461_s1 + $0x8] sm:$0xff]  ;;  %v317_v14 = vld [vmem:[%s461_s1] sm:$0xff]  ;;  %v243_v18 = vld [vmem:[%s463_s0 + $0x10] sm:$0xf] }
   0x6   :  { %171 = vmatpush.bf16.msra.mxu0 %v323_v2  ;;  %334 = vmatpush.bf16.msra.mxu2 %v323_v2  ;;  %v326_v13 = vld [vmem:[%s461_s1 + $0x48] sm:$0xff]  ;;  %v325_v15 = vld [vmem:[%s461_s1 + $0x40] sm:$0xff]  ;;  %v316_v19 = vld [vmem:[%s463_s0 + $0x14] sm:$0xf0] }
   0x7   :  { %190 = vmatpush.bf16.msra.mxu1 %v331_v3  ;;  %342 = vmatpush.bf16.msra.mxu3 %v331_v3  ;;  %v235_v16 = vld [vmem:[%s463_s0] sm:$0xf]  ;;  %v314_v17 = vld [vmem:[%s463_s0 + $0x4] sm:$0xf0]  ;;  %v313_v20 = vld [vmem:[%s463_s0 + $0x4] sm:$0xf]  ;;  %v244_v25 = vor.u32 %v316_v19, %v243_v18 }
   0x8   :  { %v237_v21 = vld [vmem:[%s463_s0 + $0x8] sm:$0xf0]  ;;  %v315_v22 = vld [vmem:[%s463_s0 + $0x14] sm:$0xf]  ;;  %v245_v23 = vld [vmem:[%s463_s0 + $0x18] sm:$0xf0]  ;;  %v236_v24 = vor.u32 %v314_v17, %v235_v16 }
   0x9   :  { %v240_v26 = vor.u32 %v313_v20, %v237_v21  ;;  %v248_v27 = vor.u32 %v315_v22, %v245_v23  ;;  %v349_v28 = vld [vmem:[%s462_s2] ss:$0 sm:$0xff] }
   0xa   :  { %172 = vmatpush.bf16.msra.mxu0 %v322_v4  ;;  %335 = vmatpush.bf16.msra.mxu2 %v322_v4 }
   0xb   :  { %191 = vmatpush.bf16.msra.mxu1 %v330_v5  ;;  %343 = vmatpush.bf16.msra.mxu3 %v330_v5 }
   0xe   :  { %173 = vmatpush.bf16.msra.mxu0 %v321_v6  ;;  %336 = vmatpush.bf16.msra.mxu2 %v321_v6 }
   0xf   :  { %192 = vmatpush.bf16.msra.mxu1 %v329_v7  ;;  %344 = vmatpush.bf16.msra.mxu3 %v329_v7 }
  0x12   :  { %174 = vmatpush.bf16.msra.mxu0 %v320_v8  ;;  %337 = vmatpush.bf16.msra.mxu2 %v320_v8 }
  0x13   :  { %193 = vmatpush.bf16.msra.mxu1 %v328_v9  ;;  %345 = vmatpush.bf16.msra.mxu3 %v328_v9 }
  0x16   :  { %175 = vmatpush.bf16.msra.mxu0 %v319_v10  ;;  %338 = vmatpush.bf16.msra.mxu2 %v319_v10 }
  0x17   :  { %194 = vmatpush.bf16.msra.mxu1 %v327_v11  ;;  %346 = vmatpush.bf16.msra.mxu3 %v327_v11 }
  0x1a   :  { %176 = vmatpush.bf16.msra.mxu0 %v318_v12  ;;  %339 = vmatpush.bf16.msra.mxu2 %v318_v12 }
  0x1b   :  { %195 = vmatpush.bf16.msra.mxu1 %v326_v13  ;;  %347 = vmatpush.bf16.msra.mxu3 %v326_v13 }
  0x1e   :  { %177 = vmatpush.bf16.msra.mxu0 %v317_v14  ;;  %340 = vmatpush.bf16.msra.mxu2 %v317_v14 }
  0x1f   :  { %196 = vmatpush.bf16.msra.mxu1 %v325_v15  ;;  %348 = vmatpush.bf16.msra.mxu3 %v325_v15 }
  0x21   :  { %178 = vmatmul.bf16.vlgmr.msra.gmra.mxu0 %v236_v24  ;;  %183 = vmatmul.bf16.vlgmr.msra.gmra.mxu2 %v244_v25 }
  0x22   :  { %197 = vmatmul.bf16.vlgmr.msra.gmra.mxu1 %v240_v26  ;;  %202 = vmatmul.bf16.vlgmr.msra.gmra.mxu3 %v248_v27 }
  0x9e   :  { %v179_v29 = vpop.f32.mrf.mxu0 }
  0x9f   :  { %v180_v30 = vadd.f32 %v349_v28, %v179_v29  ;;  %v198_v31 = vpop.f32.mrf.mxu1 }
  0xa1   :  { %v199_v32 = vadd.f32 %v198_v31, %v180_v30 }
  0xa3   :  { %vm208_vm0 = vcmp.gt.f32.partialorder %v199_v32, 0.0  ;;  %v212_v33 = vmul.f32 0.2, %v199_v32 }
  0xa4   :  { %v184_v34 = vpop.f32.mrf.mxu2 }
  0xa5   :  { %v216_v35 = vsel %vm208_vm0, %v199_v32, %v212_v33  ;;  %v185_v36 = vadd.f32 %v349_v28, %v184_v34  ;;  %v203_v37 = vpop.f32.mrf.mxu3 }
  0xa6   :  { %v220_v38 = vpack.c.bf16 %v216_v35, %v216_v35  ;;  %v181_v39 = vpop.f32.mrf.mxu0 }
  0xa7   :  { %v204_v40 = vadd.f32 %v203_v37, %v185_v36  ;;  %v182_v41 = vadd.f32 %v349_v28, %v181_v39  ;;  %v200_v42 = vpop.f32.mrf.mxu1 }
  0xa8   :  { %225 = vst.msk [vmem:[%s464_s3] sm:$0xf] %vm224_vm1, %v220_v38 }
  0xa9   :  { %vm210_vm2 = vcmp.gt.f32.partialorder %v204_v40, 0.0  ;;  %v214_v43 = vmul.f32 0.2, %v204_v40  ;;  %v201_v44 = vadd.f32 %v200_v42, %v182_v41 }
  0xab   :  { %v218_v45 = vsel %vm210_vm2, %v204_v40, %v214_v43  ;;  %vm209_vm3 = vcmp.gt.f32.partialorder %v201_v44, 0.0  ;;  %v213_v46 = vmul.f32 0.2, %v201_v44 }
  0xac   :  { %v222_v47 = vpack.c.bf16 %v218_v45, %v218_v45  ;;  %v186_v48 = vpop.f32.mrf.mxu2 }
  0xad   :  { %v217_v49 = vsel %vm209_vm3, %v201_v44, %v213_v46  ;;  %v187_v50 = vadd.f32 %v349_v28, %v186_v48  ;;  %v205_v52 = vpop.f32.mrf.mxu3 }
  0xae   :  { %227 = vst.msk [vmem:[%s464_s3 + $0x8] sm:$0xf] %vm224_vm1, %v222_v47  ;;  %v221_v51 = vpack.c.bf16 %v217_v49, %v217_v49 }
  0xaf   :  { %v206_v53 = vadd.f32 %v205_v52, %v187_v50 }
  0xb0   :  { %226 = vst.msk [vmem:[%s464_s3 + $0x4] sm:$0xf] %vm224_vm1, %v221_v51 }
  0xb1   :  { %vm211_vm4 = vcmp.gt.f32.partialorder %v206_v53, 0.0  ;;  %v215_v54 = vmul.f32 0.2, %v206_v53 }
  0xb3   :  { %v219_v55 = vsel %vm211_vm4, %v206_v53, %v215_v54 }
  0xb4   :  { %v223_v56 = vpack.c.bf16 %v219_v55, %v219_v55 }
  0xb6   :  { %228 = vst.msk [vmem:[%s464_s3 + $0xc] sm:$0xf] %vm224_vm1, %v223_v56 }

// kernel: unet_forward.13
= control target key start
LH: loop header
LB: loop body
LE: loop exit
PB: predicated region body
PF: predicated region fallthrough
CT: control target
= control target key end

     0   :  { %vm346_vm1 = vcmask 519168   ;;  %s641_s1 = inlined_call_operand.vmem [shape: bf16[512,128], index: 1, kind: input, shape index: {}]   ;;  %s642_s2 = inlined_call_operand.vmem [shape: f32[1,128], index: 2, kind: input, shape index: {}]   ;;  %s643_s0 = inlined_call_operand.vmem [shape: bf16[8,512], index: 0, kind: input, shape index: {}]   ;;  %s644_s3 = inlined_call_operand.vmem [shape: bf16[8,64], index: 3, kind: output, shape index: {}]  }
   0x1   :  { %v487_v0 = vld [vmem:[%s641_s1 + $0x38] sm:$0xff]  ;;  %v486_v4 = vld [vmem:[%s641_s1 + $0x30] sm:$0xff]  ;;  %v485_v8 = vld [vmem:[%s641_s1 + $0x28] sm:$0xff] }
   0x2   :  { %v495_v1 = vld [vmem:[%s641_s1 + $0x78] sm:$0xff]  ;;  %290 = vmatpush.bf16.msra.mxu0 %v487_v0  ;;  %v494_v5 = vld [vmem:[%s641_s1 + $0x70] sm:$0xff]  ;;  %v493_v9 = vld [vmem:[%s641_s1 + $0x68] sm:$0xff] }
   0x3   :  { %v503_v2 = vld [vmem:[%s641_s1 + $0xb8] sm:$0xff]  ;;  %303 = vmatpush.bf16.msra.mxu1 %v495_v1  ;;  %v502_v6 = vld [vmem:[%s641_s1 + $0xb0] sm:$0xff]  ;;  %v501_v10 = vld [vmem:[%s641_s1 + $0xa8] sm:$0xff] }
   0x4   :  { %v511_v3 = vld [vmem:[%s641_s1 + $0xf8] sm:$0xff]  ;;  %316 = vmatpush.bf16.msra.mxu2 %v503_v2  ;;  %v510_v7 = vld [vmem:[%s641_s1 + $0xf0] sm:$0xff]  ;;  %v509_v11 = vld [vmem:[%s641_s1 + $0xe8] sm:$0xff] }
   0x5   :  { %329 = vmatpush.bf16.msra.mxu3 %v511_v3  ;;  %v484_v12 = vld [vmem:[%s641_s1 + $0x20] sm:$0xff]  ;;  %v483_v16 = vld [vmem:[%s641_s1 + $0x18] sm:$0xff]  ;;  %v482_v20 = vld [vmem:[%s641_s1 + $0x10] sm:$0xff] }
   0x6   :  { %291 = vmatpush.bf16.msra.mxu0 %v486_v4  ;;  %v492_v13 = vld [vmem:[%s641_s1 + $0x60] sm:$0xff]  ;;  %v491_v17 = vld [vmem:[%s641_s1 + $0x58] sm:$0xff]  ;;  %v490_v21 = vld [vmem:[%s641_s1 + $0x50] sm:$0xff] }
   0x7   :  { %304 = vmatpush.bf16.msra.mxu1 %v494_v5  ;;  %v500_v14 = vld [vmem:[%s641_s1 + $0xa0] sm:$0xff]  ;;  %v499_v18 = vld [vmem:[%s641_s1 + $0x98] sm:$0xff]  ;;  %v498_v22 = vld [vmem:[%s641_s1 + $0x90] sm:$0xff] }
   0x8   :  { %317 = vmatpush.bf16.msra.mxu2 %v502_v6  ;;  %v508_v15 = vld [vmem:[%s641_s1 + $0xe0] sm:$0xff]  ;;  %v507_v19 = vld [vmem:[%s641_s1 + $0xd8] sm:$0xff]  ;;  %v506_v23 = vld [vmem:[%s641_s1 + $0xd0] sm:$0xff] }
   0x9   :  { %330 = vmatpush.bf16.msra.mxu3 %v510_v7  ;;  %v481_v24 = vld [vmem:[%s641_s1 + $0x8] sm:$0xff]  ;;  %v14_v26 = vld [vmem:[%s643_s0] sm:$0xff] }
   0xa   :  { %292 = vmatpush.bf16.msra.mxu0 %v485_v8  ;;  %v489_v25 = vld [vmem:[%s641_s1 + $0x48] sm:$0xff]  ;;  %v86_v30 = vunpack.c.l.b16 %v14_v26  ;;  %v87_v31 = vunpack.c.h.b16 %v14_v26  ;;  %v480_v32 = vld [vmem:[%s641_s1] sm:$0xff] }
   0xb   :  { %305 = vmatpush.bf16.msra.mxu1 %v493_v9  ;;  %v497_v27 = vld [vmem:[%s641_s1 + $0x88] sm:$0xff]  ;;  %v488_v33 = vld [vmem:[%s641_s1 + $0x40] sm:$0xff] }
   0xc   :  { %318 = vmatpush.bf16.msra.mxu2 %v501_v10  ;;  %v505_v28 = vld [vmem:[%s641_s1 + $0xc8] sm:$0xff]  ;;  %v496_v36 = vld [vmem:[%s641_s1 + $0x80] sm:$0xff]  ;;  %v90_v38 = vpack.c.b16 %v86_v30, %v86_v30  ;;  %v91_v39 = vpack.c.b16 %v87_v31, %v87_v31 }
   0xd   :  { %331 = vmatpush.bf16.msra.mxu3 %v509_v11  ;;  %v15_v29 = vld [vmem:[%s643_s0 + $0x8] sm:$0xff]  ;;  %v504_v37 = vld [vmem:[%s641_s1 + $0xc0] sm:$0xff] }
   0xe   :  { %293 = vmatpush.bf16.msra.mxu0 %v484_v12  ;;  %v88_v34 = vunpack.c.l.b16 %v15_v29  ;;  %v89_v35 = vunpack.c.h.b16 %v15_v29  ;;  %v512_v42 = vld [vmem:[%s642_s2] ss:$0 sm:$0xff] }
   0xf   :  { %306 = vmatpush.bf16.msra.mxu1 %v492_v13 }
  0x10   :  { %319 = vmatpush.bf16.msra.mxu2 %v500_v14  ;;  %v92_v40 = vpack.c.b16 %v88_v34, %v88_v34  ;;  %v93_v41 = vpack.c.b16 %v89_v35, %v89_v35 }
  0x11   :  { %332 = vmatpush.bf16.msra.mxu3 %v508_v15 }
  0x12   :  { %294 = vmatpush.bf16.msra.mxu0 %v483_v16 }
  0x13   :  { %307 = vmatpush.bf16.msra.mxu1 %v491_v17 }
  0x14   :  { %320 = vmatpush.bf16.msra.mxu2 %v499_v18 }
  0x15   :  { %333 = vmatpush.bf16.msra.mxu3 %v507_v19 }
  0x16   :  { %295 = vmatpush.bf16.msra.mxu0 %v482_v20 }
  0x17   :  { %308 = vmatpush.bf16.msra.mxu1 %v490_v21 }
  0x18   :  { %321 = vmatpush.bf16.msra.mxu2 %v498_v22 }
  0x19   :  { %334 = vmatpush.bf16.msra.mxu3 %v506_v23 }
  0x1a   :  { %296 = vmatpush.bf16.msra.mxu0 %v481_v24 }
  0x1b   :  { %309 = vmatpush.bf16.msra.mxu1 %v489_v25 }
  0x1c   :  { %322 = vmatpush.bf16.msra.mxu2 %v497_v27 }
  0x1d   :  { %335 = vmatpush.bf16.msra.mxu3 %v505_v28 }
  0x1e   :  { %297 = vmatpush.bf16.msra.mxu0 %v480_v32 }
  0x1f   :  { %310 = vmatpush.bf16.msra.mxu1 %v488_v33 }
  0x20   :  { %323 = vmatpush.bf16.msra.mxu2 %v496_v36 }
  0x21   :  { %336 = vmatpush.bf16.msra.mxu3 %v504_v37  ;;  %298 = vmatmul.bf16.vlgmr.msra.gmra.mxu0 %v90_v38 }
  0x22   :  { %311 = vmatmul.bf16.vlgmr.msra.gmra.mxu1 %v91_v39 }
  0x23   :  { %324 = vmatmul.bf16.vlgmr.msra.gmra.mxu2 %v92_v40 }
  0x24   :  { %337 = vmatmul.bf16.vlgmr.msra.gmra.mxu3 %v93_v41 }
  0x9e   :  { %v299_v43 = vpop.f32.mrf.mxu0 }
  0x9f   :  { %v312_v44 = vpop.f32.mrf.mxu1  ;;  %v300_v45 = vadd.f32 %v512_v42, %v299_v43 }
  0xa1   :  { %v313_v46 = vadd.f32 %v312_v44, %v300_v45 }
  0xa6   :  { %v325_v47 = vpop.f32.mrf.mxu2  ;;  %v301_v50 = vpop.f32.mrf.mxu0 }
  0xa7   :  { %v338_v48 = vpop.f32.mrf.mxu3  ;;  %v326_v49 = vadd.f32 %v325_v47, %v313_v46  ;;  %v314_v51 = vpop.f32.mrf.mxu1 }
  0xa9   :  { %v339_v52 = vadd.f32 %v338_v48, %v326_v49 }
  0xab   :  { %vm342_vm0 = vcmp.gt.f32.partialorder %v339_v52, 0.0  ;;  %v343_v53 = vmul.f32 0.2, %v339_v52 }
  0xad   :  { %v344_v54 = vsel %vm342_vm0, %v339_v52, %v343_v53 }
  0xae   :  { %v345_v55 = vpack.c.bf16 %v344_v54, %v344_v54  ;;  %v327_v56 = vpop.f32.mrf.mxu2 }
  0xaf   :  { %v340_v57 = vpop.f32.mrf.mxu3 }
  0xb0   :  { %347 = vst.msk [vmem:[%s644_s3] sm:$0xf] %vm346_vm1, %v345_v55 }

// kernel: unet_forward.15
= control target key start
LH: loop header
LB: loop body
LE: loop exit
PB: predicated region body
PF: predicated region fallthrough
CT: control target
= control target key end

     0   :  { %s1044_s18 = smov 0   ;;  %s1046_s19 = smov 0   ;;  %s1133_s0 = inlined_call_operand.vmem [shape: bf16[2,2,256], index: 0, kind: input, shape index: {}]   ;;  %s1134_s1 = inlined_call_operand.vmem [shape: bf16[2,2,256], index: 1, kind: input, shape index: {}]   ;;  %s1135_s2 = inlined_call_operand.vmem [shape: bf16[2,256,128], index: 2, kind: input, shape index: {}]   ;;  %s1136_s3 = inlined_call_operand.vmem [shape: bf16[2,256,128], index: 3, kind: input, shape index: {}]   ;;  %s1137_s4 = inlined_call_operand.vmem [shape: f32[1,128], index: 4, kind: input, shape index: {}]   ;;  %s1138_s5 = inlined_call_operand.vmem [shape: bf16[2,2,256], index: 5, kind: output, shape index: {}]  }
   0x1   :  { %s1048_s20 = smov 0  }
   0x2 LB: > { %s27_s21 = sadd.s32 1, %s1008_s19  ;;  %p792_p0 = scmp.ge.s32.totalorder %s1012_s20, 1  ;;  %s1012_s20 = sphi %s1048_s20, %s15_s20   ;;  %s1008_s19 = sphi %s1046_s19, %s1140_s19   ;;  %s1004_s18 = sphi %s1044_s18, %s1139_s18  }
   0x3   : > { %p29_p1 = scmp.ge.s32.totalorder %s27_s21, 2  ;;  %p241_p2 = scmp.lt.s32.totalorder %s1012_s20, 3 }
   0x5   : > { %s1142_s21 = smov (%p29_p1, %s27_s21), 0  ;;  %p242_p3 = pnand %p792_p0, %p241_p2 }
   0x6   : > { %p293_p4 = scmp.lt.s32.totalorder (!%p242_p3), %s1004_s18, 1 }
   0x7   : > { %245 = sbr.rel (%p242_p3) target bundleno = 190 (0xbe), region = 40 }
   0xc   : > { %s1144_s18 = smov (!%p293_p4, %s1004_s18), 1  ;;  %v988_v38 = vld [vmem:[%s1137_s4] ss:$0 sm:$0xff] }
   0xd   : > { %s930_s22 = sshll.u32 %s1144_s18, 7  ;;  %s1080_s29 = sshll.u32 %s1144_s18, 1  ;;  %v989_v43 = vld [vmem:[%s1137_s4] ss:$0 sm:$0xff] }
   0xe   : > { %s1065_s25 = scalar_lea.vmem %s1135_s2, %s930_s22  ;;  %s1070_s28 = scalar_lea.vmem %s1136_s3, %s930_s22 }
   0xf   : > { %v939_v0 = vld [vmem:[%s1065_s25 + $0x38] sm:$0xff]  ;;  %v938_v4 = vld [vmem:[%s1065_s25 + $0x30] sm:$0xff]  ;;  %v937_v8 = vld [vmem:[%s1065_s25 + $0x28] sm:$0xff]  ;;  %s300_s7 = scalar_lea.vmem %s1133_s0, %s1080_s29  ;;  %s308_s10 = scalar_lea.vmem %s1134_s1, %s1080_s29 }
  0x10   : > { %v947_v1 = vld [vmem:[%s1065_s25 + $0x78] sm:$0xff]  ;;  %466 = vmatpush.bf16.msra.mxu0 %v939_v0  ;;  %v946_v5 = vld [vmem:[%s1065_s25 + $0x70] sm:$0xff]  ;;  %v945_v9 = vld [vmem:[%s1065_s25 + $0x68] sm:$0xff]  ;;  %s326_s17 = scalar_lea.vmem %s1138_s5, %s1080_s29 }
  0x11   : > { %v955_v2 = vld [vmem:[%s1070_s28 + $0x38] sm:$0xff]  ;;  %479 = vmatpush.bf16.msra.mxu1 %v947_v1  ;;  %v954_v6 = vld [vmem:[%s1070_s28 + $0x30] sm:$0xff]  ;;  %v953_v10 = vld [vmem:[%s1070_s28 + $0x28] sm:$0xff] }
  0x12   : > { %v963_v3 = vld [vmem:[%s1070_s28 + $0x78] sm:$0xff]  ;;  %634 = vmatpush.bf16.msra.mxu2 %v955_v2  ;;  %v962_v7 = vld [vmem:[%s1070_s28 + $0x70] sm:$0xff]  ;;  %v961_v11 = vld [vmem:[%s1070_s28 + $0x68] sm:$0xff] }
  0x13   : > { %647 = vmatpush.bf16.msra.mxu3 %v963_v3  ;;  %v936_v12 = vld [vmem:[%s1065_s25 + $0x20] sm:$0xff]  ;;  %v935_v17 = vld [vmem:[%s1065_s25 + $0x18] sm:$0xff]  ;;  %v934_v22 = vld [vmem:[%s1065_s25 + $0x10] sm:$0xff] }
  0x14   : > { %467 = vmatpush.bf16.msra.mxu0 %v938_v4  ;;  %v944_v13 = vld [vmem:[%s1065_s25 + $0x60] sm:$0xff]  ;;  %v943_v18 = vld [vmem:[%s1065_s25 + $0x58] sm:$0xff]  ;;  %v942_v23 = vld [vmem:[%s1065_s25 + $0x50] sm:$0xff] }
  0x15   : > { %480 = vmatpush.bf16.msra.mxu1 %v946_v5  ;;  %v327_v14 = vld [vmem:[%s300_s7] sm:$0x3]  ;;  %v951_v19 = vld [vmem:[%s1070_s28 + $0x18] sm:$0xff]  ;;  %v950_v26 = vld [vmem:[%s1070_s28 + $0x10] sm:$0xff] }
  0x16   : > { %635 = vmatpush.bf16.msra.mxu2 %v954_v6  ;;  %v952_v15 = vld [vmem:[%s1070_s28 + $0x20] sm:$0xff]  ;;  %365 = vst [vmem:[#allocation1] ss:$9 sm:$0xff] %v327_v14  ;;  %v959_v20 = vld [vmem:[%s1070_s28 + $0x58] sm:$0xff]  ;;  %v958_v27 = vld [vmem:[%s1070_s28 + $0x50] sm:$0xff] }
  0x17   : > { %648 = vmatpush.bf16.msra.mxu3 %v962_v7  ;;  %v960_v16 = vld [vmem:[%s1070_s28 + $0x60] sm:$0xff]  ;;  %v933_v28 = vld [vmem:[%s1065_s25 + $0x8] sm:$0xff] }
  0x18   : > { %468 = vmatpush.bf16.msra.mxu0 %v937_v8  ;;  %v495_v21 = vld [vmem:[%s308_s10] sm:$0x3]  ;;  %v941_v29 = vld [vmem:[%s1065_s25 + $0x48] sm:$0xff] }
  0x19   : > { %481 = vmatpush.bf16.msra.mxu1 %v945_v9  ;;  %v949_v30 = vld [vmem:[%s1070_s28 + $0x8] sm:$0xff]  ;;  %v932_v32 = vld [vmem:[%s1065_s25] sm:$0xff] }
  0x1a   : > { %636 = vmatpush.bf16.msra.mxu2 %v953_v10  ;;  %v957_v31 = vld [vmem:[%s1070_s28 + $0x48] sm:$0xff]  ;;  %v940_v33 = vld [vmem:[%s1065_s25 + $0x40] sm:$0xff] }
  0x1b   : > { %649 = vmatpush.bf16.msra.mxu3 %v961_v11  ;;  %v948_v34 = vld [vmem:[%s1070_s28] sm:$0xff] }
  0x1c   : > { %469 = vmatpush.bf16.msra.mxu0 %v936_v12  ;;  %v956_v35 = vld [vmem:[%s1070_s28 + $0x40] sm:$0xff] }
  0x1d   : > { %482 = vmatpush.bf16.msra.mxu1 %v944_v13  ;;  %v366_v24 = vld [vmem:[#allocation1] sm:$0xff]  ;;  %v367_v25 = vld [vmem:[#allocation1 + $0x9] sm:$0xff] }
  0x1e   : > { %637 = vmatpush.bf16.msra.mxu2 %v952_v15  ;;  %533 = vst [vmem:[#allocation1] ss:$9 sm:$0xff] %v495_v21 }
  0x1f   : > { %650 = vmatpush.bf16.msra.mxu3 %v960_v16 }
  0x20   : > { %470 = vmatpush.bf16.msra.mxu0 %v935_v17 }
  0x21   : > { %483 = vmatpush.bf16.msra.mxu1 %v943_v18 }
  0x22   : > { %638 = vmatpush.bf16.msra.mxu2 %v951_v19 }
  0x23   : > { %651 = vmatpush.bf16.msra.mxu3 %v959_v20 }
  0x24   : > { %471 = vmatpush.bf16.msra.mxu0 %v934_v22 }
  0x25   : > { %484 = vmatpush.bf16.msra.mxu1 %v942_v23  ;;  %v534_v36 = vld [vmem:[#allocation1] sm:$0xff]  ;;  %v535_v37 = vld [vmem:[#allocation1 + $0x9] sm:$0xff] }
  0x26   : > { %639 = vmatpush.bf16.msra.mxu2 %v950_v26 }
  0x27   : > { %652 = vmatpush.bf16.msra.mxu3 %v958_v27 }
  0x28   : > { %472 = vmatpush.bf16.msra.mxu0 %v933_v28 }
  0x29   : > { %485 = vmatpush.bf16.msra.mxu1 %v941_v29 }
  0x2a   : > { %640 = vmatpush.bf16.msra.mxu2 %v949_v30 }
  0x2b   : > { %653 = vmatpush.bf16.msra.mxu3 %v957_v31 }
  0x2c   : > { %473 = vmatpush.bf16.msra.mxu0 %v932_v32 }
  0x2d   : > { %486 = vmatpush.bf16.msra.mxu1 %v940_v33 }
  0x2e   : > { %641 = vmatpush.bf16.msra.mxu2 %v948_v34 }
  0x2f   : > { %654 = vmatpush.bf16.msra.mxu3 %v956_v35  ;;  %474 = vmatmul.bf16.vlgmr.msra.gmra.mxu0 %v366_v24 }
  0x30   : > { %487 = vmatmul.bf16.vlgmr.msra.gmra.mxu1 %v367_v25 }
  0x31   : > { %642 = vmatmul.bf16.vlgmr.msra.gmra.mxu2 %v534_v36 }
  0x32   : > { %655 = vmatmul.bf16.vlgmr.msra.gmra.mxu3 %v535_v37 }
  0xac   : > { %v475_v39 = vpop.f32.mrf.mxu0 }
  0xad   : > { %v488_v40 = vpop.f32.mrf.mxu1  ;;  %v476_v41 = vadd.f32 %v988_v38, %v475_v39 }
  0xaf   : > { %v489_v42 = vadd.f32 %v488_v40, %v476_v41 }
  0xb1   : > { %v492_v44 = vmax.f32 %v489_v42, 0.0 }
  0xb3   : > { %v493_v45 = vpack.c.bf16 %v492_v44, %v492_v44 }
  0xb4   : > { %v643_v46 = vpop.f32.mrf.mxu2  ;;  %v477_v49 = vpop.f32.mrf.mxu0 }
  0xb5   : > { %v656_v47 = vpop.f32.mrf.mxu3  ;;  %v644_v48 = vadd.f32 %v989_v43, %v643_v46  ;;  %v490_v50 = vpop.f32.mrf.mxu1  ;;  %494 = vst [vmem:[%s326_s17] sm:$0x1] %v493_v45 }
  0xb7   : > { %v657_v51 = vadd.f32 %v656_v47, %v644_v48 }
  0xb9   : > { %v660_v52 = vmax.f32 %v657_v51, 0.0 }
  0xbb   : > { %v661_v53 = vpack.c.bf16 %v660_v52, %v660_v52 }
  0xbc   : > { %v645_v54 = vpop.f32.mrf.mxu2 }
  0xbd   : > { %v658_v55 = vpop.f32.mrf.mxu3  ;;  %662 = vst [vmem:[%s326_s17 + $0x1] sm:$0x1] %v661_v53 }
  0xbe PF: > { %s15_s20 = sadd.s32 1, %s1012_s20   ;;  %s1139_s18 = smov %s1008_s19 }
  0xbf   : > { %p12_p5 = scmp.ge.s32.totalorder %s15_s20, 4   ;;  %s1140_s19 = smov %s1142_s21 }
  0xc1   :  { %14 = sbr.rel (!%p12_p5) target bundleno = 2 (0x2), region = 79 }

// kernel: unet_forward.14
= control target key start
LH: loop header
LB: loop body
LE: loop exit
PB: predicated region body
PF: predicated region fallthrough
CT: control target
= control target key end

     0   :  { %vm655_vm0 = vcmask 516096   ;;  %s1203_s1 = inlined_call_operand.vmem [shape: bf16[1024,128], index: 1, kind: input, shape index: {}]   ;;  %s1204_s0 = inlined_call_operand.vmem [shape: bf16[2,1024], index: 0, kind: input, shape index: {}]   ;;  %s1205_s2 = inlined_call_operand.vmem [shape: f32[1,128], index: 2, kind: input, shape index: {}]   ;;  %s1206_s3 = inlined_call_operand.vmem [shape: bf16[2,64], index: 3, kind: output, shape index: {}]  }
   0x1   :  { %v924_v0 = vld [vmem:[%s1203_s1 + $0x38] sm:$0xff]  ;;  %v923_v4 = vld [vmem:[%s1203_s1 + $0x30] sm:$0xff]  ;;  %v922_v8 = vld [vmem:[%s1203_s1 + $0x28] sm:$0xff] }
   0x2   :  { %v932_v1 = vld [vmem:[%s1203_s1 + $0x78] sm:$0xff]  ;;  %549 = vmatpush.bf16.msra.mxu0 %v924_v0  ;;  %v931_v5 = vld [vmem:[%s1203_s1 + $0x70] sm:$0xff]  ;;  %v930_v9 = vld [vmem:[%s1203_s1 + $0x68] sm:$0xff] }
   0x3   :  { %v940_v2 = vld [vmem:[%s1203_s1 + $0xb8] sm:$0xff]  ;;  %562 = vmatpush.bf16.msra.mxu1 %v932_v1  ;;  %v939_v6 = vld [vmem:[%s1203_s1 + $0xb0] sm:$0xff]  ;;  %v938_v10 = vld [vmem:[%s1203_s1 + $0xa8] sm:$0xff] }
   0x4   :  { %v948_v3 = vld [vmem:[%s1203_s1 + $0xf8] sm:$0xff]  ;;  %575 = vmatpush.bf16.msra.mxu2 %v940_v2  ;;  %v947_v7 = vld [vmem:[%s1203_s1 + $0xf0] sm:$0xff]  ;;  %v946_v11 = vld [vmem:[%s1203_s1 + $0xe8] sm:$0xff] }
   0x5   :  { %588 = vmatpush.bf16.msra.mxu3 %v948_v3  ;;  %v921_v12 = vld [vmem:[%s1203_s1 + $0x20] sm:$0xff]  ;;  %v920_v17 = vld [vmem:[%s1203_s1 + $0x18] sm:$0xff]  ;;  %v919_v21 = vld [vmem:[%s1203_s1 + $0x10] sm:$0xff] }
   0x6   :  { %550 = vmatpush.bf16.msra.mxu0 %v923_v4  ;;  %v929_v13 = vld [vmem:[%s1203_s1 + $0x60] sm:$0xff]  ;;  %v928_v18 = vld [vmem:[%s1203_s1 + $0x58] sm:$0xff]  ;;  %v927_v22 = vld [vmem:[%s1203_s1 + $0x50] sm:$0xff] }
   0x7   :  { %563 = vmatpush.bf16.msra.mxu1 %v931_v5  ;;  %v937_v14 = vld [vmem:[%s1203_s1 + $0xa0] sm:$0xff]  ;;  %v936_v19 = vld [vmem:[%s1203_s1 + $0x98] sm:$0xff]  ;;  %v935_v23 = vld [vmem:[%s1203_s1 + $0x90] sm:$0xff] }
   0x8   :  { %576 = vmatpush.bf16.msra.mxu2 %v939_v6  ;;  %v945_v15 = vld [vmem:[%s1203_s1 + $0xe0] sm:$0xff]  ;;  %v944_v20 = vld [vmem:[%s1203_s1 + $0xd8] sm:$0xff]  ;;  %v943_v24 = vld [vmem:[%s1203_s1 + $0xd0] sm:$0xff] }
   0x9   :  { %589 = vmatpush.bf16.msra.mxu3 %v947_v7  ;;  %v14_v16 = vld [vmem:[%s1204_s0] sm:$0xff]  ;;  %v918_v25 = vld [vmem:[%s1203_s1 + $0x8] sm:$0xff]  ;;  %v956_v33 = vld [vmem:[%s1203_s1 + $0x138] sm:$0xff] }
   0xa   :  { %551 = vmatpush.bf16.msra.mxu0 %v922_v8  ;;  %148 = vst [vmem:[#allocation1] ss:$9 sm:$0xff] %v14_v16  ;;  %v926_v26 = vld [vmem:[%s1203_s1 + $0x48] sm:$0xff]  ;;  %v917_v29 = vld [vmem:[%s1203_s1] sm:$0xff]  ;;  %v964_v34 = vld [vmem:[%s1203_s1 + $0x178] sm:$0xff] }
   0xb   :  { %564 = vmatpush.bf16.msra.mxu1 %v930_v9  ;;  %v934_v27 = vld [vmem:[%s1203_s1 + $0x88] sm:$0xff]  ;;  %v925_v30 = vld [vmem:[%s1203_s1 + $0x40] sm:$0xff]  ;;  %v972_v35 = vld [vmem:[%s1203_s1 + $0x1b8] sm:$0xff] }
   0xc   :  { %577 = vmatpush.bf16.msra.mxu2 %v938_v10  ;;  %v942_v28 = vld [vmem:[%s1203_s1 + $0xc8] sm:$0xff]  ;;  %v933_v31 = vld [vmem:[%s1203_s1 + $0x80] sm:$0xff]  ;;  %v980_v36 = vld [vmem:[%s1203_s1 + $0x1f8] sm:$0xff] }
   0xd   :  { %590 = vmatpush.bf16.msra.mxu3 %v946_v11  ;;  %v941_v32 = vld [vmem:[%s1203_s1 + $0xc0] sm:$0xff]  ;;  %v955_v37 = vld [vmem:[%s1203_s1 + $0x130] sm:$0xff]  ;;  %v954_v45 = vld [vmem:[%s1203_s1 + $0x128] sm:$0xff] }
   0xe   :  { %552 = vmatpush.bf16.msra.mxu0 %v921_v12  ;;  %v963_v40 = vld [vmem:[%s1203_s1 + $0x170] sm:$0xff]  ;;  %v962_v46 = vld [vmem:[%s1203_s1 + $0x168] sm:$0xff]  ;;  %v953_v49 = vld [vmem:[%s1203_s1 + $0x120] sm:$0xff] }
   0xf   :  { %565 = vmatpush.bf16.msra.mxu1 %v929_v13  ;;  %v971_v43 = vld [vmem:[%s1203_s1 + $0x1b0] sm:$0xff]  ;;  %v970_v47 = vld [vmem:[%s1203_s1 + $0x1a8] sm:$0xff]  ;;  %v961_v50 = vld [vmem:[%s1203_s1 + $0x160] sm:$0xff] }
  0x10   :  { %578 = vmatpush.bf16.msra.mxu2 %v937_v14  ;;  %v979_v44 = vld [vmem:[%s1203_s1 + $0x1f0] sm:$0xff]  ;;  %v978_v48 = vld [vmem:[%s1203_s1 + $0x1e8] sm:$0xff]  ;;  %v969_v51 = vld [vmem:[%s1203_s1 + $0x1a0] sm:$0xff] }
  0x11   :  { %591 = vmatpush.bf16.msra.mxu3 %v945_v15  ;;  %v151_v38 = vld [vmem:[#allocation1 + $0x12] sm:$0xff]  ;;  %v152_v39 = vld [vmem:[#allocation1 + $0x1b] sm:$0xff]  ;;  %v150_v42 = vld [vmem:[#allocation1 + $0x9] sm:$0xff] }
  0x12   :  { %553 = vmatpush.bf16.msra.mxu0 %v920_v17  ;;  %v149_v41 = vld [vmem:[#allocation1] sm:$0xff]  ;;  %v952_v53 = vld [vmem:[%s1203_s1 + $0x118] sm:$0xff]  ;;  %v951_v57 = vld [vmem:[%s1203_s1 + $0x110] sm:$0xff] }
  0x13   :  { %566 = vmatpush.bf16.msra.mxu1 %v928_v18  ;;  %v977_v52 = vld [vmem:[%s1203_s1 + $0x1e0] sm:$0xff]  ;;  %v960_v54 = vld [vmem:[%s1203_s1 + $0x158] sm:$0xff]  ;;  %v959_v58 = vld [vmem:[%s1203_s1 + $0x150] sm:$0xff] }
  0x14   :  { %579 = vmatpush.bf16.msra.mxu2 %v936_v19  ;;  %v968_v55 = vld [vmem:[%s1203_s1 + $0x198] sm:$0xff]  ;;  %v967_v59 = vld [vmem:[%s1203_s1 + $0x190] sm:$0xff]  ;;  %v950_v61 = vld [vmem:[%s1203_s1 + $0x108] sm:$0xff] }
  0x15   :  { %592 = vmatpush.bf16.msra.mxu3 %v944_v20  ;;  %v976_v56 = vld [vmem:[%s1203_s1 + $0x1d8] sm:$0xff]  ;;  %v975_v60 = vld [vmem:[%s1203_s1 + $0x1d0] sm:$0xff]  ;;  %v958_v62 = vld [vmem:[%s1203_s1 + $0x148] sm:$0xff] }
  0x16   :  { %554 = vmatpush.bf16.msra.mxu0 %v919_v21  ;;  %v966_v63 = vld [vmem:[%s1203_s1 + $0x188] sm:$0xff]  ;;  %v949_v1 = vld [vmem:[%s1203_s1 + $0x100] sm:$0xff]  ;;  %v155_v7 = vld [vmem:[#allocation1 + $0x36] sm:$0xff] }
  0x17   :  { %567 = vmatpush.bf16.msra.mxu1 %v927_v22  ;;  %v974_v0 = vld [vmem:[%s1203_s1 + $0x1c8] sm:$0xff]  ;;  %v957_v2 = vld [vmem:[%s1203_s1 + $0x140] sm:$0xff] }
  0x18   :  { %580 = vmatpush.bf16.msra.mxu2 %v935_v23  ;;  %v965_v3 = vld [vmem:[%s1203_s1 + $0x180] sm:$0xff]  ;;  %v154_v6 = vld [vmem:[#allocation1 + $0x2d] sm:$0xff] }
  0x19   :  { %593 = vmatpush.bf16.msra.mxu3 %v943_v24  ;;  %v973_v4 = vld [vmem:[%s1203_s1 + $0x1c0] sm:$0xff] }
  0x1a   :  { %555 = vmatpush.bf16.msra.mxu0 %v918_v25  ;;  %v153_v5 = vld [vmem:[#allocation1 + $0x24] sm:$0xff]  ;;  %v981_v15 = vld [vmem:[%s1205_s2] ss:$0 sm:$0xff] }
  0x1b   :  { %568 = vmatpush.bf16.msra.mxu1 %v926_v26  ;;  %v156_v8 = vld [vmem:[#allocation1 + $0x3f] sm:$0xff] }
  0x1c   :  { %581 = vmatpush.bf16.msra.mxu2 %v934_v27 }
  0x1d   :  { %594 = vmatpush.bf16.msra.mxu3 %v942_v28 }
  0x1e   :  { %556 = vmatpush.bf16.msra.mxu0 %v917_v29 }
  0x1f   :  { %569 = vmatpush.bf16.msra.mxu1 %v925_v30 }
  0x20   :  { %582 = vmatpush.bf16.msra.mxu2 %v933_v31 }
  0x21   :  { %595 = vmatpush.bf16.msra.mxu3 %v941_v32  ;;  %557 = vmatmul.bf16.vlgmr.msra.gmra.mxu0 %v149_v41 }
  0x22   :  { %601 = vmatpush.bf16.msrb.mxu0 %v956_v33  ;;  %570 = vmatmul.bf16.vlgmr.msra.gmra.mxu1 %v150_v42 }
  0x23   :  { %614 = vmatpush.bf16.msrb.mxu1 %v964_v34  ;;  %583 = vmatmul.bf16.vlgmr.msra.gmra.mxu2 %v151_v38 }
  0x24   :  { %627 = vmatpush.bf16.msrb.mxu2 %v972_v35  ;;  %596 = vmatmul.bf16.vlgmr.msra.gmra.mxu3 %v152_v39 }
  0x25   :  { %640 = vmatpush.bf16.msrb.mxu3 %v980_v36 }
  0x26   :  { %602 = vmatpush.bf16.msrb.mxu0 %v955_v37 }
  0x27   :  { %615 = vmatpush.bf16.msrb.mxu1 %v963_v40 }
  0x28   :  { %628 = vmatpush.bf16.msrb.mxu2 %v971_v43 }
  0x29   :  { %641 = vmatpush.bf16.msrb.mxu3 %v979_v44 }
  0x2a   :  { %603 = vmatpush.bf16.msrb.mxu0 %v954_v45 }
  0x2b   :  { %616 = vmatpush.bf16.msrb.mxu1 %v962_v46 }
  0x2c   :  { %629 = vmatpush.bf16.msrb.mxu2 %v970_v47 }
  0x2d   :  { %642 = vmatpush.bf16.msrb.mxu3 %v978_v48 }
  0x2e   :  { %604 = vmatpush.bf16.msrb.mxu0 %v953_v49 }
  0x2f   :  { %617 = vmatpush.bf16.msrb.mxu1 %v961_v50 }
  0x30   :  { %630 = vmatpush.bf16.msrb.mxu2 %v969_v51 }
  0x31   :  { %643 = vmatpush.bf16.msrb.mxu3 %v977_v52 }
  0x32   :  { %605 = vmatpush.bf16.msrb.mxu0 %v952_v53 }
  0x33   :  { %618 = vmatpush.bf16.msrb.mxu1 %v960_v54 }
  0x34   :  { %631 = vmatpush.bf16.msrb.mxu2 %v968_v55 }
  0x35   :  { %644 = vmatpush.bf16.msrb.mxu3 %v976_v56 }
  0x36   :  { %606 = vmatpush.bf16.msrb.mxu0 %v951_v57 }
  0x37   :  { %619 = vmatpush.bf16.msrb.mxu1 %v959_v58 }
  0x38   :  { %632 = vmatpush.bf16.msrb.mxu2 %v967_v59 }
  0x39   :  { %645 = vmatpush.bf16.msrb.mxu3 %v975_v60 }
  0x3a   :  { %607 = vmatpush.bf16.msrb.mxu0 %v950_v61 }
  0x3b   :  { %620 = vmatpush.bf16.msrb.mxu1 %v958_v62 }
  0x3c   :  { %633 = vmatpush.bf16.msrb.mxu2 %v966_v63 }
  0x3d   :  { %646 = vmatpush.bf16.msrb.mxu3 %v974_v0 }
  0x3e   :  { %608 = vmatpush.bf16.msrb.mxu0 %v949_v1 }
  0x3f   :  { %621 = vmatpush.bf16.msrb.mxu1 %v957_v2 }
  0x40   :  { %634 = vmatpush.bf16.msrb.mxu2 %v965_v3 }
  0x41   :  { %647 = vmatpush.bf16.msrb.mxu3 %v973_v4  ;;  %609 = vmatmul.bf16.vlgmr.msrb.gmra.mxu0 %v153_v5 }
  0x42   :  { %622 = vmatmul.bf16.vlgmr.msrb.gmra.mxu1 %v154_v6 }
  0x43   :  { %635 = vmatmul.bf16.vlgmr.msrb.gmra.mxu2 %v155_v7 }
  0x44   :  { %648 = vmatmul.bf16.vlgmr.msrb.gmra.mxu3 %v156_v8 }
  0x9e   :  { %v558_v9 = vpop.f32.mrf.mxu0 }
  0x9f   :  { %v571_v10 = vpop.f32.mrf.mxu1  ;;  %v559_v18 = vadd.f32 %v981_v15, %v558_v9 }
  0xa1   :  { %v572_v19 = vadd.f32 %v571_v10, %v559_v18 }
  0xa6   :  { %v584_v11 = vpop.f32.mrf.mxu2  ;;  %v560_v13 = vpop.f32.mrf.mxu0 }
  0xa7   :  { %v597_v12 = vpop.f32.mrf.mxu3  ;;  %v573_v14 = vpop.f32.mrf.mxu1  ;;  %v585_v20 = vadd.f32 %v584_v11, %v572_v19 }
  0xa9   :  { %v598_v21 = vadd.f32 %v597_v12, %v585_v20 }
  0xae   :  { %v586_v16 = vpop.f32.mrf.mxu2 }
  0xaf   :  { %v599_v17 = vpop.f32.mrf.mxu3 }
  0xbe   :  { %v610_v22 = vpop.f32.mrf.mxu0 }
  0xbf   :  { %v623_v23 = vpop.f32.mrf.mxu1  ;;  %v611_v24 = vadd.f32 %v610_v22, %v598_v21 }
  0xc1   :  { %v624_v25 = vadd.f32 %v623_v23, %v611_v24 }
  0xc6   :  { %v636_v26 = vpop.f32.mrf.mxu2  ;;  %v612_v29 = vpop.f32.mrf.mxu0 }
  0xc7   :  { %v649_v27 = vpop.f32.mrf.mxu3  ;;  %v637_v28 = vadd.f32 %v636_v26, %v624_v25  ;;  %v625_v30 = vpop.f32.mrf.mxu1 }
  0xc9   :  { %v650_v31 = vadd.f32 %v649_v27, %v637_v28 }
  0xcb   :  { %v653_v32 = vmax.f32 %v650_v31, 0.0 }
  0xcd   :  { %v654_v33 = vpack.c.bf16 %v653_v32, %v653_v32 }
  0xce   :  { %v638_v34 = vpop.f32.mrf.mxu2 }
  0xcf   :  { %v651_v35 = vpop.f32.mrf.mxu3  ;;  %656 = vst.msk [vmem:[%s1206_s3] sm:$0x1] %vm655_vm0, %v654_v33 }

// kernel: unet_forward.16
= control target key start
LH: loop header
LB: loop body
LE: loop exit
PB: predicated region body
PF: predicated region fallthrough
CT: control target
= control target key end

     0   :  { %s1870_s30 = smov 0   ;;  %s1872_s10 = smov 0   ;;  %s2019_s0 = inlined_call_operand.vmem [shape: bf16[2,8,256], index: 0, kind: input, shape index: {}]   ;;  %s2020_s1 = inlined_call_operand.vmem [shape: bf16[2,8,256], index: 1, kind: input, shape index: {}]   ;;  %s2021_s2 = inlined_call_operand.vmem [shape: bf16[2,8,256], index: 2, kind: input, shape index: {}]   ;;  %s2022_s3 = inlined_call_operand.vmem [shape: bf16[2,8,256], index: 3, kind: input, shape index: {}]   ;;  %s2023_s4 = inlined_call_operand.vmem [shape: bf16[2,256,128], index: 4, kind: input, shape index: {}]   ;;  %s2024_s5 = inlined_call_operand.vmem [shape: bf16[2,256,128], index: 5, kind: input, shape index: {}]   ;;  %s2025_s6 = inlined_call_operand.vmem [shape: bf16[2,256,128], index: 6, kind: input, shape index: {}]   ;;  %s2026_s7 = inlined_call_operand.vmem [shape: bf16[2,256,128], index: 7, kind: input, shape index: {}]   ;;  %s2027_s8 = inlined_call_operand.vmem [shape: f32[1,128], index: 8, kind: input, shape index: {}]   ;;  %s2028_s9 = inlined_call_operand.vmem [shape: bf16[2,8,256], index: 9, kind: output, shape index: {}]  }
   0x1   :  { %s1874_s11 = smov 0  }
   0x2 LB: > { %s31_s12 = sadd.s32 1, %s1814_s10  ;;  %p1420_p0 = scmp.ge.s32.totalorder %s1818_s11, 1  ;;  %s1818_s11 = sphi %s1874_s11, %s19_s11   ;;  %s1814_s10 = sphi %s1872_s10, %s2030_s10   ;;  %s1810_s30 = sphi %s1870_s30, %s2029_s30  }
   0x3   : > { %p33_p1 = scmp.ge.s32.totalorder %s31_s12, 2  ;;  %p395_p2 = scmp.lt.s32.totalorder %s1818_s11, 3 }
   0x5   : > { %s2032_s12 = smov (%p33_p1, %s31_s12), 0  ;;  %p396_p3 = pnand %p1420_p0, %p395_p2 }
   0x6   : > { %p486_p4 = scmp.lt.s32.totalorder (!%p396_p3), %s1810_s30, 1 }
   0x7   : > { %399 = sbr.rel (%p396_p3) target bundleno = 224 (0xe0), region = 56 }
   0xc   : > { %s2034_s30 = smov (!%p486_p4, %s1810_s30), 1 }
   0xd   : > { %s1891_s13 = sshll.u32 %s2034_s30, 7  ;;  %s1926_s20 = sshll.u32 %s2034_s30, 3 }
   0xe   : > { %s1897_s16 = scalar_lea.vmem %s2023_s4, %s1891_s13  ;;  %s1903_s19 = scalar_lea.vmem %s2025_s6, %s1891_s13 }
   0xf   : > { %v1729_v0 = vld [vmem:[%s1897_s16 + $0x38] sm:$0xff]  ;;  %v1728_v4 = vld [vmem:[%s1897_s16 + $0x30] sm:$0xff]  ;;  %v1727_v8 = vld [vmem:[%s1897_s16 + $0x28] sm:$0xff]  ;;  %s494_s23 = scalar_lea.vmem %s2019_s0, %s1926_s20  ;;  %s512_s26 = scalar_lea.vmem %s2021_s2, %s1926_s20 }
  0x10   : > { %v1737_v1 = vld [vmem:[%s1897_s16 + $0x78] sm:$0xff]  ;;  %719 = vmatpush.bf16.msra.mxu0 %v1729_v0  ;;  %v1736_v5 = vld [vmem:[%s1897_s16 + $0x70] sm:$0xff]  ;;  %v1735_v9 = vld [vmem:[%s1897_s16 + $0x68] sm:$0xff]  ;;  %s1948_s29 = scalar_lea.vmem %s2024_s5, %s1891_s13  ;;  %s1956_s15 = scalar_lea.vmem %s2026_s7, %s1891_s13 }
  0x11   : > { %v1713_v2 = vld [vmem:[%s1903_s19 + $0x38] sm:$0xff]  ;;  %732 = vmatpush.bf16.msra.mxu1 %v1737_v1  ;;  %v1712_v6 = vld [vmem:[%s1903_s19 + $0x30] sm:$0xff]  ;;  %v1711_v10 = vld [vmem:[%s1903_s19 + $0x28] sm:$0xff]  ;;  %s503_s17 = scalar_lea.vmem %s2020_s1, %s1926_s20  ;;  %s521_s21 = scalar_lea.vmem %s2022_s3, %s1926_s20 }
  0x12   : > { %v1721_v3 = vld [vmem:[%s1903_s19 + $0x78] sm:$0xff]  ;;  %848 = vmatpush.bf16.msra.mxu2 %v1713_v2  ;;  %v1720_v7 = vld [vmem:[%s1903_s19 + $0x70] sm:$0xff]  ;;  %v1719_v11 = vld [vmem:[%s1903_s19 + $0x68] sm:$0xff] }
  0x13   : > { %861 = vmatpush.bf16.msra.mxu3 %v1721_v3  ;;  %v1726_v12 = vld [vmem:[%s1897_s16 + $0x20] sm:$0xff]  ;;  %v1725_v16 = vld [vmem:[%s1897_s16 + $0x18] sm:$0xff]  ;;  %v1724_v20 = vld [vmem:[%s1897_s16 + $0x10] sm:$0xff] }
  0x14   : > { %720 = vmatpush.bf16.msra.mxu0 %v1728_v4  ;;  %v1734_v13 = vld [vmem:[%s1897_s16 + $0x60] sm:$0xff]  ;;  %v1733_v17 = vld [vmem:[%s1897_s16 + $0x58] sm:$0xff]  ;;  %v1732_v21 = vld [vmem:[%s1897_s16 + $0x50] sm:$0xff] }
  0x15   : > { %733 = vmatpush.bf16.msra.mxu1 %v1736_v5  ;;  %v1710_v14 = vld [vmem:[%s1903_s19 + $0x20] sm:$0xff]  ;;  %v1709_v18 = vld [vmem:[%s1903_s19 + $0x18] sm:$0xff]  ;;  %v1708_v22 = vld [vmem:[%s1903_s19 + $0x10] sm:$0xff] }
  0x16   : > { %849 = vmatpush.bf16.msra.mxu2 %v1712_v6  ;;  %v1718_v15 = vld [vmem:[%s1903_s19 + $0x60] sm:$0xff]  ;;  %v1717_v19 = vld [vmem:[%s1903_s19 + $0x58] sm:$0xff]  ;;  %v1716_v23 = vld [vmem:[%s1903_s19 + $0x50] sm:$0xff] }
  0x17   : > { %862 = vmatpush.bf16.msra.mxu3 %v1720_v7  ;;  %v584_v24 = vld [vmem:[%s494_s23] sm:$0xff]  ;;  %v1723_v25 = vld [vmem:[%s1897_s16 + $0x8] sm:$0xff]  ;;  %v1761_v40 = vld [vmem:[%s1948_s29 + $0x38] sm:$0xff] }
  0x18   : > { %721 = vmatpush.bf16.msra.mxu0 %v1727_v8  ;;  %v1731_v26 = vld [vmem:[%s1897_s16 + $0x48] sm:$0xff]  ;;  %v551_v29 = vld [vmem:[%s512_s26] sm:$0xff]  ;;  %v585_v30 = vunpack.c.l.bf16 %v584_v24  ;;  %v586_v31 = vunpack.c.h.bf16 %v584_v24  ;;  %v1769_v41 = vld [vmem:[%s1948_s29 + $0x78] sm:$0xff]  ;;  %s550_s26 = scalar_lea.vmem %s2028_s9, %s1926_s20 }
  0x19   : > { %734 = vmatpush.bf16.msra.mxu1 %v1735_v9  ;;  %v1707_v27 = vld [vmem:[%s1903_s19 + $0x8] sm:$0xff]  ;;  %v1722_v32 = vld [vmem:[%s1897_s16] sm:$0xff]  ;;  %v746_v34 = vunpack.c.l.b16 %v551_v29  ;;  %v747_v35 = vunpack.c.h.b16 %v551_v29  ;;  %v1745_v42 = vld [vmem:[%s1956_s15 + $0x38] sm:$0xff] }
  0x1a   : > { %850 = vmatpush.bf16.msra.mxu2 %v1711_v10  ;;  %v1715_v28 = vld [vmem:[%s1903_s19 + $0x48] sm:$0xff]  ;;  %v1730_v33 = vld [vmem:[%s1897_s16 + $0x40] sm:$0xff]  ;;  %v587_v38 = vmax.f32 %v585_v30, 0.0  ;;  %v588_v39 = vmax.f32 %v586_v31, 0.0  ;;  %v1753_v43 = vld [vmem:[%s1956_s15 + $0x78] sm:$0xff] }
  0x1b   : > { %863 = vmatpush.bf16.msra.mxu3 %v1719_v11  ;;  %v1706_v36 = vld [vmem:[%s1903_s19] sm:$0xff]  ;;  %v748_v44 = vpack.c.b16 %v746_v34, %v746_v34  ;;  %v749_v45 = vpack.c.b16 %v747_v35, %v747_v35  ;;  %v1760_v48 = vld [vmem:[%s1948_s29 + $0x30] sm:$0xff]  ;;  %v1759_v52 = vld [vmem:[%s1948_s29 + $0x28] sm:$0xff] }
  0x1c   : > { %722 = vmatpush.bf16.msra.mxu0 %v1726_v12  ;;  %v1714_v37 = vld [vmem:[%s1903_s19 + $0x40] sm:$0xff]  ;;  %v589_v46 = vpack.c.bf16 %v587_v38, %v587_v38  ;;  %v590_v47 = vpack.c.bf16 %v588_v39, %v588_v39  ;;  %v1768_v49 = vld [vmem:[%s1948_s29 + $0x70] sm:$0xff]  ;;  %v1767_v53 = vld [vmem:[%s1948_s29 + $0x68] sm:$0xff] }
  0x1d   : > { %735 = vmatpush.bf16.msra.mxu1 %v1734_v13  ;;  %v1744_v50 = vld [vmem:[%s1956_s15 + $0x30] sm:$0xff]  ;;  %v1743_v54 = vld [vmem:[%s1956_s15 + $0x28] sm:$0xff]  ;;  %v1758_v56 = vld [vmem:[%s1948_s29 + $0x20] sm:$0xff] }
  0x1e   : > { %851 = vmatpush.bf16.msra.mxu2 %v1710_v14  ;;  %v1752_v51 = vld [vmem:[%s1956_s15 + $0x70] sm:$0xff]  ;;  %v1751_v55 = vld [vmem:[%s1956_s15 + $0x68] sm:$0xff]  ;;  %v1766_v57 = vld [vmem:[%s1948_s29 + $0x60] sm:$0xff] }
  0x1f   : > { %864 = vmatpush.bf16.msra.mxu3 %v1718_v15  ;;  %v1742_v58 = vld [vmem:[%s1956_s15 + $0x20] sm:$0xff]  ;;  %v1757_v60 = vld [vmem:[%s1948_s29 + $0x18] sm:$0xff]  ;;  %v1756_v0 = vld [vmem:[%s1948_s29 + $0x10] sm:$0xff] }
  0x20   : > { %723 = vmatpush.bf16.msra.mxu0 %v1725_v16  ;;  %v1750_v59 = vld [vmem:[%s1956_s15 + $0x60] sm:$0xff]  ;;  %v1765_v61 = vld [vmem:[%s1948_s29 + $0x58] sm:$0xff]  ;;  %v1764_v1 = vld [vmem:[%s1948_s29 + $0x50] sm:$0xff] }
  0x21   : > { %736 = vmatpush.bf16.msra.mxu1 %v1733_v17  ;;  %v1741_v62 = vld [vmem:[%s1956_s15 + $0x18] sm:$0xff]  ;;  %v915_v2 = vld [vmem:[%s503_s17] sm:$0xff]  ;;  %v1740_v3 = vld [vmem:[%s1956_s15 + $0x10] sm:$0xff] }
  0x22   : > { %852 = vmatpush.bf16.msra.mxu2 %v1709_v18  ;;  %v1749_v63 = vld [vmem:[%s1956_s15 + $0x58] sm:$0xff]  ;;  %v1748_v4 = vld [vmem:[%s1956_s15 + $0x50] sm:$0xff]  ;;  %v916_v5 = vunpack.c.l.bf16 %v915_v2  ;;  %v917_v6 = vunpack.c.h.bf16 %v915_v2  ;;  %v1755_v7 = vld [vmem:[%s1948_s29 + $0x8] sm:$0xff] }
  0x23   : > { %865 = vmatpush.bf16.msra.mxu3 %v1717_v19  ;;  %v1763_v8 = vld [vmem:[%s1948_s29 + $0x48] sm:$0xff]  ;;  %v882_v11 = vld [vmem:[%s521_s21] sm:$0xff] }
  0x24   : > { %724 = vmatpush.bf16.msra.mxu0 %v1724_v20  ;;  %v1739_v9 = vld [vmem:[%s1956_s15 + $0x8] sm:$0xff]  ;;  %v918_v12 = vmax.f32 %v916_v5, 0.0  ;;  %v919_v13 = vmax.f32 %v917_v6, 0.0  ;;  %v1754_v14 = vld [vmem:[%s1948_s29] sm:$0xff]  ;;  %v1077_v16 = vunpack.c.l.b16 %v882_v11  ;;  %v1078_v17 = vunpack.c.h.b16 %v882_v11 }
  0x25   : > { %737 = vmatpush.bf16.msra.mxu1 %v1732_v21  ;;  %v1747_v10 = vld [vmem:[%s1956_s15 + $0x48] sm:$0xff]  ;;  %v1762_v15 = vld [vmem:[%s1948_s29 + $0x40] sm:$0xff] }
  0x26   : > { %853 = vmatpush.bf16.msra.mxu2 %v1708_v22  ;;  %v1738_v18 = vld [vmem:[%s1956_s15] sm:$0xff]  ;;  %v920_v20 = vpack.c.bf16 %v918_v12, %v918_v12  ;;  %v921_v21 = vpack.c.bf16 %v919_v13, %v919_v13  ;;  %v1079_v22 = vpack.c.b16 %v1077_v16, %v1077_v16 }
  0x27   : > { %866 = vmatpush.bf16.msra.mxu3 %v1716_v23  ;;  %v1746_v19 = vld [vmem:[%s1956_s15 + $0x40] sm:$0xff]  ;;  %v1080_v23 = vpack.c.b16 %v1078_v17, %v1078_v17 }
  0x28   : > { %725 = vmatpush.bf16.msra.mxu0 %v1723_v25  ;;  %v1794_v30 = vld [vmem:[%s2027_s8] ss:$0 sm:$0xff] }
  0x29   : > { %738 = vmatpush.bf16.msra.mxu1 %v1731_v26 }
  0x2a   : > { %854 = vmatpush.bf16.msra.mxu2 %v1707_v27 }
  0x2b   : > { %867 = vmatpush.bf16.msra.mxu3 %v1715_v28 }
  0x2c   : > { %726 = vmatpush.bf16.msra.mxu0 %v1722_v32 }
  0x2d   : > { %739 = vmatpush.bf16.msra.mxu1 %v1730_v33 }
  0x2e   : > { %855 = vmatpush.bf16.msra.mxu2 %v1706_v36 }
  0x2f   : > { %868 = vmatpush.bf16.msra.mxu3 %v1714_v37  ;;  %727 = vmatmul.bf16.vlgmr.msra.gmra.mxu0 %v589_v46 }
  0x30   : > { %1050 = vmatpush.bf16.msrb.mxu0 %v1761_v40  ;;  %740 = vmatmul.bf16.vlgmr.msra.gmra.mxu1 %v590_v47 }
  0x31   : > { %1063 = vmatpush.bf16.msrb.mxu1 %v1769_v41  ;;  %856 = vmatmul.bf16.vlgmr.msra.gmra.mxu2 %v748_v44 }
  0x32   : > { %1179 = vmatpush.bf16.msrb.mxu2 %v1745_v42  ;;  %869 = vmatmul.bf16.vlgmr.msra.gmra.mxu3 %v749_v45  ;;  %v1795_v45 = vld [vmem:[%s2027_s8] ss:$0 sm:$0xff] }
  0x33   : > { %1192 = vmatpush.bf16.msrb.mxu3 %v1753_v43 }
  0x34   : > { %1051 = vmatpush.bf16.msrb.mxu0 %v1760_v48 }
  0x35   : > { %1064 = vmatpush.bf16.msrb.mxu1 %v1768_v49 }
  0x36   : > { %1180 = vmatpush.bf16.msrb.mxu2 %v1744_v50 }
  0x37   : > { %1193 = vmatpush.bf16.msrb.mxu3 %v1752_v51 }
  0x38   : > { %1052 = vmatpush.bf16.msrb.mxu0 %v1759_v52 }
  0x39   : > { %1065 = vmatpush.bf16.msrb.mxu1 %v1767_v53 }
  0x3a   : > { %1181 = vmatpush.bf16.msrb.mxu2 %v1743_v54 }
  0x3b   : > { %1194 = vmatpush.bf16.msrb.mxu3 %v1751_v55 }
  0x3c   : > { %1053 = vmatpush.bf16.msrb.mxu0 %v1758_v56 }
  0x3d   : > { %1066 = vmatpush.bf16.msrb.mxu1 %v1766_v57 }
  0x3e   : > { %1182 = vmatpush.bf16.msrb.mxu2 %v1742_v58 }
  0x3f   : > { %1195 = vmatpush.bf16.msrb.mxu3 %v1750_v59 }
  0x40   : > { %1054 = vmatpush.bf16.msrb.mxu0 %v1757_v60 }
  0x41   : > { %1067 = vmatpush.bf16.msrb.mxu1 %v1765_v61 }
  0x42   : > { %1183 = vmatpush.bf16.msrb.mxu2 %v1741_v62 }
  0x43   : > { %1196 = vmatpush.bf16.msrb.mxu3 %v1749_v63 }
  0x44   : > { %1055 = vmatpush.bf16.msrb.mxu0 %v1756_v0 }
  0x45   : > { %1068 = vmatpush.bf16.msrb.mxu1 %v1764_v1 }
  0x46   : > { %1184 = vmatpush.bf16.msrb.mxu2 %v1740_v3 }
  0x47   : > { %1197 = vmatpush.bf16.msrb.mxu3 %v1748_v4 }
  0x48   : > { %1056 = vmatpush.bf16.msrb.mxu0 %v1755_v7 }
  0x49   : > { %1069 = vmatpush.bf16.msrb.mxu1 %v1763_v8 }
  0x4a   : > { %1185 = vmatpush.bf16.msrb.mxu2 %v1739_v9 }
  0x4b   : > { %1198 = vmatpush.bf16.msrb.mxu3 %v1747_v10 }
  0x4c   : > { %1057 = vmatpush.bf16.msrb.mxu0 %v1754_v14 }
  0x4d   : > { %1070 = vmatpush.bf16.msrb.mxu1 %v1762_v15 }
  0x4e   : > { %1186 = vmatpush.bf16.msrb.mxu2 %v1738_v18 }
  0x4f   : > { %1199 = vmatpush.bf16.msrb.mxu3 %v1746_v19  ;;  %1058 = vmatmul.bf16.vlgmr.msrb.gmra.mxu0 %v920_v20 }
  0x50   : > { %1071 = vmatmul.bf16.vlgmr.msrb.gmra.mxu1 %v921_v21 }
  0x51   : > { %1187 = vmatmul.bf16.vlgmr.msrb.gmra.mxu2 %v1079_v22 }
  0x52   : > { %1200 = vmatmul.bf16.vlgmr.msrb.gmra.mxu3 %v1080_v23 }
  0xac   : > { %v728_v24 = vpop.f32.mrf.mxu0 }
  0xad   : > { %v741_v25 = vpop.f32.mrf.mxu1 }
  0xae   : > { %v742_v26 = vadd.f32 %v741_v25, %v728_v24 }
  0xb4   : > { %v857_v27 = vpop.f32.mrf.mxu2  ;;  %v730_v32 = vpop.f32.mrf.mxu0 }
  0xb5   : > { %v870_v28 = vpop.f32.mrf.mxu3  ;;  %v858_v29 = vadd.f32 %v857_v27, %v742_v26  ;;  %v743_v33 = vpop.f32.mrf.mxu1 }
  0xb7   : > { %v871_v31 = vadd.f32 %v870_v28, %v858_v29 }
  0xb9   : > { %v878_v34 = vadd.f32 %v1794_v30, %v871_v31 }
  0xbb   : > { %v879_v35 = vmax.f32 %v878_v34, 0.0 }
  0xbc   : > { %v859_v36 = vpop.f32.mrf.mxu2 }
  0xbd   : > { %v872_v37 = vpop.f32.mrf.mxu3  ;;  %v880_v38 = vpack.c.bf16 %v879_v35, %v879_v35 }
  0xbf   : > { %881 = vst [vmem:[%s550_s26] sm:$0xf] %v880_v38 }
  0xcc   : > { %v1059_v39 = vpop.f32.mrf.mxu0 }
  0xcd   : > { %v1072_v40 = vpop.f32.mrf.mxu1 }
  0xce   : > { %v1073_v41 = vadd.f32 %v1072_v40, %v1059_v39 }
  0xd4   : > { %v1188_v42 = vpop.f32.mrf.mxu2  ;;  %v1061_v46 = vpop.f32.mrf.mxu0 }
  0xd5   : > { %v1201_v43 = vpop.f32.mrf.mxu3  ;;  %v1189_v44 = vadd.f32 %v1188_v42, %v1073_v41  ;;  %v1074_v47 = vpop.f32.mrf.mxu1 }
  0xd7   : > { %v1202_v48 = vadd.f32 %v1201_v43, %v1189_v44 }
  0xd9   : > { %v1209_v49 = vadd.f32 %v1795_v45, %v1202_v48 }
  0xdb   : > { %v1210_v50 = vmax.f32 %v1209_v49, 0.0 }
  0xdc   : > { %v1190_v51 = vpop.f32.mrf.mxu2 }
  0xdd   : > { %v1203_v52 = vpop.f32.mrf.mxu3  ;;  %v1211_v53 = vpack.c.bf16 %v1210_v50, %v1210_v50 }
  0xdf   : > { %1212 = vst [vmem:[%s550_s26 + $0x4] sm:$0xf] %v1211_v53 }
  0xe0 PF: > { %s19_s11 = sadd.s32 1, %s1818_s11   ;;  %s2029_s30 = smov %s1814_s10 }
  0xe1   : > { %p16_p5 = scmp.ge.s32.totalorder %s19_s11, 4   ;;  %s2030_s10 = smov %s2032_s12 }
  0xe3   :  { %18 = sbr.rel (!%p16_p5) target bundleno = 2 (0x2), region = 107 }

// kernel: unet_forward.17
= control target key start
LH: loop header
LB: loop body
LE: loop exit
PB: predicated region body
PF: predicated region fallthrough
CT: control target
= control target key end

     0   :  { %s1521_s30 = smov 0   ;;  %s1523_s10 = smov 0   ;;  %s1654_s0 = inlined_call_operand.vmem [shape: bf16[2,32,128], index: 0, kind: input, shape index: {}]   ;;  %s1655_s1 = inlined_call_operand.vmem [shape: bf16[2,32,128], index: 1, kind: input, shape index: {}]   ;;  %s1656_s2 = inlined_call_operand.vmem [shape: bf16[2,32,128], index: 2, kind: input, shape index: {}]   ;;  %s1657_s3 = inlined_call_operand.vmem [shape: bf16[2,32,128], index: 3, kind: input, shape index: {}]   ;;  %s1658_s4 = inlined_call_operand.vmem [shape: bf16[2,128,128], index: 4, kind: input, shape index: {}]   ;;  %s1659_s5 = inlined_call_operand.vmem [shape: bf16[2,128,128], index: 5, kind: input, shape index: {}]   ;;  %s1660_s6 = inlined_call_operand.vmem [shape: bf16[2,128,128], index: 6, kind: input, shape index: {}]   ;;  %s1661_s7 = inlined_call_operand.vmem [shape: bf16[2,128,128], index: 7, kind: input, shape index: {}]   ;;  %s1662_s8 = inlined_call_operand.vmem [shape: f32[1,128], index: 8, kind: input, shape index: {}]   ;;  %s1663_s9 = inlined_call_operand.vmem [shape: bf16[2,32,256], index: 9, kind: output, shape index: {}]  }
   0x1   :  { %s1525_s11 = smov 0  }
   0x2 LB: > { %s31_s12 = sadd.s32 1, %s1465_s10  ;;  %p1193_p0 = scmp.ge.s32.totalorder %s1469_s11, 1  ;;  %s1469_s11 = sphi %s1525_s11, %s19_s11   ;;  %s1465_s10 = sphi %s1523_s10, %s1665_s10   ;;  %s1461_s30 = sphi %s1521_s30, %s1664_s30  }
   0x3   : > { %p33_p1 = scmp.ge.s32.totalorder %s31_s12, 2  ;;  %p399_p2 = scmp.lt.s32.totalorder %s1469_s11, 3 }
   0x5   : > { %s1667_s12 = smov (%p33_p1, %s31_s12), 0  ;;  %p400_p3 = pnand %p1193_p0, %p399_p2 }
   0x6   : > { %p492_p4 = scmp.lt.s32.totalorder (!%p400_p3), %s1461_s30, 1 }
   0x7   : > { %403 = sbr.rel (%p400_p3) target bundleno = 215 (0xd7), region = 56 }
   0xc   : > { %s1669_s30 = smov (!%p492_p4, %s1461_s30), 1  ;;  %v1445_v60 = vld [vmem:[%s1662_s8] ss:$0 sm:$0xff] }
   0xd   : > { %s1362_s13 = sshll.u32 %s1669_s30, 6  ;;  %s1579_s26 = sshll.u32 %s1669_s30, 4 }
   0xe   : > { %s1545_s16 = scalar_lea.vmem %s1658_s4, %s1362_s13  ;;  %s1550_s19 = scalar_lea.vmem %s1660_s6, %s1362_s13 }
   0xf   : > { %v1384_v0 = vld [vmem:[%s1545_s16 + $0x38] sm:$0xff]  ;;  %s1557_s22 = scalar_lea.vmem %s1659_s5, %s1362_s13  ;;  %s1562_s25 = scalar_lea.vmem %s1661_s7, %s1362_s13  ;;  %v1383_v4 = vld [vmem:[%s1545_s16 + $0x30] sm:$0xff]  ;;  %v1382_v8 = vld [vmem:[%s1545_s16 + $0x28] sm:$0xff] }
  0x10   : > { %v1376_v1 = vld [vmem:[%s1550_s19 + $0x38] sm:$0xff]  ;;  %660 = vmatpush.bf16.msra.mxu0 %v1384_v0  ;;  %v1375_v5 = vld [vmem:[%s1550_s19 + $0x30] sm:$0xff]  ;;  %v1374_v9 = vld [vmem:[%s1550_s19 + $0x28] sm:$0xff]  ;;  %s1589_s29 = scalar_lea.vmem %s1654_s0, %s1579_s26  ;;  %s1595_s15 = scalar_lea.vmem %s1655_s1, %s1579_s26 }
  0x11   : > { %v1402_v2 = vld [vmem:[%s1557_s22 + $0x38] sm:$0xff]  ;;  %739 = vmatpush.bf16.msra.mxu1 %v1376_v1  ;;  %v1401_v6 = vld [vmem:[%s1557_s22 + $0x30] sm:$0xff]  ;;  %v1400_v10 = vld [vmem:[%s1557_s22 + $0x28] sm:$0xff]  ;;  %s1613_s20 = scalar_lea.vmem %s1656_s2, %s1579_s26  ;;  %s529_s24 = scalar_lea.vmem %s1657_s3, %s1579_s26 }
  0x12   : > { %v1394_v3 = vld [vmem:[%s1562_s25 + $0x38] sm:$0xff]  ;;  %876 = vmatpush.bf16.msra.mxu2 %v1402_v2  ;;  %v1393_v7 = vld [vmem:[%s1562_s25 + $0x30] sm:$0xff]  ;;  %v1392_v11 = vld [vmem:[%s1562_s25 + $0x28] sm:$0xff] }
  0x13   : > { %955 = vmatpush.bf16.msra.mxu3 %v1394_v3  ;;  %v1381_v12 = vld [vmem:[%s1545_s16 + $0x20] sm:$0xff]  ;;  %v1380_v16 = vld [vmem:[%s1545_s16 + $0x18] sm:$0xff]  ;;  %v1379_v20 = vld [vmem:[%s1545_s16 + $0x10] sm:$0xff] }
  0x14   : > { %661 = vmatpush.bf16.msra.mxu0 %v1383_v4  ;;  %v1373_v13 = vld [vmem:[%s1550_s19 + $0x20] sm:$0xff]  ;;  %v1372_v17 = vld [vmem:[%s1550_s19 + $0x18] sm:$0xff]  ;;  %v1371_v21 = vld [vmem:[%s1550_s19 + $0x10] sm:$0xff] }
  0x15   : > { %740 = vmatpush.bf16.msra.mxu1 %v1375_v5  ;;  %v1399_v14 = vld [vmem:[%s1557_s22 + $0x20] sm:$0xff]  ;;  %v1398_v18 = vld [vmem:[%s1557_s22 + $0x18] sm:$0xff]  ;;  %v1397_v23 = vld [vmem:[%s1557_s22 + $0x10] sm:$0xff] }
  0x16   : > { %877 = vmatpush.bf16.msra.mxu2 %v1401_v6  ;;  %v1391_v15 = vld [vmem:[%s1562_s25 + $0x20] sm:$0xff]  ;;  %v1390_v19 = vld [vmem:[%s1562_s25 + $0x18] sm:$0xff]  ;;  %v1389_v24 = vld [vmem:[%s1562_s25 + $0x10] sm:$0xff] }
  0x17   : > { %956 = vmatpush.bf16.msra.mxu3 %v1393_v7  ;;  %v1404_v22 = vld [vmem:[%s1589_s29] sm:$0xff]   ;;  %v1378_v28 = vld [vmem:[%s1545_s16 + $0x8] sm:$0xff] }
  0x18   : > { %662 = vmatpush.bf16.msra.mxu0 %v1382_v8  ;;  %v1412_v25 = vld [vmem:[%s1595_s15] sm:$0xff]   ;;  %v1405_v26 = vunpack.c.l.bf16 %v1404_v22  ;;  %v1406_v27 = vunpack.c.h.bf16 %v1404_v22  ;;  %v1370_v29 = vld [vmem:[%s1550_s19 + $0x8] sm:$0xff] }
  0x19   : > { %741 = vmatpush.bf16.msra.mxu1 %v1374_v9  ;;  %v1413_v30 = vunpack.c.l.bf16 %v1412_v25  ;;  %v1414_v31 = vunpack.c.h.bf16 %v1412_v25  ;;  %v1396_v32 = vld [vmem:[%s1557_s22 + $0x8] sm:$0xff]  ;;  %v1377_v36 = vld [vmem:[%s1545_s16] sm:$0xff] }
  0x1a   : > { %878 = vmatpush.bf16.msra.mxu2 %v1400_v10  ;;  %v1388_v33 = vld [vmem:[%s1562_s25 + $0x8] sm:$0xff]  ;;  %v590_v34 = vmax.f32 %v1405_v26, 0.0  ;;  %v591_v35 = vmax.f32 %v1406_v27, 0.0  ;;  %v1369_v37 = vld [vmem:[%s1550_s19] sm:$0xff] }
  0x1b   : > { %957 = vmatpush.bf16.msra.mxu3 %v1392_v11  ;;  %v806_v38 = vmax.f32 %v1413_v30, 0.0  ;;  %v807_v39 = vmax.f32 %v1414_v31, 0.0  ;;  %v1395_v40 = vld [vmem:[%s1557_s22] sm:$0xff]  ;;  %v1419_v46 = vld [vmem:[%s1589_s29 + $0x8] sm:$0xff]   ;;  %s1366_s22 = sshll.u32 %s1669_s30, 5 }
  0x1c   : > { %663 = vmatpush.bf16.msra.mxu0 %v1381_v12  ;;  %v1387_v41 = vld [vmem:[%s1562_s25] sm:$0xff]  ;;  %v594_v42 = vpack.c.bf16 %v591_v35, %v590_v34  ;;  %v1420_v47 = vld [vmem:[%s1595_s15 + $0x8] sm:$0xff]   ;;  %v1409_v48 = vunpack.c.l.bf16 %v1419_v46  ;;  %v1410_v49 = vunpack.c.h.bf16 %v1419_v46  ;;  %s1632_s27 = scalar_lea.vmem %s1663_s9, %s1366_s22 }
  0x1d   : > { %742 = vmatpush.bf16.msra.mxu1 %v1373_v13  ;;  %v1367_v43 = vld [vmem:[%s1613_s20] sm:$0xff]  ;;  %v810_v44 = vpack.c.bf16 %v807_v39, %v806_v38  ;;  %v1417_v50 = vunpack.c.l.bf16 %v1420_v47  ;;  %v1418_v51 = vunpack.c.h.bf16 %v1420_v47  ;;  %v1368_v57 = vld [vmem:[%s1613_s20 + $0x8] sm:$0xff] }
  0x1e   : > { %879 = vmatpush.bf16.msra.mxu2 %v1399_v14  ;;  %v1385_v45 = vld [vmem:[%s529_s24] sm:$0xff]  ;;  %v592_v52 = vmax.f32 %v1409_v48, 0.0  ;;  %v593_v53 = vmax.f32 %v1410_v49, 0.0  ;;  %v1386_v59 = vld [vmem:[%s529_s24 + $0x8] sm:$0xff] }
  0x1f   : > { %958 = vmatpush.bf16.msra.mxu3 %v1391_v15  ;;  %v808_v54 = vmax.f32 %v1417_v50, 0.0  ;;  %v809_v55 = vmax.f32 %v1418_v51, 0.0  ;;  %v1446_v2 = vld [vmem:[%s1662_s8] ss:$0 sm:$0xff] }
  0x20   : > { %664 = vmatpush.bf16.msra.mxu0 %v1380_v16  ;;  %v595_v56 = vpack.c.bf16 %v593_v53, %v592_v52 }
  0x21   : > { %743 = vmatpush.bf16.msra.mxu1 %v1372_v17  ;;  %v811_v58 = vpack.c.bf16 %v809_v55, %v808_v54 }
  0x22   : > { %880 = vmatpush.bf16.msra.mxu2 %v1398_v18 }
  0x23   : > { %959 = vmatpush.bf16.msra.mxu3 %v1390_v19 }
  0x24   : > { %665 = vmatpush.bf16.msra.mxu0 %v1379_v20 }
  0x25   : > { %744 = vmatpush.bf16.msra.mxu1 %v1371_v21 }
  0x26   : > { %881 = vmatpush.bf16.msra.mxu2 %v1397_v23 }
  0x27   : > { %960 = vmatpush.bf16.msra.mxu3 %v1389_v24 }
  0x28   : > { %666 = vmatpush.bf16.msra.mxu0 %v1378_v28 }
  0x29   : > { %745 = vmatpush.bf16.msra.mxu1 %v1370_v29 }
  0x2a   : > { %882 = vmatpush.bf16.msra.mxu2 %v1396_v32 }
  0x2b   : > { %961 = vmatpush.bf16.msra.mxu3 %v1388_v33 }
  0x2c   : > { %667 = vmatpush.bf16.msra.mxu0 %v1377_v36 }
  0x2d   : > { %746 = vmatpush.bf16.msra.mxu1 %v1369_v37 }
  0x2e   : > { %883 = vmatpush.bf16.msra.mxu2 %v1395_v40 }
  0x2f   : > { %962 = vmatpush.bf16.msra.mxu3 %v1387_v41  ;;  %668 = vmatmul.bf16.vlgmr.msra.gmra.mxu0 %v594_v42 }
  0x30   : > { %747 = vmatmul.bf16.vlgmr.msra.gmra.mxu1 %v1367_v43 }
  0x31   : > { %884 = vmatmul.bf16.vlgmr.msra.gmra.mxu2 %v810_v44 }
  0x32   : > { %963 = vmatmul.bf16.vlgmr.msra.gmra.mxu3 %v1385_v45 }
  0x3f   : > { %673 = vmatmul.bf16.gmra.mxu0 %v595_v56 }
  0x40   : > { %752 = vmatmul.bf16.gmra.mxu1 %v1368_v57 }
  0x41   : > { %889 = vmatmul.bf16.gmra.mxu2 %v811_v58 }
  0x42   : > { %968 = vmatmul.bf16.gmra.mxu3 %v1386_v59 }
  0xac   : > { %v669_v61 = vpop.f32.mrf.mxu0 }
  0xad   : > { %v748_v62 = vpop.f32.mrf.mxu1 }
  0xae   : > { %v749_v63 = vadd.f32 %v748_v62, %v669_v61 }
  0xb0   : > { %v762_v0 = vadd.f32 %v1445_v60, %v749_v63 }
  0xb2   : > { %v766_v1 = vmax.f32 %v762_v0, 0.0 }
  0xb4   : > { %v770_v3 = vpack.c.bf16 %v766_v1, %v766_v1  ;;  %v885_v4 = vpop.f32.mrf.mxu2  ;;  %v671_v7 = vpop.f32.mrf.mxu0 }
  0xb5   : > { %v964_v5 = vpop.f32.mrf.mxu3  ;;  %v750_v8 = vpop.f32.mrf.mxu1 }
  0xb6   : > { %v965_v6 = vadd.f32 %v964_v5, %v885_v4  ;;  %774 = vst [vmem:[%s1632_s27] sm:$0xf] %v770_v3  ;;  %v751_v9 = vadd.f32 %v750_v8, %v671_v7 }
  0xb8   : > { %v978_v10 = vadd.f32 %v1446_v2, %v965_v6  ;;  %v763_v11 = vadd.f32 %v1445_v60, %v751_v9 }
  0xba   : > { %v982_v12 = vmax.f32 %v978_v10, 0.0  ;;  %v767_v13 = vmax.f32 %v763_v11, 0.0 }
  0xbc   : > { %v986_v14 = vpack.c.bf16 %v982_v12, %v982_v12  ;;  %v771_v15 = vpack.c.bf16 %v767_v13, %v767_v13  ;;  %v887_v16 = vpop.f32.mrf.mxu2  ;;  %v674_v19 = vpop.f32.mrf.mxu0 }
  0xbd   : > { %v966_v17 = vpop.f32.mrf.mxu3  ;;  %v753_v20 = vpop.f32.mrf.mxu1 }
  0xbe   : > { %990 = vst [vmem:[%s1632_s27 + $0x4] sm:$0xf] %v986_v14  ;;  %v967_v18 = vadd.f32 %v966_v17, %v887_v16  ;;  %v754_v21 = vadd.f32 %v753_v20, %v674_v19 }
  0xbf   : > { %775 = vst [vmem:[%s1632_s27 + $0x8] sm:$0xf] %v771_v15 }
  0xc0   : > { %v979_v22 = vadd.f32 %v1446_v2, %v967_v18  ;;  %v764_v23 = vadd.f32 %v1445_v60, %v754_v21 }
  0xc2   : > { %v983_v24 = vmax.f32 %v979_v22, 0.0  ;;  %v768_v25 = vmax.f32 %v764_v23, 0.0 }
  0xc4   : > { %v987_v26 = vpack.c.bf16 %v983_v24, %v983_v24  ;;  %v772_v27 = vpack.c.bf16 %v768_v25, %v768_v25  ;;  %v890_v28 = vpop.f32.mrf.mxu2  ;;  %v676_v31 = vpop.f32.mrf.mxu0 }
  0xc5   : > { %v969_v29 = vpop.f32.mrf.mxu3  ;;  %v755_v32 = vpop.f32.mrf.mxu1 }
  0xc6   : > { %991 = vst [vmem:[%s1632_s27 + $0xc] sm:$0xf] %v987_v26  ;;  %v970_v30 = vadd.f32 %v969_v29, %v890_v28  ;;  %v756_v33 = vadd.f32 %v755_v32, %v676_v31 }
  0xc7   : > { %776 = vst [vmem:[%s1632_s27 + $0x10] sm:$0xf] %v772_v27 }
  0xc8   : > { %v980_v34 = vadd.f32 %v1446_v2, %v970_v30  ;;  %v765_v35 = vadd.f32 %v1445_v60, %v756_v33 }
  0xca   : > { %v984_v36 = vmax.f32 %v980_v34, 0.0  ;;  %v769_v37 = vmax.f32 %v765_v35, 0.0 }
  0xcc   : > { %v988_v38 = vpack.c.bf16 %v984_v36, %v984_v36  ;;  %v773_v39 = vpack.c.bf16 %v769_v37, %v769_v37  ;;  %v892_v40 = vpop.f32.mrf.mxu2 }
  0xcd   : > { %v971_v41 = vpop.f32.mrf.mxu3 }
  0xce   : > { %992 = vst [vmem:[%s1632_s27 + $0x14] sm:$0xf] %v988_v38  ;;  %v972_v42 = vadd.f32 %v971_v41, %v892_v40 }
  0xcf   : > { %777 = vst [vmem:[%s1632_s27 + $0x18] sm:$0xf] %v773_v39 }
  0xd0   : > { %v981_v43 = vadd.f32 %v1446_v2, %v972_v42 }
  0xd2   : > { %v985_v44 = vmax.f32 %v981_v43, 0.0 }
  0xd4   : > { %v989_v45 = vpack.c.bf16 %v985_v44, %v985_v44 }
  0xd6   : > { %993 = vst [vmem:[%s1632_s27 + $0x1c] sm:$0xf] %v989_v45 }
  0xd7 PF: > { %s19_s11 = sadd.s32 1, %s1469_s11   ;;  %s1664_s30 = smov %s1465_s10 }
  0xd8   : > { %p16_p5 = scmp.ge.s32.totalorder %s19_s11, 4   ;;  %s1665_s10 = smov %s1667_s12 }
  0xda   :  { %18 = sbr.rel (!%p16_p5) target bundleno = 2 (0x2), region = 107 }

// kernel: unet_forward.18
= control target key start
LH: loop header
LB: loop body
LE: loop exit
PB: predicated region body
PF: predicated region fallthrough
CT: control target
= control target key end

     0   :  { %s1579_s30 = smov 0   ;;  %s1581_s10 = smov 0   ;;  %s1768_s0 = inlined_call_operand.vmem [shape: bf16[2,128,64], index: 0, kind: input, shape index: {}]   ;;  %s1769_s1 = inlined_call_operand.vmem [shape: bf16[2,128,64], index: 1, kind: input, shape index: {}]   ;;  %s1770_s2 = inlined_call_operand.vmem [shape: bf16[2,128,64], index: 2, kind: input, shape index: {}]   ;;  %s1771_s3 = inlined_call_operand.vmem [shape: bf16[2,128,64], index: 3, kind: input, shape index: {}]   ;;  %s1772_s4 = inlined_call_operand.vmem [shape: bf16[2,64,128], index: 4, kind: input, shape index: {}]   ;;  %s1773_s5 = inlined_call_operand.vmem [shape: bf16[2,64,128], index: 5, kind: input, shape index: {}]   ;;  %s1774_s6 = inlined_call_operand.vmem [shape: bf16[2,64,128], index: 6, kind: input, shape index: {}]   ;;  %s1775_s7 = inlined_call_operand.vmem [shape: bf16[2,64,128], index: 7, kind: input, shape index: {}]   ;;  %s1776_s8 = inlined_call_operand.vmem [shape: f32[1,128], index: 8, kind: input, shape index: {}]   ;;  %s1777_s9 = inlined_call_operand.vmem [shape: bf16[2,128,256], index: 9, kind: output, shape index: {}]  }
   0x1   :  { %s1583_s11 = smov 0   ;;  %s1585_s12 = smov 0  }
   0x2   :  { %s1587_s13 = smov 0  }
   0x3 LB: > { %s28_s14 = sadd.s32 1, %s1519_s11  ;;  %s31_s15 = sadd.s32 1, %s1523_s12  ;;  %s1527_s13 = sphi %s1587_s13, %s19_s13   ;;  %s1523_s12 = sphi %s1585_s12, %s1781_s12   ;;  %s1519_s11 = sphi %s1583_s11, %s1780_s11   ;;  %s1515_s10 = sphi %s1581_s10, %s1779_s10   ;;  %s1511_s30 = sphi %s1579_s30, %s1778_s30  }
   0x4   : > { %p29_p0 = scmp.ge.s32.totalorder %s28_s14, 2  ;;  %p1242_p1 = scmp.ge.s32.totalorder %s1527_s13, 1 }
   0x5   : > { %p399_p2 = scmp.lt.s32.totalorder %s1527_s13, 5 }
   0x6   : > { %s1783_s14 = smov (%p29_p0, %s28_s14), 0  ;;  %s1785_s15 = smov (!%p29_p0, %s31_s15), %s1523_s12 }
   0x7   : > { %p400_p3 = pnand %p1242_p1, %p399_p2  ;;  %p33_p4 = scmp.ge.s32.totalorder %s1785_s15, 2 }
   0x8   : > { %p492_p5 = scmp.lt.s32.totalorder (!%p400_p3), %s1515_s10, 1  ;;  %s1243_s16 = sshll.u32 (!%p400_p3), %s1511_s30, 3 }
   0x9   : > { %s1787_s15 = smov (%p33_p4, %s1785_s15), 0  ;;  %403 = sbr.rel (%p400_p3) target bundleno = 233 (0xe9), region = 56 }
   0xa   : > { %p494_p6 = scmp.lt.s32.totalorder (!%p400_p3), %s1243_s16, 15 }
   0xe   : > { %s1789_s10 = smov (!%p492_p5, %s1515_s10), 1  ;;  %s1791_s16 = smov (!%p494_p6, %s1243_s16), 15  ;;  %vm639_vm0 = vcmask 523264  }
   0xf   : > { %s1381_s17 = sshll.u32 %s1789_s10, 5  ;;  %s1244_s18 = sshll.u32 %s1789_s10, 4 }
  0x10   : > { %s1612_s21 = scalar_lea.vmem %s1772_s4, %s1381_s17  ;;  %s1617_s24 = scalar_lea.vmem %s1774_s6, %s1381_s17 }
  0x11   : > { %v1396_v0 = vld [vmem:[%s1612_s21 + $0x18] sm:$0xff]  ;;  %s1624_s27 = scalar_lea.vmem %s1773_s5, %s1381_s17  ;;  %s1629_s30 = scalar_lea.vmem %s1775_s7, %s1381_s17  ;;  %v1395_v4 = vld [vmem:[%s1612_s21 + $0x10] sm:$0xff]  ;;  %v1394_v9 = vld [vmem:[%s1612_s21 + $0x8] sm:$0xff] }
  0x12   : > { %v1392_v1 = vld [vmem:[%s1617_s24 + $0x18] sm:$0xff]  ;;  %s497_s10 = sadd.s32 %s1244_s18, %s1791_s16  ;;  %s1264_s19 = sshll.u32 %s1791_s16, 1  ;;  %656 = vmatpush.bf16.msra.mxu0 %v1396_v0  ;;  %v1391_v5 = vld [vmem:[%s1617_s24 + $0x10] sm:$0xff]  ;;  %v1390_v10 = vld [vmem:[%s1617_s24 + $0x8] sm:$0xff] }
  0x13   : > { %v1408_v2 = vld [vmem:[%s1624_s27 + $0x18] sm:$0xff]  ;;  %741 = vmatpush.bf16.msra.mxu1 %v1392_v1  ;;  %s1635_s20 = sshll.u32 %s497_s10, 2  ;;  %s1637_s22 = sadd.s32 %s1381_s17, %s1264_s19  ;;  %v1407_v6 = vld [vmem:[%s1624_s27 + $0x10] sm:$0xff]  ;;  %v1406_v14 = vld [vmem:[%s1624_s27 + $0x8] sm:$0xff] }
  0x14   : > { %v1404_v3 = vld [vmem:[%s1629_s30 + $0x18] sm:$0xff]  ;;  %894 = vmatpush.bf16.msra.mxu2 %v1408_v2  ;;  %v1403_v7 = vld [vmem:[%s1629_s30 + $0x10] sm:$0xff]  ;;  %s1645_s23 = scalar_lea.vmem %s1768_s0, %s1635_s20  ;;  %s1652_s28 = scalar_lea.vmem %s1769_s1, %s1635_s20  ;;  %v1402_v15 = vld [vmem:[%s1629_s30 + $0x8] sm:$0xff] }
  0x15   : > { %979 = vmatpush.bf16.msra.mxu3 %v1404_v3  ;;  %v1410_v8 = vld [vmem:[%s1645_s23] sm:$0xff]   ;;  %s1665_s10 = scalar_lea.vmem %s1770_s2, %s1635_s20  ;;  %s1673_s16 = scalar_lea.vmem %s1771_s3, %s1635_s20  ;;  %v1441_v30 = vld [vmem:[%s1645_s23 + $0x8] sm:$0xff]   ;;  %v1442_v44 = vld [vmem:[%s1645_s23 + $0x10] sm:$0xff]  }
  0x16   : > { %657 = vmatpush.bf16.msra.mxu0 %v1395_v4  ;;  %v1411_v11 = vunpack.c.l.bf16 %v1410_v8  ;;  %v1412_v12 = vunpack.c.h.bf16 %v1410_v8  ;;  %v1426_v13 = vld [vmem:[%s1652_s28] sm:$0xff]   ;;  %v1444_v31 = vld [vmem:[%s1652_s28 + $0x8] sm:$0xff]   ;;  %v1415_v32 = vunpack.c.l.bf16 %v1441_v30  ;;  %v1416_v33 = vunpack.c.h.bf16 %v1441_v30  ;;  %v1445_v45 = vld [vmem:[%s1652_s28 + $0x10] sm:$0xff]  }
  0x17   : > { %742 = vmatpush.bf16.msra.mxu1 %v1391_v5  ;;  %v1427_v16 = vunpack.c.l.bf16 %v1426_v13  ;;  %v1428_v17 = vunpack.c.h.bf16 %v1426_v13  ;;  %v1393_v20 = vld [vmem:[%s1612_s21] sm:$0xff]  ;;  %v1431_v34 = vunpack.c.l.bf16 %v1444_v31  ;;  %v1432_v35 = vunpack.c.h.bf16 %v1444_v31  ;;  %v1386_v41 = vld [vmem:[%s1665_s10 + $0x8] sm:$0xff]  ;;  %v1387_v55 = vld [vmem:[%s1665_s10 + $0x10] sm:$0xff] }
  0x18   : > { %895 = vmatpush.bf16.msra.mxu2 %v1407_v6  ;;  %v595_v18 = vmax.f32 %v1411_v11, 0.0  ;;  %v596_v19 = vmax.f32 %v1412_v12, 0.0  ;;  %v1389_v21 = vld [vmem:[%s1617_s24] sm:$0xff]  ;;  %v597_v36 = vmax.f32 %v1415_v32, 0.0  ;;  %v598_v37 = vmax.f32 %v1416_v33, 0.0  ;;  %v1398_v43 = vld [vmem:[%s1673_s16 + $0x8] sm:$0xff] }
  0x19   : > { %980 = vmatpush.bf16.msra.mxu3 %v1403_v7  ;;  %v834_v22 = vmax.f32 %v1427_v16, 0.0  ;;  %v835_v23 = vmax.f32 %v1428_v17, 0.0  ;;  %v1405_v24 = vld [vmem:[%s1624_s27] sm:$0xff]  ;;  %v836_v38 = vmax.f32 %v1431_v34, 0.0  ;;  %v837_v39 = vmax.f32 %v1432_v35, 0.0  ;;  %v1399_v57 = vld [vmem:[%s1673_s16 + $0x10] sm:$0xff] }
  0x1a   : > { %658 = vmatpush.bf16.msra.mxu0 %v1394_v9  ;;  %v1401_v25 = vld [vmem:[%s1629_s30] sm:$0xff]  ;;  %v603_v26 = vpack.c.bf16 %v596_v19, %v595_v18  ;;  %v604_v40 = vpack.c.bf16 %v598_v37, %v597_v36  ;;  %v1419_v46 = vunpack.c.l.bf16 %v1442_v44  ;;  %v1420_v47 = vunpack.c.h.bf16 %v1442_v44  ;;  %v1443_v58 = vld [vmem:[%s1645_s23 + $0x18] sm:$0xff]   ;;  %s1266_s27 = sshll.u32 %s1637_s22, 2 }
  0x1b   : > { %743 = vmatpush.bf16.msra.mxu1 %v1390_v10  ;;  %v1385_v27 = vld [vmem:[%s1665_s10] sm:$0xff]  ;;  %v842_v28 = vpack.c.bf16 %v835_v23, %v834_v22  ;;  %v843_v42 = vpack.c.bf16 %v837_v39, %v836_v38  ;;  %v1435_v48 = vunpack.c.l.bf16 %v1445_v45  ;;  %v1436_v49 = vunpack.c.h.bf16 %v1445_v45  ;;  %v1446_v59 = vld [vmem:[%s1652_s28 + $0x18] sm:$0xff]   ;;  %s1715_s23 = scalar_lea.vmem %s1777_s9, %s1266_s27 }
  0x1c   : > { %896 = vmatpush.bf16.msra.mxu2 %v1406_v14  ;;  %v1397_v29 = vld [vmem:[%s1673_s16] sm:$0xff]  ;;  %v599_v50 = vmax.f32 %v1419_v46, 0.0  ;;  %v600_v51 = vmax.f32 %v1420_v47, 0.0  ;;  %v1423_v60 = vunpack.c.l.bf16 %v1443_v58  ;;  %v1424_v61 = vunpack.c.h.bf16 %v1443_v58  ;;  %v1388_v5 = vld [vmem:[%s1665_s10 + $0x18] sm:$0xff] }
  0x1d   : > { %981 = vmatpush.bf16.msra.mxu3 %v1402_v15  ;;  %v838_v52 = vmax.f32 %v1435_v48, 0.0  ;;  %v839_v53 = vmax.f32 %v1436_v49, 0.0  ;;  %v1439_v62 = vunpack.c.l.bf16 %v1446_v59  ;;  %v1440_v63 = vunpack.c.h.bf16 %v1446_v59  ;;  %v1400_v7 = vld [vmem:[%s1673_s16 + $0x18] sm:$0xff]  ;;  %v1708_v8 = vld [vmem:[%s1776_s8] ss:$0 sm:$0xff] }
  0x1e   : > { %659 = vmatpush.bf16.msra.mxu0 %v1393_v20  ;;  %v605_v54 = vpack.c.bf16 %v600_v51, %v599_v50  ;;  %v601_v0 = vmax.f32 %v1423_v60, 0.0  ;;  %v602_v1 = vmax.f32 %v1424_v61, 0.0  ;;  %v1720_v14 = vld [vmem:[%s1776_s8] ss:$0 sm:$0xff] }
  0x1f   : > { %744 = vmatpush.bf16.msra.mxu1 %v1389_v21  ;;  %v844_v56 = vpack.c.bf16 %v839_v53, %v838_v52  ;;  %v840_v2 = vmax.f32 %v1439_v62, 0.0  ;;  %v841_v3 = vmax.f32 %v1440_v63, 0.0 }
  0x20   : > { %897 = vmatpush.bf16.msra.mxu2 %v1405_v24  ;;  %v606_v4 = vpack.c.bf16 %v602_v1, %v601_v0 }
  0x21   : > { %982 = vmatpush.bf16.msra.mxu3 %v1401_v25  ;;  %1283 = vmatmul.msk.bf16.vlgmr.msra.gmra.mxu0 %vm639_vm0, %v603_v26  ;;  %v845_v6 = vpack.c.bf16 %v841_v3, %v840_v2 }
  0x22   : > { %1319 = vmatmul.msk.bf16.vlgmr.msra.gmra.mxu1 %vm639_vm0, %v1385_v27 }
  0x23   : > { %1339 = vmatmul.msk.bf16.vlgmr.msra.gmra.mxu2 %vm639_vm0, %v842_v28 }
  0x24   : > { %1375 = vmatmul.msk.bf16.vlgmr.msra.gmra.mxu3 %vm639_vm0, %v1397_v29 }
  0x31   : > { %1284 = vmatmul.msk.bf16.gmra.mxu0 %vm639_vm0, %v604_v40 }
  0x32   : > { %1320 = vmatmul.msk.bf16.gmra.mxu1 %vm639_vm0, %v1386_v41 }
  0x33   : > { %1340 = vmatmul.msk.bf16.gmra.mxu2 %vm639_vm0, %v843_v42 }
  0x34   : > { %1376 = vmatmul.msk.bf16.gmra.mxu3 %vm639_vm0, %v1398_v43 }
  0x41   : > { %1285 = vmatmul.msk.bf16.gmra.mxu0 %vm639_vm0, %v605_v54 }
  0x42   : > { %1321 = vmatmul.msk.bf16.gmra.mxu1 %vm639_vm0, %v1387_v55 }
  0x43   : > { %1341 = vmatmul.msk.bf16.gmra.mxu2 %vm639_vm0, %v844_v56 }
  0x44   : > { %1377 = vmatmul.msk.bf16.gmra.mxu3 %vm639_vm0, %v1399_v57 }
  0x51   : > { %1286 = vmatmul.msk.bf16.gmra.mxu0 %vm639_vm0, %v606_v4 }
  0x52   : > { %1322 = vmatmul.msk.bf16.gmra.mxu1 %vm639_vm0, %v1388_v5 }
  0x53   : > { %1342 = vmatmul.msk.bf16.gmra.mxu2 %vm639_vm0, %v845_v6 }
  0x54   : > { %1378 = vmatmul.msk.bf16.gmra.mxu3 %vm639_vm0, %v1400_v7 }
  0x9e   : > { %v661_v9 = vpop.f32.mrf.mxu0 }
  0x9f   : > { %v746_v10 = vpop.f32.mrf.mxu1 }
  0xa0   : > { %v747_v11 = vadd.f32 %v746_v10, %v661_v9 }
  0xa2   : > { %v770_v12 = vadd.f32 %v1708_v8, %v747_v11 }
  0xa4   : > { %v778_v13 = vmax.f32 %v770_v12, 0.0 }
  0xa6   : > { %v786_v15 = vpack.c.bf16 %v778_v13, %v778_v13  ;;  %v899_v16 = vpop.f32.mrf.mxu2  ;;  %v663_v19 = vpop.f32.mrf.mxu0 }
  0xa7   : > { %v984_v17 = vpop.f32.mrf.mxu3  ;;  %v748_v20 = vpop.f32.mrf.mxu1 }
  0xa8   : > { %v985_v18 = vadd.f32 %v984_v17, %v899_v16  ;;  %794 = vst [vmem:[%s1715_s23] sm:$0xf] %v786_v15  ;;  %v749_v21 = vadd.f32 %v748_v20, %v663_v19 }
  0xaa   : > { %v1008_v22 = vadd.f32 %v1720_v14, %v985_v18  ;;  %v771_v23 = vadd.f32 %v1708_v8, %v749_v21 }
  0xac   : > { %v1016_v24 = vmax.f32 %v1008_v22, 0.0  ;;  %v779_v25 = vmax.f32 %v771_v23, 0.0 }
  0xae   : > { %v1024_v26 = vpack.c.bf16 %v1016_v24, %v1016_v24  ;;  %v787_v27 = vpack.c.bf16 %v779_v25, %v779_v25  ;;  %v901_v28 = vpop.f32.mrf.mxu2  ;;  %v666_v31 = vpop.f32.mrf.mxu0 }
  0xaf   : > { %v986_v29 = vpop.f32.mrf.mxu3  ;;  %v751_v32 = vpop.f32.mrf.mxu1 }
  0xb0   : > { %1032 = vst [vmem:[%s1715_s23 + $0x4] sm:$0xf] %v1024_v26  ;;  %v987_v30 = vadd.f32 %v986_v29, %v901_v28  ;;  %v752_v33 = vadd.f32 %v751_v32, %v666_v31 }
  0xb1   : > { %795 = vst [vmem:[%s1715_s23 + $0x8] sm:$0xf] %v787_v27 }
  0xb2   : > { %v1009_v34 = vadd.f32 %v1720_v14, %v987_v30  ;;  %v772_v35 = vadd.f32 %v1708_v8, %v752_v33 }
  0xb4   : > { %v1017_v36 = vmax.f32 %v1009_v34, 0.0  ;;  %v780_v37 = vmax.f32 %v772_v35, 0.0 }
  0xb6   : > { %v1025_v38 = vpack.c.bf16 %v1017_v36, %v1017_v36  ;;  %v788_v39 = vpack.c.bf16 %v780_v37, %v780_v37  ;;  %v904_v40 = vpop.f32.mrf.mxu2  ;;  %v668_v43 = vpop.f32.mrf.mxu0 }
  0xb7   : > { %v989_v41 = vpop.f32.mrf.mxu3  ;;  %v753_v44 = vpop.f32.mrf.mxu1 }
  0xb8   : > { %1033 = vst [vmem:[%s1715_s23 + $0xc] sm:$0xf] %v1025_v38  ;;  %v990_v42 = vadd.f32 %v989_v41, %v904_v40  ;;  %v754_v45 = vadd.f32 %v753_v44, %v668_v43 }
  0xb9   : > { %796 = vst [vmem:[%s1715_s23 + $0x10] sm:$0xf] %v788_v39 }
  0xba   : > { %v1010_v46 = vadd.f32 %v1720_v14, %v990_v42  ;;  %v773_v47 = vadd.f32 %v1708_v8, %v754_v45 }
  0xbc   : > { %v1018_v48 = vmax.f32 %v1010_v46, 0.0  ;;  %v781_v49 = vmax.f32 %v773_v47, 0.0 }
  0xbe   : > { %v1026_v50 = vpack.c.bf16 %v1018_v48, %v1018_v48  ;;  %v789_v51 = vpack.c.bf16 %v781_v49, %v781_v49  ;;  %v906_v52 = vpop.f32.mrf.mxu2  ;;  %v671_v55 = vpop.f32.mrf.mxu0 }
  0xbf   : > { %v991_v53 = vpop.f32.mrf.mxu3  ;;  %v756_v56 = vpop.f32.mrf.mxu1 }
  0xc0   : > { %1034 = vst [vmem:[%s1715_s23 + $0x14] sm:$0xf] %v1026_v50  ;;  %v992_v54 = vadd.f32 %v991_v53, %v906_v52  ;;  %v757_v57 = vadd.f32 %v756_v56, %v671_v55 }
  0xc1   : > { %797 = vst [vmem:[%s1715_s23 + $0x18] sm:$0xf] %v789_v51 }
  0xc2   : > { %v1011_v58 = vadd.f32 %v1720_v14, %v992_v54  ;;  %v774_v59 = vadd.f32 %v1708_v8, %v757_v57 }
  0xc4   : > { %v1019_v60 = vmax.f32 %v1011_v58, 0.0  ;;  %v782_v61 = vmax.f32 %v774_v59, 0.0 }
  0xc6   : > { %v1027_v62 = vpack.c.bf16 %v1019_v60, %v1019_v60  ;;  %v790_v63 = vpack.c.bf16 %v782_v61, %v782_v61  ;;  %v909_v0 = vpop.f32.mrf.mxu2  ;;  %v673_v3 = vpop.f32.mrf.mxu0 }
  0xc7   : > { %v994_v1 = vpop.f32.mrf.mxu3  ;;  %v758_v4 = vpop.f32.mrf.mxu1 }
  0xc8   : > { %1035 = vst [vmem:[%s1715_s23 + $0x1c] sm:$0xf] %v1027_v62  ;;  %v995_v2 = vadd.f32 %v994_v1, %v909_v0  ;;  %v759_v5 = vadd.f32 %v758_v4, %v673_v3 }
  0xc9   : > { %798 = vst [vmem:[%s1715_s23 + $0x20] sm:$0xf] %v790_v63 }
  0xca   : > { %v1012_v6 = vadd.f32 %v1720_v14, %v995_v2  ;;  %v775_v7 = vadd.f32 %v1708_v8, %v759_v5 }
  0xcc   : > { %v1020_v9 = vmax.f32 %v1012_v6, 0.0  ;;  %v783_v10 = vmax.f32 %v775_v7, 0.0 }
  0xce   : > { %v1028_v11 = vpack.c.bf16 %v1020_v9, %v1020_v9  ;;  %v791_v12 = vpack.c.bf16 %v783_v10, %v783_v10  ;;  %v911_v13 = vpop.f32.mrf.mxu2  ;;  %v676_v17 = vpop.f32.mrf.mxu0 }
  0xcf   : > { %v996_v15 = vpop.f32.mrf.mxu3  ;;  %v761_v18 = vpop.f32.mrf.mxu1 }
  0xd0   : > { %1036 = vst [vmem:[%s1715_s23 + $0x24] sm:$0xf] %v1028_v11  ;;  %v997_v16 = vadd.f32 %v996_v15, %v911_v13  ;;  %v762_v19 = vadd.f32 %v761_v18, %v676_v17 }
  0xd1   : > { %799 = vst [vmem:[%s1715_s23 + $0x28] sm:$0xf] %v791_v12 }
  0xd2   : > { %v1013_v20 = vadd.f32 %v1720_v14, %v997_v16  ;;  %v776_v21 = vadd.f32 %v1708_v8, %v762_v19 }
  0xd4   : > { %v1021_v22 = vmax.f32 %v1013_v20, 0.0  ;;  %v784_v23 = vmax.f32 %v776_v21, 0.0 }
  0xd6   : > { %v1029_v24 = vpack.c.bf16 %v1021_v22, %v1021_v22  ;;  %v792_v25 = vpack.c.bf16 %v784_v23, %v784_v23  ;;  %v914_v26 = vpop.f32.mrf.mxu2  ;;  %v678_v29 = vpop.f32.mrf.mxu0 }
  0xd7   : > { %v999_v27 = vpop.f32.mrf.mxu3  ;;  %v763_v30 = vpop.f32.mrf.mxu1 }
  0xd8   : > { %1037 = vst [vmem:[%s1715_s23 + $0x2c] sm:$0xf] %v1029_v24  ;;  %v1000_v28 = vadd.f32 %v999_v27, %v914_v26  ;;  %v764_v31 = vadd.f32 %v763_v30, %v678_v29 }
  0xd9   : > { %800 = vst [vmem:[%s1715_s23 + $0x30] sm:$0xf] %v792_v25 }
  0xda   : > { %v1014_v32 = vadd.f32 %v1720_v14, %v1000_v28  ;;  %v777_v33 = vadd.f32 %v1708_v8, %v764_v31 }
  0xdc   : > { %v1022_v34 = vmax.f32 %v1014_v32, 0.0  ;;  %v785_v35 = vmax.f32 %v777_v33, 0.0 }
  0xde   : > { %v1030_v36 = vpack.c.bf16 %v1022_v34, %v1022_v34  ;;  %v793_v37 = vpack.c.bf16 %v785_v35, %v785_v35  ;;  %v916_v38 = vpop.f32.mrf.mxu2 }
  0xdf   : > { %v1001_v39 = vpop.f32.mrf.mxu3 }
  0xe0   : > { %1038 = vst [vmem:[%s1715_s23 + $0x34] sm:$0xf] %v1030_v36  ;;  %v1002_v40 = vadd.f32 %v1001_v39, %v916_v38 }
  0xe1   : > { %801 = vst [vmem:[%s1715_s23 + $0x38] sm:$0xf] %v793_v37 }
  0xe2   : > { %v1015_v41 = vadd.f32 %v1720_v14, %v1002_v40 }
  0xe4   : > { %v1023_v42 = vmax.f32 %v1015_v41, 0.0 }
  0xe6   : > { %v1031_v43 = vpack.c.bf16 %v1023_v42, %v1023_v42 }
  0xe8   : > { %1039 = vst [vmem:[%s1715_s23 + $0x3c] sm:$0xf] %v1031_v43 }
  0xe9 PF: > { %s19_s13 = sadd.s32 1, %s1527_s13   ;;  %s1778_s30 = smov %s1519_s11 }
  0xea   : > { %p16_p7 = scmp.ge.s32.totalorder %s19_s13, 6   ;;  %s1779_s10 = smov %s1523_s12 }
  0xeb   : > { %s1780_s11 = smov %s1783_s14  ;;  %s1781_s12 = smov %s1787_s15 }
  0xec   :  { %18 = sbr.rel (!%p16_p7) target bundleno = 3 (0x3), region = 107 }

// kernel: unet_forward.19
= control target key start
LH: loop header
LB: loop body
LE: loop exit
PB: predicated region body
PF: predicated region fallthrough
CT: control target
= control target key end

     0   :  { %s2611_s30 = smov 0   ;;  %s2613_s10 = smov 0   ;;  %s2968_s0 = inlined_call_operand.vmem [shape: bf16[2,512,32], index: 0, kind: input, shape index: {}]   ;;  %s2969_s1 = inlined_call_operand.vmem [shape: bf16[2,512,32], index: 1, kind: input, shape index: {}]   ;;  %s2970_s2 = inlined_call_operand.vmem [shape: bf16[2,512,32], index: 2, kind: input, shape index: {}]   ;;  %s2971_s3 = inlined_call_operand.vmem [shape: bf16[2,512,32], index: 3, kind: input, shape index: {}]   ;;  %s2972_s4 = inlined_call_operand.vmem [shape: bf16[2,32,128], index: 4, kind: input, shape index: {}]   ;;  %s2973_s5 = inlined_call_operand.vmem [shape: bf16[2,32,128], index: 5, kind: input, shape index: {}]   ;;  %s2974_s6 = inlined_call_operand.vmem [shape: bf16[2,32,128], index: 6, kind: input, shape index: {}]   ;;  %s2975_s7 = inlined_call_operand.vmem [shape: bf16[2,32,128], index: 7, kind: input, shape index: {}]   ;;  %s2976_s8 = inlined_call_operand.vmem [shape: f32[1,128], index: 8, kind: input, shape index: {}]   ;;  %s2977_s9 = inlined_call_operand.vmem [shape: bf16[2,512,256], index: 9, kind: output, shape index: {}]  }
   0x1   :  { %2978 = sst [smem:[#allocation2_spill]] %s2968_s0  ;;  %s2615_s11 = smov 0  }
   0x2   :  { %s2617_s12 = smov 0   ;;  %s2619_s13 = smov 0  }
   0x3 LB: > { %s28_s14 = sadd.s32 1, %s2551_s11  ;;  %s31_s15 = sadd.s32 1, %s2555_s12  ;;  %s2559_s13 = sphi %s2619_s13, %s19_s13   ;;  %s2555_s12 = sphi %s2617_s12, %s2983_s12   ;;  %s2551_s11 = sphi %s2615_s11, %s2982_s11   ;;  %s2547_s10 = sphi %s2613_s10, %s2981_s10   ;;  %s2543_s30 = sphi %s2611_s30, %s2980_s30  }
   0x4   : > { %p29_p0 = scmp.ge.s32.totalorder %s28_s14, 2  ;;  %p2026_p1 = scmp.ge.s32.totalorder %s2559_s13, 1 }
   0x5   : > { %p399_p2 = scmp.lt.s32.totalorder %s2559_s13, 5 }
   0x6   : > { %s2985_s14 = smov (%p29_p0, %s28_s14), 0  ;;  %s2987_s15 = smov (!%p29_p0, %s31_s15), %s2555_s12 }
   0x7   : > { %p400_p3 = pnand %p2026_p1, %p399_p2  ;;  %p33_p4 = scmp.ge.s32.totalorder %s2987_s15, 2 }
   0x8   : > { %s2027_s16 = sshll.u32 (!%p400_p3), %s2543_s30, 5  ;;  %p492_p5 = scmp.lt.s32.totalorder (!%p400_p3), %s2547_s10, 1 }
   0x9   : > { %s2989_s15 = smov (%p33_p4, %s2987_s15), 0  ;;  %403 = sbr.rel (%p400_p3) target bundleno = 417 (0x1a1), region = 56 }
   0xa   : > { %p494_p6 = scmp.lt.s32.totalorder (!%p400_p3), %s2027_s16, 63  ;;  %s2979_s0 = sld [smem:[#allocation2_spill]] (!%p400_p3) }
   0xe   : > { %s2991_s10 = smov (!%p492_p5, %s2547_s10), 1  ;;  %s2993_s16 = smov (!%p494_p6, %s2027_s16), 63  ;;  %vm727_vm0 = vcmask 261120  }
   0xf   : > { %s2028_s17 = sshll.u32 %s2991_s10, 6  ;;  %s2277_s18 = sshll.u32 %s2991_s10, 4 }
  0x10   : > { %s497_s19 = sadd.s32 %s2028_s17, %s2993_s16  ;;  %s535_s22 = scalar_lea.vmem %s2972_s4, %s2277_s18 }
  0x11   : > { %s2644_s23 = sshll.u32 %s497_s19, 2  ;;  %s2048_s24 = sshll.u32 %s2993_s16, 1  ;;  %v2300_v0 = vld [vmem:[%s535_s22 + $0x8] sm:$0xff]  ;;  %v2299_v1 = vld [vmem:[%s535_s22] sm:$0xff] }
  0x12   : > { %s2650_s27 = scalar_lea.vmem %s2979_s0, %s2644_s23  ;;  %s2656_s30 = scalar_lea.vmem %s2969_s1, %s2644_s23  ;;  %782 = vmatpush.bf16.msra.mxu0 %v2300_v0 }
  0x13   : > { %v2322_v2 = vld [vmem:[%s2650_s27] sm:$0xff]   ;;  %s2049_s17 = sshll.u32 %s2991_s10, 7  ;;  %s545_s20 = scalar_lea.vmem %s2974_s6, %s2277_s18  ;;  %v2449_v21 = vld [vmem:[%s2650_s27 + $0x8] sm:$0xff]   ;;  %v2450_v35 = vld [vmem:[%s2650_s27 + $0x10] sm:$0xff]  }
  0x14   : > { %v2386_v3 = vld [vmem:[%s2656_s30] sm:$0xff]   ;;  %v2323_v4 = vunpack.c.l.bf16 %v2322_v2  ;;  %v2324_v5 = vunpack.c.h.bf16 %v2322_v2  ;;  %s2663_s21 = sadd.s32 %s2049_s17, %s2048_s24  ;;  %v2298_v8 = vld [vmem:[%s545_s20 + $0x8] sm:$0xff]  ;;  %s540_s28 = scalar_lea.vmem %s2973_s5, %s2277_s18  ;;  %v2327_v23 = vunpack.c.l.bf16 %v2449_v21  ;;  %v2328_v24 = vunpack.c.h.bf16 %v2449_v21  ;;  %v2465_v39 = vld [vmem:[%s2656_s30 + $0x10] sm:$0xff]  }
  0x15   : > { %v2387_v6 = vunpack.c.l.bf16 %v2386_v3  ;;  %v2388_v7 = vunpack.c.h.bf16 %v2386_v3  ;;  %v2320_v9 = vld [vmem:[%s540_s28 + $0x8] sm:$0xff]  ;;  %s550_s10 = scalar_lea.vmem %s2975_s7, %s2277_s18  ;;  %s2675_s0 = scalar_lea.vmem %s2970_s2, %s2644_s23  ;;  %1011 = vmatpush.bf16.msra.mxu1 %v2298_v8  ;;  %v2297_v13 = vld [vmem:[%s545_s20] sm:$0xff]  ;;  %v2331_v37 = vunpack.c.l.bf16 %v2450_v35  ;;  %v2332_v38 = vunpack.c.h.bf16 %v2450_v35  ;;  %v2451_v49 = vld [vmem:[%s2650_s27 + $0x18] sm:$0xff]  }
  0x16   : > { %v663_v10 = vmax.f32 %v2323_v4, 0.0  ;;  %v664_v11 = vmax.f32 %v2324_v5, 0.0  ;;  %v2318_v12 = vld [vmem:[%s550_s10 + $0x8] sm:$0xff]  ;;  %783 = vmatpush.bf16.msra.mxu0 %v2299_v1  ;;  %1412 = vmatpush.bf16.msra.mxu2 %v2320_v9  ;;  %v2319_v16 = vld [vmem:[%s540_s28] sm:$0xff]  ;;  %s2681_s17 = scalar_lea.vmem %s2971_s3, %s2644_s23  ;;  %v665_v26 = vmax.f32 %v2327_v23, 0.0  ;;  %v666_v27 = vmax.f32 %v2328_v24, 0.0 }
  0x17   : > { %v1294_v14 = vmax.f32 %v2387_v6, 0.0  ;;  %v1295_v15 = vmax.f32 %v2388_v7, 0.0  ;;  %1641 = vmatpush.bf16.msra.mxu3 %v2318_v12  ;;  %v2317_v18 = vld [vmem:[%s550_s10] sm:$0xff]  ;;  %v2464_v25 = vld [vmem:[%s2656_s30 + $0x8] sm:$0xff]   ;;  %v667_v40 = vmax.f32 %v2331_v37, 0.0  ;;  %v668_v41 = vmax.f32 %v2332_v38, 0.0 }
  0x18   : > { %v695_v17 = vpack.c.bf16 %v664_v11, %v663_v10  ;;  %v2281_v19 = vld [vmem:[%s2675_s0] sm:$0xff]  ;;  %v2391_v28 = vunpack.c.l.bf16 %v2464_v25  ;;  %v2392_v29 = vunpack.c.h.bf16 %v2464_v25  ;;  %v696_v30 = vpack.c.bf16 %v666_v27, %v665_v26  ;;  %v2282_v33 = vld [vmem:[%s2675_s0 + $0x8] sm:$0xff]  ;;  %v2283_v47 = vld [vmem:[%s2675_s0 + $0x10] sm:$0xff]  ;;  %s2050_s25 = sshll.u32 %s2663_s21, 2 }
  0x19   : > { %1012 = vmatpush.bf16.msra.mxu1 %v2297_v13  ;;  %v1326_v20 = vpack.c.bf16 %v1295_v15, %v1294_v14  ;;  %v2301_v22 = vld [vmem:[%s2681_s17] sm:$0xff]  ;;  %v2302_v36 = vld [vmem:[%s2681_s17 + $0x8] sm:$0xff]  ;;  %v2395_v42 = vunpack.c.l.bf16 %v2465_v39  ;;  %v2396_v43 = vunpack.c.h.bf16 %v2465_v39  ;;  %v697_v44 = vpack.c.bf16 %v668_v41, %v667_v40  ;;  %v2303_v50 = vld [vmem:[%s2681_s17 + $0x10] sm:$0xff]  ;;  %s2762_s22 = scalar_lea.vmem %s2977_s9, %s2050_s25 }
  0x1a   : > { %2059 = vmatmul.msk.bf16.vlgmr.msra.gmra.mxu0 %vm727_vm0, %v695_v17  ;;  %1413 = vmatpush.bf16.msra.mxu2 %v2319_v16  ;;  %v1296_v31 = vmax.f32 %v2391_v28, 0.0  ;;  %v1297_v32 = vmax.f32 %v2392_v29, 0.0  ;;  %v2335_v51 = vunpack.c.l.bf16 %v2451_v49  ;;  %v2336_v52 = vunpack.c.h.bf16 %v2451_v49  ;;  %v2466_v53 = vld [vmem:[%s2656_s30 + $0x18] sm:$0xff]   ;;  %v2452_v63 = vld [vmem:[%s2650_s27 + $0x20] sm:$0xff]   ;;  %v2453_v13 = vld [vmem:[%s2650_s27 + $0x28] sm:$0xff]  }
  0x1b   : > { %1642 = vmatpush.bf16.msra.mxu3 %v2317_v18  ;;  %v1298_v45 = vmax.f32 %v2395_v42, 0.0  ;;  %v1299_v46 = vmax.f32 %v2396_v43, 0.0  ;;  %v2399_v56 = vunpack.c.l.bf16 %v2466_v53  ;;  %v2400_v57 = vunpack.c.h.bf16 %v2466_v53  ;;  %v2284_v61 = vld [vmem:[%s2675_s0 + $0x18] sm:$0xff]  ;;  %v2467_v3 = vld [vmem:[%s2656_s30 + $0x20] sm:$0xff]   ;;  %v2468_v17 = vld [vmem:[%s2656_s30 + $0x28] sm:$0xff]  }
  0x1c   : > { %2147 = vmatmul.msk.bf16.vlgmr.msra.gmra.mxu1 %vm727_vm0, %v2281_v19  ;;  %v1327_v34 = vpack.c.bf16 %v1297_v32, %v1296_v31  ;;  %v669_v54 = vmax.f32 %v2335_v51, 0.0  ;;  %v670_v55 = vmax.f32 %v2336_v52, 0.0  ;;  %v2304_v0 = vld [vmem:[%s2681_s17 + $0x18] sm:$0xff]  ;;  %v2339_v1 = vunpack.c.l.bf16 %v2452_v63  ;;  %v2285_v11 = vld [vmem:[%s2675_s0 + $0x20] sm:$0xff]  ;;  %v2286_v25 = vld [vmem:[%s2675_s0 + $0x28] sm:$0xff] }
  0x1d   : > { %2171 = vmatmul.msk.bf16.vlgmr.msra.gmra.mxu2 %vm727_vm0, %v1326_v20  ;;  %v1328_v48 = vpack.c.bf16 %v1299_v46, %v1298_v45  ;;  %v1300_v59 = vmax.f32 %v2399_v56, 0.0  ;;  %v1301_v60 = vmax.f32 %v2400_v57, 0.0  ;;  %v2340_v2 = vunpack.c.h.bf16 %v2452_v63  ;;  %v2305_v14 = vld [vmem:[%s2681_s17 + $0x20] sm:$0xff]  ;;  %v2454_v27 = vld [vmem:[%s2650_s27 + $0x30] sm:$0xff]   ;;  %v2306_v28 = vld [vmem:[%s2681_s17 + $0x28] sm:$0xff] }
  0x1e   : > { %2259 = vmatmul.msk.bf16.vlgmr.msra.gmra.mxu3 %vm727_vm0, %v2301_v22  ;;  %v698_v58 = vpack.c.bf16 %v670_v55, %v669_v54  ;;  %v671_v4 = vmax.f32 %v2339_v1, 0.0  ;;  %v2403_v6 = vunpack.c.l.bf16 %v2467_v3  ;;  %v2404_v7 = vunpack.c.h.bf16 %v2467_v3  ;;  %v2469_v31 = vld [vmem:[%s2656_s30 + $0x30] sm:$0xff]   ;;  %v2455_v41 = vld [vmem:[%s2650_s27 + $0x38] sm:$0xff]   ;;  %v2456_v55 = vld [vmem:[%s2650_s27 + $0x40] sm:$0xff]  }
  0x1f   : > { %v1329_v62 = vpack.c.bf16 %v1301_v60, %v1300_v59  ;;  %v672_v5 = vmax.f32 %v2340_v2, 0.0  ;;  %v2343_v15 = vunpack.c.l.bf16 %v2453_v13  ;;  %v2344_v16 = vunpack.c.h.bf16 %v2453_v13  ;;  %v2287_v39 = vld [vmem:[%s2675_s0 + $0x30] sm:$0xff]  ;;  %v2470_v45 = vld [vmem:[%s2656_s30 + $0x38] sm:$0xff]   ;;  %v2471_v59 = vld [vmem:[%s2656_s30 + $0x40] sm:$0xff]  }
  0x20   : > { %v1302_v9 = vmax.f32 %v2403_v6, 0.0  ;;  %v1303_v10 = vmax.f32 %v2404_v7, 0.0  ;;  %v2407_v20 = vunpack.c.l.bf16 %v2468_v17  ;;  %v2408_v21 = vunpack.c.h.bf16 %v2468_v17  ;;  %v2307_v42 = vld [vmem:[%s2681_s17 + $0x30] sm:$0xff]  ;;  %v2288_v53 = vld [vmem:[%s2675_s0 + $0x38] sm:$0xff] }
  0x21   : > { %v699_v8 = vpack.c.bf16 %v672_v5, %v671_v4  ;;  %v673_v18 = vmax.f32 %v2343_v15, 0.0  ;;  %v674_v19 = vmax.f32 %v2344_v16, 0.0  ;;  %v2347_v29 = vunpack.c.l.bf16 %v2454_v27  ;;  %v2308_v56 = vld [vmem:[%s2681_s17 + $0x38] sm:$0xff]  ;;  %v2750_v4 = vld [vmem:[%s2976_s8] ss:$0 sm:$0xff]  ;;  %v2472_v16 = vld [vmem:[%s2656_s30 + $0x48] sm:$0xff]  }
  0x22   : > { %v1330_v12 = vpack.c.bf16 %v1303_v10, %v1302_v9  ;;  %v1304_v23 = vmax.f32 %v2407_v20, 0.0  ;;  %v1305_v24 = vmax.f32 %v2408_v21, 0.0  ;;  %v2412_v35 = vunpack.c.h.bf16 %v2469_v31  ;;  %v2289_v5 = vld [vmem:[%s2675_s0 + $0x40] sm:$0xff] }
  0x23   : > { %v700_v22 = vpack.c.bf16 %v674_v19, %v673_v18  ;;  %v675_v32 = vmax.f32 %v2347_v29, 0.0  ;;  %v2351_v43 = vunpack.c.l.bf16 %v2455_v41  ;;  %v2416_v49 = vunpack.c.h.bf16 %v2470_v45  ;;  %v2309_v10 = vld [vmem:[%s2681_s17 + $0x40] sm:$0xff] }
  0x24   : > { %v1331_v26 = vpack.c.bf16 %v1305_v24, %v1304_v23  ;;  %v1307_v38 = vmax.f32 %v2412_v35, 0.0  ;;  %v2355_v57 = vunpack.c.l.bf16 %v2456_v55  ;;  %v2420_v63 = vunpack.c.h.bf16 %v2471_v59  ;;  %v2771_v18 = vld [vmem:[%s2976_s8] ss:$0 sm:$0xff] }
  0x25   : > { %v677_v46 = vmax.f32 %v2351_v43, 0.0  ;;  %v1309_v52 = vmax.f32 %v2416_v49, 0.0  ;;  %v2423_v23 = vunpack.c.l.bf16 %v2472_v16  ;;  %v2424_v24 = vunpack.c.h.bf16 %v2472_v16  ;;  %v2310_v43 = vld [vmem:[%s2681_s17 + $0x48] sm:$0xff] }
  0x26   : > { %v679_v60 = vmax.f32 %v2355_v57, 0.0  ;;  %v1311_v3 = vmax.f32 %v2420_v63, 0.0 }
  0x2a   : > { %2060 = vmatmul.msk.bf16.gmra.mxu0 %vm727_vm0, %v696_v30  ;;  %v2348_v30 = vunpack.c.h.bf16 %v2454_v27 }
  0x2c   : > { %2148 = vmatmul.msk.bf16.gmra.mxu1 %vm727_vm0, %v2282_v33  ;;  %v676_v33 = vmax.f32 %v2348_v30, 0.0 }
  0x2d   : > { %2172 = vmatmul.msk.bf16.gmra.mxu2 %vm727_vm0, %v1327_v34  ;;  %v2411_v34 = vunpack.c.l.bf16 %v2469_v31  ;;  %v1312_v31 = vmax.f32 %v2423_v23, 0.0  ;;  %v2474_v23 = vld [vmem:[%s2656_s30 + $0x58] sm:$0xff]  }
  0x2e   : > { %2260 = vmatmul.msk.bf16.gmra.mxu3 %vm727_vm0, %v2302_v36  ;;  %v701_v36 = vpack.c.bf16 %v676_v33, %v675_v32  ;;  %v1313_v32 = vmax.f32 %v2424_v24, 0.0 }
  0x2f   : > { %v1306_v37 = vmax.f32 %v2411_v34, 0.0 }
  0x31   : > { %v1332_v40 = vpack.c.bf16 %v1307_v38, %v1306_v37 }
  0x3a   : > { %2061 = vmatmul.msk.bf16.gmra.mxu0 %vm727_vm0, %v697_v44  ;;  %v2352_v44 = vunpack.c.h.bf16 %v2455_v41 }
  0x3c   : > { %2149 = vmatmul.msk.bf16.gmra.mxu1 %vm727_vm0, %v2283_v47  ;;  %v678_v47 = vmax.f32 %v2352_v44, 0.0 }
  0x3d   : > { %2173 = vmatmul.msk.bf16.gmra.mxu2 %vm727_vm0, %v1328_v48  ;;  %v2415_v48 = vunpack.c.l.bf16 %v2470_v45 }
  0x3e   : > { %2261 = vmatmul.msk.bf16.gmra.mxu3 %vm727_vm0, %v2303_v50  ;;  %v702_v50 = vpack.c.bf16 %v678_v47, %v677_v46 }
  0x3f   : > { %v1308_v51 = vmax.f32 %v2415_v48, 0.0 }
  0x41   : > { %v1333_v54 = vpack.c.bf16 %v1309_v52, %v1308_v51  ;;  %v2473_v51 = vld [vmem:[%s2656_s30 + $0x50] sm:$0xff]  }
  0x42   : > { %v2427_v57 = vunpack.c.l.bf16 %v2473_v51 }
  0x4a   : > { %2062 = vmatmul.msk.bf16.gmra.mxu0 %vm727_vm0, %v698_v58  ;;  %v2356_v58 = vunpack.c.h.bf16 %v2456_v55 }
  0x4c   : > { %2150 = vmatmul.msk.bf16.gmra.mxu1 %vm727_vm0, %v2284_v61  ;;  %v680_v61 = vmax.f32 %v2356_v58, 0.0  ;;  %v2428_v58 = vunpack.c.h.bf16 %v2473_v51 }
  0x4d   : > { %2174 = vmatmul.msk.bf16.gmra.mxu2 %vm727_vm0, %v1329_v62  ;;  %v2419_v62 = vunpack.c.l.bf16 %v2471_v59 }
  0x4e   : > { %2262 = vmatmul.msk.bf16.gmra.mxu3 %vm727_vm0, %v2304_v0  ;;  %v703_v0 = vpack.c.bf16 %v680_v61, %v679_v60 }
  0x4f   : > { %v1310_v2 = vmax.f32 %v2419_v62, 0.0 }
  0x51   : > { %v1334_v7 = vpack.c.bf16 %v1311_v3, %v1310_v2  ;;  %v1315_v2 = vmax.f32 %v2428_v58, 0.0 }
  0x5a   : > { %2063 = vmatmul.msk.bf16.gmra.mxu0 %vm727_vm0, %v699_v8  ;;  %v2457_v8 = vld [vmem:[%s2650_s27 + $0x48] sm:$0xff]  }
  0x5b   : > { %v2360_v13 = vunpack.c.h.bf16 %v2457_v8 }
  0x5c   : > { %2151 = vmatmul.msk.bf16.gmra.mxu1 %vm727_vm0, %v2285_v11 }
  0x5d   : > { %2175 = vmatmul.msk.bf16.gmra.mxu2 %vm727_vm0, %v1330_v12  ;;  %v2359_v12 = vunpack.c.l.bf16 %v2457_v8  ;;  %v682_v20 = vmax.f32 %v2360_v13, 0.0 }
  0x5e   : > { %2263 = vmatmul.msk.bf16.gmra.mxu3 %vm727_vm0, %v2305_v14 }
  0x5f   : > { %v681_v19 = vmax.f32 %v2359_v12, 0.0 }
  0x61   : > { %v704_v29 = vpack.c.bf16 %v682_v20, %v681_v19 }
  0x6a   : > { %2064 = vmatmul.msk.bf16.gmra.mxu0 %vm727_vm0, %v700_v22 }
  0x6c   : > { %2152 = vmatmul.msk.bf16.gmra.mxu1 %vm727_vm0, %v2286_v25 }
  0x6d   : > { %2176 = vmatmul.msk.bf16.gmra.mxu2 %vm727_vm0, %v1331_v26 }
  0x6e   : > { %2264 = vmatmul.msk.bf16.gmra.mxu3 %vm727_vm0, %v2306_v28 }
  0x7a   : > { %2065 = vmatmul.msk.bf16.gmra.mxu0 %vm727_vm0, %v701_v36  ;;  %v2290_v36 = vld [vmem:[%s2675_s0 + $0x48] sm:$0xff] }
  0x7c   : > { %2153 = vmatmul.msk.bf16.gmra.mxu1 %vm727_vm0, %v2287_v39  ;;  %v1335_v39 = vpack.c.bf16 %v1313_v32, %v1312_v31 }
  0x7d   : > { %2177 = vmatmul.msk.bf16.gmra.mxu2 %vm727_vm0, %v1332_v40  ;;  %v2458_v40 = vld [vmem:[%s2650_s27 + $0x50] sm:$0xff]  }
  0x7e   : > { %2265 = vmatmul.msk.bf16.gmra.mxu3 %vm727_vm0, %v2307_v42  ;;  %v2363_v46 = vunpack.c.l.bf16 %v2458_v40  ;;  %v2364_v47 = vunpack.c.h.bf16 %v2458_v40 }
  0x8a   : > { %2066 = vmatmul.msk.bf16.gmra.mxu0 %vm727_vm0, %v702_v50 }
  0x8c   : > { %2154 = vmatmul.msk.bf16.gmra.mxu1 %vm727_vm0, %v2288_v53  ;;  %v683_v53 = vmax.f32 %v2363_v46, 0.0  ;;  %v2460_v46 = vld [vmem:[%s2650_s27 + $0x60] sm:$0xff]  }
  0x8d   : > { %2178 = vmatmul.msk.bf16.gmra.mxu2 %vm727_vm0, %v1333_v54  ;;  %v684_v54 = vmax.f32 %v2364_v47, 0.0 }
  0x8e   : > { %2266 = vmatmul.msk.bf16.gmra.mxu3 %vm727_vm0, %v2308_v56 }
  0x8f   : > { %v705_v63 = vpack.c.bf16 %v684_v54, %v683_v53  ;;  %v2372_v53 = vunpack.c.h.bf16 %v2460_v46 }
  0x97   : > { %v785_v1 = vpop.f32.mrf.mxu0 }
  0x99   : > { %v1014_v6 = vpop.f32.mrf.mxu1 }
  0x9a   : > { %2067 = vmatmul.msk.bf16.gmra.mxu0 %vm727_vm0, %v703_v0  ;;  %v1015_v9 = vadd.f32 %v1014_v6, %v785_v1  ;;  %v1314_v1 = vmax.f32 %v2427_v57, 0.0  ;;  %v2475_v57 = vld [vmem:[%s2656_s30 + $0x60] sm:$0xff]  }
  0x9c   : > { %v1098_v11 = vadd.f32 %v2750_v4, %v1015_v9  ;;  %2155 = vmatmul.msk.bf16.gmra.mxu1 %vm727_vm0, %v2289_v5 }
  0x9d   : > { %2179 = vmatmul.msk.bf16.gmra.mxu2 %vm727_vm0, %v1334_v7  ;;  %v2291_v7 = vld [vmem:[%s2675_s0 + $0x50] sm:$0xff] }
  0x9e   : > { %v1130_v15 = vpack.c.bf16 %v1098_v11, %v1098_v11  ;;  %2267 = vmatmul.msk.bf16.gmra.mxu3 %vm727_vm0, %v2309_v10  ;;  %v1336_v10 = vpack.c.bf16 %v1315_v2, %v1314_v1  ;;  %v2459_v11 = vld [vmem:[%s2650_s27 + $0x58] sm:$0xff]  }
  0x9f   : > { %v787_v14 = vpop.f32.mrf.mxu0  ;;  %v2368_v19 = vunpack.c.h.bf16 %v2459_v11 }
  0xa0   : > { %1162 = vst [vmem:[%s2762_s22] sm:$0xf] %v1130_v15  ;;  %v1415_v17 = vpop.f32.mrf.mxu2 }
  0xa1   : > { %v1644_v21 = vpop.f32.mrf.mxu3  ;;  %v1016_v22 = vpop.f32.mrf.mxu1 }
  0xa2   : > { %v1645_v25 = vadd.f32 %v1644_v21, %v1415_v17  ;;  %v1017_v26 = vadd.f32 %v1016_v22, %v787_v14  ;;  %v2311_v14 = vld [vmem:[%s2681_s17 + $0x50] sm:$0xff]  ;;  %v2367_v17 = vunpack.c.l.bf16 %v2459_v11 }
  0xa4   : > { %v1728_v27 = vadd.f32 %v2771_v18, %v1645_v25  ;;  %v1099_v28 = vadd.f32 %v2750_v4, %v1017_v26  ;;  %v685_v25 = vmax.f32 %v2367_v17, 0.0  ;;  %v686_v26 = vmax.f32 %v2368_v19, 0.0  ;;  %v2461_v17 = vld [vmem:[%s2650_s27 + $0x68] sm:$0xff]  }
  0xa6   : > { %v1760_v33 = vpack.c.bf16 %v1728_v27, %v1728_v27  ;;  %v1131_v34 = vpack.c.bf16 %v1099_v28, %v1099_v28 }
  0xa7   : > { %v790_v30 = vpop.f32.mrf.mxu0 }
  0xa8   : > { %1792 = vst [vmem:[%s2762_s22 + $0x4] sm:$0xf] %v1760_v33  ;;  %v1417_v35 = vpop.f32.mrf.mxu2 }
  0xa9   : > { %1163 = vst [vmem:[%s2762_s22 + $0x8] sm:$0xf] %v1131_v34  ;;  %v1646_v37 = vpop.f32.mrf.mxu3  ;;  %v1019_v38 = vpop.f32.mrf.mxu1 }
  0xaa   : > { %2068 = vmatmul.msk.bf16.gmra.mxu0 %vm727_vm0, %v704_v29  ;;  %v1647_v41 = vadd.f32 %v1646_v37, %v1417_v35  ;;  %v1020_v42 = vadd.f32 %v1019_v38, %v790_v30  ;;  %v2431_v29 = vunpack.c.l.bf16 %v2474_v23  ;;  %v2432_v30 = vunpack.c.h.bf16 %v2474_v23 }
  0xab   : > { %v706_v35 = vpack.c.bf16 %v686_v26, %v685_v25  ;;  %v2376_v25 = vunpack.c.h.bf16 %v2461_v17 }
  0xac   : > { %v1729_v44 = vadd.f32 %v2771_v18, %v1647_v41  ;;  %v1100_v45 = vadd.f32 %v2750_v4, %v1020_v42  ;;  %2156 = vmatmul.msk.bf16.gmra.mxu1 %vm727_vm0, %v2290_v36  ;;  %v1316_v37 = vmax.f32 %v2431_v29, 0.0  ;;  %v1317_v38 = vmax.f32 %v2432_v30, 0.0  ;;  %v2292_v42 = vld [vmem:[%s2675_s0 + $0x58] sm:$0xff]  ;;  %v2476_v29 = vld [vmem:[%s2656_s30 + $0x68] sm:$0xff]  }
  0xad   : > { %2180 = vmatmul.msk.bf16.gmra.mxu2 %vm727_vm0, %v1335_v39 }
  0xae   : > { %v1761_v49 = vpack.c.bf16 %v1729_v44, %v1729_v44  ;;  %v1132_v50 = vpack.c.bf16 %v1100_v45, %v1100_v45  ;;  %2268 = vmatmul.msk.bf16.gmra.mxu3 %vm727_vm0, %v2310_v43  ;;  %v1337_v45 = vpack.c.bf16 %v1317_v38, %v1316_v37 }
  0xaf   : > { %v792_v48 = vpop.f32.mrf.mxu0 }
  0xb0   : > { %1793 = vst [vmem:[%s2762_s22 + $0xc] sm:$0xf] %v1761_v49  ;;  %v1420_v52 = vpop.f32.mrf.mxu2  ;;  %v2312_v49 = vld [vmem:[%s2681_s17 + $0x58] sm:$0xff] }
  0xb1   : > { %1164 = vst [vmem:[%s2762_s22 + $0x10] sm:$0xf] %v1132_v50  ;;  %v1649_v55 = vpop.f32.mrf.mxu3  ;;  %v1021_v56 = vpop.f32.mrf.mxu1 }
  0xb2   : > { %v1650_v59 = vadd.f32 %v1649_v55, %v1420_v52  ;;  %v1022_v60 = vadd.f32 %v1021_v56, %v792_v48  ;;  %v2371_v52 = vunpack.c.l.bf16 %v2460_v46 }
  0xb4   : > { %v1730_v61 = vadd.f32 %v2771_v18, %v1650_v59  ;;  %v1101_v62 = vadd.f32 %v2750_v4, %v1022_v60  ;;  %v687_v59 = vmax.f32 %v2371_v52, 0.0  ;;  %v688_v60 = vmax.f32 %v2372_v53, 0.0  ;;  %v2462_v52 = vld [vmem:[%s2650_s27 + $0x70] sm:$0xff]  }
  0xb6   : > { %v1762_v3 = vpack.c.bf16 %v1730_v61, %v1730_v61  ;;  %v1133_v5 = vpack.c.bf16 %v1101_v62, %v1101_v62 }
  0xb7   : > { %v795_v0 = vpop.f32.mrf.mxu0 }
  0xb8   : > { %1794 = vst [vmem:[%s2762_s22 + $0x14] sm:$0xf] %v1762_v3  ;;  %v1422_v6 = vpop.f32.mrf.mxu2 }
  0xb9   : > { %1165 = vst [vmem:[%s2762_s22 + $0x18] sm:$0xf] %v1133_v5  ;;  %v1651_v8 = vpop.f32.mrf.mxu3  ;;  %v1024_v9 = vpop.f32.mrf.mxu1 }
  0xba   : > { %2069 = vmatmul.msk.bf16.gmra.mxu0 %vm727_vm0, %v705_v63  ;;  %v1652_v12 = vadd.f32 %v1651_v8, %v1422_v6  ;;  %v1025_v13 = vadd.f32 %v1024_v9, %v795_v0  ;;  %v2435_v63 = vunpack.c.l.bf16 %v2475_v57  ;;  %v2436_v0 = vunpack.c.h.bf16 %v2475_v57 }
  0xbb   : > { %v707_v6 = vpack.c.bf16 %v688_v60, %v687_v59  ;;  %v2380_v59 = vunpack.c.h.bf16 %v2462_v52 }
  0xbc   : > { %v1731_v15 = vadd.f32 %v2771_v18, %v1652_v12  ;;  %v1102_v16 = vadd.f32 %v2750_v4, %v1025_v13  ;;  %2157 = vmatmul.msk.bf16.gmra.mxu1 %vm727_vm0, %v2291_v7  ;;  %v1318_v8 = vmax.f32 %v2435_v63, 0.0  ;;  %v1319_v9 = vmax.f32 %v2436_v0, 0.0  ;;  %v2293_v13 = vld [vmem:[%s2675_s0 + $0x60] sm:$0xff]  ;;  %v2477_v63 = vld [vmem:[%s2656_s30 + $0x70] sm:$0xff]  }
  0xbd   : > { %2181 = vmatmul.msk.bf16.gmra.mxu2 %vm727_vm0, %v1336_v10 }
  0xbe   : > { %v1763_v21 = vpack.c.bf16 %v1731_v15, %v1731_v15  ;;  %v1134_v22 = vpack.c.bf16 %v1102_v16, %v1102_v16  ;;  %2269 = vmatmul.msk.bf16.gmra.mxu3 %vm727_vm0, %v2311_v14  ;;  %v1338_v16 = vpack.c.bf16 %v1319_v9, %v1318_v8 }
  0xbf   : > { %v797_v20 = vpop.f32.mrf.mxu0 }
  0xc0   : > { %1795 = vst [vmem:[%s2762_s22 + $0x1c] sm:$0xf] %v1763_v21  ;;  %v1425_v24 = vpop.f32.mrf.mxu2  ;;  %v2313_v21 = vld [vmem:[%s2681_s17 + $0x60] sm:$0xff] }
  0xc1   : > { %1166 = vst [vmem:[%s2762_s22 + $0x20] sm:$0xf] %v1134_v22  ;;  %v1654_v27 = vpop.f32.mrf.mxu3  ;;  %v1026_v28 = vpop.f32.mrf.mxu1 }
  0xc2   : > { %v1655_v31 = vadd.f32 %v1654_v27, %v1425_v24  ;;  %v1027_v32 = vadd.f32 %v1026_v28, %v797_v20  ;;  %v2375_v24 = vunpack.c.l.bf16 %v2461_v17 }
  0xc4   : > { %v1732_v33 = vadd.f32 %v2771_v18, %v1655_v31  ;;  %v1103_v34 = vadd.f32 %v2750_v4, %v1027_v32  ;;  %v689_v31 = vmax.f32 %v2375_v24, 0.0  ;;  %v690_v32 = vmax.f32 %v2376_v25, 0.0  ;;  %v2463_v24 = vld [vmem:[%s2650_s27 + $0x78] sm:$0xff]  }
  0xc6   : > { %v1764_v39 = vpack.c.bf16 %v1732_v33, %v1732_v33  ;;  %v1135_v40 = vpack.c.bf16 %v1103_v34, %v1103_v34 }
  0xc7   : > { %v800_v36 = vpop.f32.mrf.mxu0 }
  0xc8   : > { %1796 = vst [vmem:[%s2762_s22 + $0x24] sm:$0xf] %v1764_v39  ;;  %v1427_v41 = vpop.f32.mrf.mxu2 }
  0xc9   : > { %1167 = vst [vmem:[%s2762_s22 + $0x28] sm:$0xf] %v1135_v40  ;;  %v1656_v43 = vpop.f32.mrf.mxu3  ;;  %v1029_v44 = vpop.f32.mrf.mxu1 }
  0xca   : > { %2070 = vmatmul.msk.bf16.gmra.mxu0 %vm727_vm0, %v706_v35  ;;  %v1657_v47 = vadd.f32 %v1656_v43, %v1427_v41  ;;  %v1030_v48 = vadd.f32 %v1029_v44, %v800_v36  ;;  %v2439_v35 = vunpack.c.l.bf16 %v2476_v29  ;;  %v2440_v36 = vunpack.c.h.bf16 %v2476_v29 }
  0xcb   : > { %v708_v41 = vpack.c.bf16 %v690_v32, %v689_v31  ;;  %v2384_v31 = vunpack.c.h.bf16 %v2463_v24 }
  0xcc   : > { %v1733_v50 = vadd.f32 %v2771_v18, %v1657_v47  ;;  %v1104_v51 = vadd.f32 %v2750_v4, %v1030_v48  ;;  %2158 = vmatmul.msk.bf16.gmra.mxu1 %vm727_vm0, %v2292_v42  ;;  %v1320_v43 = vmax.f32 %v2439_v35, 0.0  ;;  %v1321_v44 = vmax.f32 %v2440_v36, 0.0  ;;  %v2294_v48 = vld [vmem:[%s2675_s0 + $0x68] sm:$0xff]  ;;  %v2478_v35 = vld [vmem:[%s2656_s30 + $0x78] sm:$0xff]  }
  0xcd   : > { %2182 = vmatmul.msk.bf16.gmra.mxu2 %vm727_vm0, %v1337_v45 }
  0xce   : > { %v1765_v55 = vpack.c.bf16 %v1733_v50, %v1733_v50  ;;  %v1136_v56 = vpack.c.bf16 %v1104_v51, %v1104_v51  ;;  %2270 = vmatmul.msk.bf16.gmra.mxu3 %vm727_vm0, %v2312_v49  ;;  %v1339_v51 = vpack.c.bf16 %v1321_v44, %v1320_v43 }
  0xcf   : > { %v802_v54 = vpop.f32.mrf.mxu0 }
  0xd0   : > { %1797 = vst [vmem:[%s2762_s22 + $0x2c] sm:$0xf] %v1765_v55  ;;  %v1430_v58 = vpop.f32.mrf.mxu2  ;;  %v2314_v55 = vld [vmem:[%s2681_s17 + $0x68] sm:$0xff] }
  0xd1   : > { %1168 = vst [vmem:[%s2762_s22 + $0x30] sm:$0xf] %v1136_v56  ;;  %v1659_v61 = vpop.f32.mrf.mxu3  ;;  %v1031_v62 = vpop.f32.mrf.mxu1 }
  0xd2   : > { %v1660_v1 = vadd.f32 %v1659_v61, %v1430_v58  ;;  %v1032_v2 = vadd.f32 %v1031_v62, %v802_v54  ;;  %v2379_v58 = vunpack.c.l.bf16 %v2462_v52 }
  0xd4   : > { %v1734_v3 = vadd.f32 %v2771_v18, %v1660_v1  ;;  %v1105_v5 = vadd.f32 %v2750_v4, %v1032_v2  ;;  %v691_v1 = vmax.f32 %v2379_v58, 0.0  ;;  %v692_v2 = vmax.f32 %v2380_v59, 0.0 }
  0xd6   : > { %v1766_v10 = vpack.c.bf16 %v1734_v3, %v1734_v3  ;;  %v1137_v11 = vpack.c.bf16 %v1105_v5, %v1105_v5 }
  0xd7   : > { %v805_v7 = vpop.f32.mrf.mxu0 }
  0xd8   : > { %1798 = vst [vmem:[%s2762_s22 + $0x34] sm:$0xf] %v1766_v10  ;;  %v1432_v12 = vpop.f32.mrf.mxu2 }
  0xd9   : > { %1169 = vst [vmem:[%s2762_s22 + $0x38] sm:$0xf] %v1137_v11  ;;  %v1661_v14 = vpop.f32.mrf.mxu3  ;;  %v1034_v15 = vpop.f32.mrf.mxu1 }
  0xda   : > { %2071 = vmatmul.msk.bf16.gmra.mxu0 %vm727_vm0, %v707_v6  ;;  %v1662_v19 = vadd.f32 %v1661_v14, %v1432_v12  ;;  %v1035_v20 = vadd.f32 %v1034_v15, %v805_v7  ;;  %v2443_v6 = vunpack.c.l.bf16 %v2477_v63  ;;  %v2444_v7 = vunpack.c.h.bf16 %v2477_v63 }
  0xdb   : > { %v709_v12 = vpack.c.bf16 %v692_v2, %v691_v1 }
  0xdc   : > { %v1735_v22 = vadd.f32 %v2771_v18, %v1662_v19  ;;  %v1106_v23 = vadd.f32 %v2750_v4, %v1035_v20  ;;  %2159 = vmatmul.msk.bf16.gmra.mxu1 %vm727_vm0, %v2293_v13  ;;  %v1322_v14 = vmax.f32 %v2443_v6, 0.0  ;;  %v1323_v15 = vmax.f32 %v2444_v7, 0.0  ;;  %v2295_v20 = vld [vmem:[%s2675_s0 + $0x70] sm:$0xff] }
  0xdd   : > { %2183 = vmatmul.msk.bf16.gmra.mxu2 %vm727_vm0, %v1338_v16 }
  0xde   : > { %v1767_v27 = vpack.c.bf16 %v1735_v22, %v1735_v22  ;;  %v1138_v28 = vpack.c.bf16 %v1106_v23, %v1106_v23  ;;  %2271 = vmatmul.msk.bf16.gmra.mxu3 %vm727_vm0, %v2313_v21  ;;  %v1340_v23 = vpack.c.bf16 %v1323_v15, %v1322_v14 }
  0xdf   : > { %v807_v26 = vpop.f32.mrf.mxu0 }
  0xe0   : > { %1799 = vst [vmem:[%s2762_s22 + $0x3c] sm:$0xf] %v1767_v27  ;;  %v1435_v30 = vpop.f32.mrf.mxu2  ;;  %v2315_v27 = vld [vmem:[%s2681_s17 + $0x70] sm:$0xff] }
  0xe1   : > { %1170 = vst [vmem:[%s2762_s22 + $0x40] sm:$0xf] %v1138_v28  ;;  %v1664_v33 = vpop.f32.mrf.mxu3  ;;  %v1036_v34 = vpop.f32.mrf.mxu1 }
  0xe2   : > { %v1665_v37 = vadd.f32 %v1664_v33, %v1435_v30  ;;  %v1037_v38 = vadd.f32 %v1036_v34, %v807_v26  ;;  %v2383_v30 = vunpack.c.l.bf16 %v2463_v24 }
  0xe4   : > { %v1736_v39 = vadd.f32 %v2771_v18, %v1665_v37  ;;  %v1107_v40 = vadd.f32 %v2750_v4, %v1037_v38  ;;  %v693_v37 = vmax.f32 %v2383_v30, 0.0  ;;  %v694_v38 = vmax.f32 %v2384_v31, 0.0 }
  0xe6   : > { %v1768_v45 = vpack.c.bf16 %v1736_v39, %v1736_v39  ;;  %v1139_v46 = vpack.c.bf16 %v1107_v40, %v1107_v40 }
  0xe7   : > { %v810_v42 = vpop.f32.mrf.mxu0 }
  0xe8   : > { %1800 = vst [vmem:[%s2762_s22 + $0x44] sm:$0xf] %v1768_v45  ;;  %v1437_v47 = vpop.f32.mrf.mxu2 }
  0xe9   : > { %1171 = vst [vmem:[%s2762_s22 + $0x48] sm:$0xf] %v1139_v46  ;;  %v1666_v49 = vpop.f32.mrf.mxu3  ;;  %v1039_v50 = vpop.f32.mrf.mxu1 }
  0xea   : > { %2072 = vmatmul.msk.bf16.gmra.mxu0 %vm727_vm0, %v708_v41  ;;  %v1667_v53 = vadd.f32 %v1666_v49, %v1437_v47  ;;  %v1040_v54 = vadd.f32 %v1039_v50, %v810_v42  ;;  %v2447_v41 = vunpack.c.l.bf16 %v2478_v35  ;;  %v2448_v42 = vunpack.c.h.bf16 %v2478_v35 }
  0xeb   : > { %v710_v47 = vpack.c.bf16 %v694_v38, %v693_v37 }
  0xec   : > { %v1737_v56 = vadd.f32 %v2771_v18, %v1667_v53  ;;  %v1108_v57 = vadd.f32 %v2750_v4, %v1040_v54  ;;  %2160 = vmatmul.msk.bf16.gmra.mxu1 %vm727_vm0, %v2294_v48  ;;  %v1324_v49 = vmax.f32 %v2447_v41, 0.0  ;;  %v1325_v50 = vmax.f32 %v2448_v42, 0.0  ;;  %v2296_v54 = vld [vmem:[%s2675_s0 + $0x78] sm:$0xff] }
  0xed   : > { %2184 = vmatmul.msk.bf16.gmra.mxu2 %vm727_vm0, %v1339_v51 }
  0xee   : > { %v1769_v61 = vpack.c.bf16 %v1737_v56, %v1737_v56  ;;  %v1140_v62 = vpack.c.bf16 %v1108_v57, %v1108_v57  ;;  %2272 = vmatmul.msk.bf16.gmra.mxu3 %vm727_vm0, %v2314_v55  ;;  %v1341_v57 = vpack.c.bf16 %v1325_v50, %v1324_v49 }
  0xef   : > { %v812_v60 = vpop.f32.mrf.mxu0 }
  0xf0   : > { %1801 = vst [vmem:[%s2762_s22 + $0x4c] sm:$0xf] %v1769_v61  ;;  %v1440_v0 = vpop.f32.mrf.mxu2 }
  0xf1   : > { %1172 = vst [vmem:[%s2762_s22 + $0x50] sm:$0xf] %v1140_v62  ;;  %v1669_v3 = vpop.f32.mrf.mxu3  ;;  %v1041_v5 = vpop.f32.mrf.mxu1 }
  0xf2   : > { %v1670_v8 = vadd.f32 %v1669_v3, %v1440_v0  ;;  %v1042_v9 = vadd.f32 %v1041_v5, %v812_v60  ;;  %v2316_v60 = vld [vmem:[%s2681_s17 + $0x78] sm:$0xff] }
  0xf4   : > { %v1738_v10 = vadd.f32 %v2771_v18, %v1670_v8  ;;  %v1109_v11 = vadd.f32 %v2750_v4, %v1042_v9 }
  0xf6   : > { %v1770_v16 = vpack.c.bf16 %v1738_v10, %v1738_v10  ;;  %v1141_v17 = vpack.c.bf16 %v1109_v11, %v1109_v11 }
  0xf7   : > { %v815_v13 = vpop.f32.mrf.mxu0 }
  0xf8   : > { %1802 = vst [vmem:[%s2762_s22 + $0x54] sm:$0xf] %v1770_v16  ;;  %v1442_v19 = vpop.f32.mrf.mxu2 }
  0xf9   : > { %1173 = vst [vmem:[%s2762_s22 + $0x58] sm:$0xf] %v1141_v17  ;;  %v1671_v21 = vpop.f32.mrf.mxu3  ;;  %v1044_v22 = vpop.f32.mrf.mxu1 }
  0xfa   : > { %2073 = vmatmul.msk.bf16.gmra.mxu0 %vm727_vm0, %v709_v12  ;;  %v1672_v25 = vadd.f32 %v1671_v21, %v1442_v19  ;;  %v1045_v26 = vadd.f32 %v1044_v22, %v815_v13 }
  0xfc   : > { %v1739_v28 = vadd.f32 %v2771_v18, %v1672_v25  ;;  %v1110_v29 = vadd.f32 %v2750_v4, %v1045_v26  ;;  %2161 = vmatmul.msk.bf16.gmra.mxu1 %vm727_vm0, %v2295_v20 }
  0xfd   : > { %2185 = vmatmul.msk.bf16.gmra.mxu2 %vm727_vm0, %v1340_v23 }
  0xfe   : > { %v1771_v33 = vpack.c.bf16 %v1739_v28, %v1739_v28  ;;  %v1142_v34 = vpack.c.bf16 %v1110_v29, %v1110_v29  ;;  %2273 = vmatmul.msk.bf16.gmra.mxu3 %vm727_vm0, %v2315_v27 }
  0xff   : > { %v817_v32 = vpop.f32.mrf.mxu0 }
 0x100   : > { %1803 = vst [vmem:[%s2762_s22 + $0x5c] sm:$0xf] %v1771_v33  ;;  %v1445_v36 = vpop.f32.mrf.mxu2 }
 0x101   : > { %1174 = vst [vmem:[%s2762_s22 + $0x60] sm:$0xf] %v1142_v34  ;;  %v1674_v39 = vpop.f32.mrf.mxu3  ;;  %v1046_v40 = vpop.f32.mrf.mxu1 }
 0x102   : > { %v1675_v43 = vadd.f32 %v1674_v39, %v1445_v36  ;;  %v1047_v44 = vadd.f32 %v1046_v40, %v817_v32 }
 0x104   : > { %v1740_v45 = vadd.f32 %v2771_v18, %v1675_v43  ;;  %v1111_v46 = vadd.f32 %v2750_v4, %v1047_v44 }
 0x106   : > { %v1772_v51 = vpack.c.bf16 %v1740_v45, %v1740_v45  ;;  %v1143_v52 = vpack.c.bf16 %v1111_v46, %v1111_v46 }
 0x107   : > { %v820_v48 = vpop.f32.mrf.mxu0 }
 0x108   : > { %1804 = vst [vmem:[%s2762_s22 + $0x64] sm:$0xf] %v1772_v51  ;;  %v1447_v53 = vpop.f32.mrf.mxu2 }
 0x109   : > { %1175 = vst [vmem:[%s2762_s22 + $0x68] sm:$0xf] %v1143_v52  ;;  %v1676_v55 = vpop.f32.mrf.mxu3  ;;  %v1049_v56 = vpop.f32.mrf.mxu1 }
 0x10a   : > { %2074 = vmatmul.msk.bf16.gmra.mxu0 %vm727_vm0, %v710_v47  ;;  %v1677_v58 = vadd.f32 %v1676_v55, %v1447_v53  ;;  %v1050_v59 = vadd.f32 %v1049_v56, %v820_v48 }
 0x10c   : > { %v1741_v61 = vadd.f32 %v2771_v18, %v1677_v58  ;;  %v1112_v62 = vadd.f32 %v2750_v4, %v1050_v59  ;;  %2162 = vmatmul.msk.bf16.gmra.mxu1 %vm727_vm0, %v2296_v54 }
 0x10d   : > { %2186 = vmatmul.msk.bf16.gmra.mxu2 %vm727_vm0, %v1341_v57 }
 0x10e   : > { %v1773_v0 = vpack.c.bf16 %v1741_v61, %v1741_v61  ;;  %v1144_v1 = vpack.c.bf16 %v1112_v62, %v1112_v62  ;;  %2274 = vmatmul.msk.bf16.gmra.mxu3 %vm727_vm0, %v2316_v60 }
 0x10f   : > { %v822_v63 = vpop.f32.mrf.mxu0 }
 0x110   : > { %1805 = vst [vmem:[%s2762_s22 + $0x6c] sm:$0xf] %v1773_v0  ;;  %v1450_v2 = vpop.f32.mrf.mxu2 }
 0x111   : > { %1176 = vst [vmem:[%s2762_s22 + $0x70] sm:$0xf] %v1144_v1  ;;  %v1679_v3 = vpop.f32.mrf.mxu3  ;;  %v1051_v5 = vpop.f32.mrf.mxu1 }
 0x112   : > { %v1680_v6 = vadd.f32 %v1679_v3, %v1450_v2  ;;  %v1052_v7 = vadd.f32 %v1051_v5, %v822_v63 }
 0x114   : > { %v1742_v8 = vadd.f32 %v2771_v18, %v1680_v6  ;;  %v1113_v9 = vadd.f32 %v2750_v4, %v1052_v7 }
 0x116   : > { %v1774_v11 = vpack.c.bf16 %v1742_v8, %v1742_v8  ;;  %v1145_v12 = vpack.c.bf16 %v1113_v9, %v1113_v9 }
 0x117   : > { %v825_v10 = vpop.f32.mrf.mxu0 }
 0x118   : > { %1806 = vst [vmem:[%s2762_s22 + $0x74] sm:$0xf] %v1774_v11  ;;  %v1452_v13 = vpop.f32.mrf.mxu2 }
 0x119   : > { %1177 = vst [vmem:[%s2762_s22 + $0x78] sm:$0xf] %v1145_v12  ;;  %v1681_v14 = vpop.f32.mrf.mxu3  ;;  %v1054_v15 = vpop.f32.mrf.mxu1 }
 0x11a   : > { %v1682_v16 = vadd.f32 %v1681_v14, %v1452_v13  ;;  %v1055_v17 = vadd.f32 %v1054_v15, %v825_v10 }
 0x11c   : > { %v1743_v19 = vadd.f32 %v2771_v18, %v1682_v16  ;;  %v1114_v20 = vadd.f32 %v2750_v4, %v1055_v17 }
 0x11e   : > { %v1775_v22 = vpack.c.bf16 %v1743_v19, %v1743_v19  ;;  %v1146_v23 = vpack.c.bf16 %v1114_v20, %v1114_v20 }
 0x11f   : > { %v827_v21 = vpop.f32.mrf.mxu0 }
 0x120   : > { %1807 = vst [vmem:[%s2762_s22 + $0x7c] sm:$0xf] %v1775_v22  ;;  %v1455_v24 = vpop.f32.mrf.mxu2 }
 0x121   : > { %1178 = vst [vmem:[%s2762_s22 + $0x80] sm:$0xf] %v1146_v23  ;;  %v1684_v25 = vpop.f32.mrf.mxu3  ;;  %v1056_v26 = vpop.f32.mrf.mxu1 }
 0x122   : > { %v1685_v27 = vadd.f32 %v1684_v25, %v1455_v24  ;;  %v1057_v28 = vadd.f32 %v1056_v26, %v827_v21 }
 0x124   : > { %v1744_v29 = vadd.f32 %v2771_v18, %v1685_v27  ;;  %v1115_v30 = vadd.f32 %v2750_v4, %v1057_v28 }
 0x126   : > { %v1776_v32 = vpack.c.bf16 %v1744_v29, %v1744_v29  ;;  %v1147_v33 = vpack.c.bf16 %v1115_v30, %v1115_v30 }
 0x127   : > { %v830_v31 = vpop.f32.mrf.mxu0 }
 0x128   : > { %1808 = vst [vmem:[%s2762_s22 + $0x84] sm:$0xf] %v1776_v32  ;;  %v1457_v34 = vpop.f32.mrf.mxu2 }
 0x129   : > { %1179 = vst [vmem:[%s2762_s22 + $0x88] sm:$0xf] %v1147_v33  ;;  %v1686_v35 = vpop.f32.mrf.mxu3  ;;  %v1059_v36 = vpop.f32.mrf.mxu1 }
 0x12a   : > { %v1687_v37 = vadd.f32 %v1686_v35, %v1457_v34  ;;  %v1060_v38 = vadd.f32 %v1059_v36, %v830_v31 }
 0x12c   : > { %v1745_v39 = vadd.f32 %v2771_v18, %v1687_v37  ;;  %v1116_v40 = vadd.f32 %v2750_v4, %v1060_v38 }
 0x12e   : > { %v1777_v42 = vpack.c.bf16 %v1745_v39, %v1745_v39  ;;  %v1148_v43 = vpack.c.bf16 %v1116_v40, %v1116_v40 }
 0x12f   : > { %v832_v41 = vpop.f32.mrf.mxu0 }
 0x130   : > { %1809 = vst [vmem:[%s2762_s22 + $0x8c] sm:$0xf] %v1777_v42  ;;  %v1460_v44 = vpop.f32.mrf.mxu2 }
 0x131   : > { %1180 = vst [vmem:[%s2762_s22 + $0x90] sm:$0xf] %v1148_v43  ;;  %v1689_v45 = vpop.f32.mrf.mxu3  ;;  %v1061_v46 = vpop.f32.mrf.mxu1 }
 0x132   : > { %v1690_v47 = vadd.f32 %v1689_v45, %v1460_v44  ;;  %v1062_v48 = vadd.f32 %v1061_v46, %v832_v41 }
 0x134   : > { %v1746_v49 = vadd.f32 %v2771_v18, %v1690_v47  ;;  %v1117_v50 = vadd.f32 %v2750_v4, %v1062_v48 }
 0x136   : > { %v1778_v52 = vpack.c.bf16 %v1746_v49, %v1746_v49  ;;  %v1149_v53 = vpack.c.bf16 %v1117_v50, %v1117_v50 }
 0x137   : > { %v835_v51 = vpop.f32.mrf.mxu0 }
 0x138   : > { %1810 = vst [vmem:[%s2762_s22 + $0x94] sm:$0xf] %v1778_v52  ;;  %v1462_v54 = vpop.f32.mrf.mxu2 }
 0x139   : > { %1181 = vst [vmem:[%s2762_s22 + $0x98] sm:$0xf] %v1149_v53  ;;  %v1691_v55 = vpop.f32.mrf.mxu3  ;;  %v1064_v56 = vpop.f32.mrf.mxu1 }
 0x13a   : > { %v1692_v57 = vadd.f32 %v1691_v55, %v1462_v54  ;;  %v1065_v58 = vadd.f32 %v1064_v56, %v835_v51 }
 0x13c   : > { %v1747_v59 = vadd.f32 %v2771_v18, %v1692_v57  ;;  %v1118_v60 = vadd.f32 %v2750_v4, %v1065_v58 }
 0x13e   : > { %v1779_v62 = vpack.c.bf16 %v1747_v59, %v1747_v59  ;;  %v1150_v63 = vpack.c.bf16 %v1118_v60, %v1118_v60 }
 0x13f   : > { %v837_v61 = vpop.f32.mrf.mxu0 }
 0x140   : > { %1811 = vst [vmem:[%s2762_s22 + $0x9c] sm:$0xf] %v1779_v62  ;;  %v1465_v0 = vpop.f32.mrf.mxu2 }
 0x141   : > { %1182 = vst [vmem:[%s2762_s22 + $0xa0] sm:$0xf] %v1150_v63  ;;  %v1694_v1 = vpop.f32.mrf.mxu3  ;;  %v1066_v2 = vpop.f32.mrf.mxu1 }
 0x142   : > { %v1695_v3 = vadd.f32 %v1694_v1, %v1465_v0  ;;  %v1067_v5 = vadd.f32 %v1066_v2, %v837_v61 }
 0x144   : > { %v1748_v6 = vadd.f32 %v2771_v18, %v1695_v3  ;;  %v1119_v7 = vadd.f32 %v2750_v4, %v1067_v5 }
 0x146   : > { %v1780_v9 = vpack.c.bf16 %v1748_v6, %v1748_v6  ;;  %v1151_v10 = vpack.c.bf16 %v1119_v7, %v1119_v7 }
 0x147   : > { %v840_v8 = vpop.f32.mrf.mxu0 }
 0x148   : > { %1812 = vst [vmem:[%s2762_s22 + $0xa4] sm:$0xf] %v1780_v9  ;;  %v1467_v11 = vpop.f32.mrf.mxu2 }
 0x149   : > { %1183 = vst [vmem:[%s2762_s22 + $0xa8] sm:$0xf] %v1151_v10  ;;  %v1696_v12 = vpop.f32.mrf.mxu3  ;;  %v1069_v13 = vpop.f32.mrf.mxu1 }
 0x14a   : > { %v1697_v14 = vadd.f32 %v1696_v12, %v1467_v11  ;;  %v1070_v15 = vadd.f32 %v1069_v13, %v840_v8 }
 0x14c   : > { %v1749_v16 = vadd.f32 %v2771_v18, %v1697_v14  ;;  %v1120_v17 = vadd.f32 %v2750_v4, %v1070_v15 }
 0x14e   : > { %v1781_v20 = vpack.c.bf16 %v1749_v16, %v1749_v16  ;;  %v1152_v21 = vpack.c.bf16 %v1120_v17, %v1120_v17 }
 0x14f   : > { %v842_v19 = vpop.f32.mrf.mxu0 }
 0x150   : > { %1813 = vst [vmem:[%s2762_s22 + $0xac] sm:$0xf] %v1781_v20  ;;  %v1470_v22 = vpop.f32.mrf.mxu2 }
 0x151   : > { %1184 = vst [vmem:[%s2762_s22 + $0xb0] sm:$0xf] %v1152_v21  ;;  %v1699_v23 = vpop.f32.mrf.mxu3  ;;  %v1071_v24 = vpop.f32.mrf.mxu1 }
 0x152   : > { %v1700_v25 = vadd.f32 %v1699_v23, %v1470_v22  ;;  %v1072_v26 = vadd.f32 %v1071_v24, %v842_v19 }
 0x154   : > { %v1750_v27 = vadd.f32 %v2771_v18, %v1700_v25  ;;  %v1121_v28 = vadd.f32 %v2750_v4, %v1072_v26 }
 0x156   : > { %v1782_v30 = vpack.c.bf16 %v1750_v27, %v1750_v27  ;;  %v1153_v31 = vpack.c.bf16 %v1121_v28, %v1121_v28 }
 0x157   : > { %v845_v29 = vpop.f32.mrf.mxu0 }
 0x158   : > { %1814 = vst [vmem:[%s2762_s22 + $0xb4] sm:$0xf] %v1782_v30  ;;  %v1472_v32 = vpop.f32.mrf.mxu2 }
 0x159   : > { %1185 = vst [vmem:[%s2762_s22 + $0xb8] sm:$0xf] %v1153_v31  ;;  %v1701_v33 = vpop.f32.mrf.mxu3  ;;  %v1074_v34 = vpop.f32.mrf.mxu1 }
 0x15a   : > { %v1702_v35 = vadd.f32 %v1701_v33, %v1472_v32  ;;  %v1075_v36 = vadd.f32 %v1074_v34, %v845_v29 }
 0x15c   : > { %v1751_v37 = vadd.f32 %v2771_v18, %v1702_v35  ;;  %v1122_v38 = vadd.f32 %v2750_v4, %v1075_v36 }
 0x15e   : > { %v1783_v40 = vpack.c.bf16 %v1751_v37, %v1751_v37  ;;  %v1154_v41 = vpack.c.bf16 %v1122_v38, %v1122_v38 }
 0x15f   : > { %v847_v39 = vpop.f32.mrf.mxu0 }
 0x160   : > { %1815 = vst [vmem:[%s2762_s22 + $0xbc] sm:$0xf] %v1783_v40  ;;  %v1475_v42 = vpop.f32.mrf.mxu2 }
 0x161   : > { %1186 = vst [vmem:[%s2762_s22 + $0xc0] sm:$0xf] %v1154_v41  ;;  %v1704_v43 = vpop.f32.mrf.mxu3  ;;  %v1076_v44 = vpop.f32.mrf.mxu1 }
 0x162   : > { %v1705_v45 = vadd.f32 %v1704_v43, %v1475_v42  ;;  %v1077_v46 = vadd.f32 %v1076_v44, %v847_v39 }
 0x164   : > { %v1752_v47 = vadd.f32 %v2771_v18, %v1705_v45  ;;  %v1123_v48 = vadd.f32 %v2750_v4, %v1077_v46 }
 0x166   : > { %v1784_v50 = vpack.c.bf16 %v1752_v47, %v1752_v47  ;;  %v1155_v51 = vpack.c.bf16 %v1123_v48, %v1123_v48 }
 0x167   : > { %v850_v49 = vpop.f32.mrf.mxu0 }
 0x168   : > { %1816 = vst [vmem:[%s2762_s22 + $0xc4] sm:$0xf] %v1784_v50  ;;  %v1477_v52 = vpop.f32.mrf.mxu2 }
 0x169   : > { %1187 = vst [vmem:[%s2762_s22 + $0xc8] sm:$0xf] %v1155_v51  ;;  %v1706_v53 = vpop.f32.mrf.mxu3  ;;  %v1079_v54 = vpop.f32.mrf.mxu1 }
 0x16a   : > { %v1707_v55 = vadd.f32 %v1706_v53, %v1477_v52  ;;  %v1080_v56 = vadd.f32 %v1079_v54, %v850_v49 }
 0x16c   : > { %v1753_v57 = vadd.f32 %v2771_v18, %v1707_v55  ;;  %v1124_v58 = vadd.f32 %v2750_v4, %v1080_v56 }
 0x16e   : > { %v1785_v60 = vpack.c.bf16 %v1753_v57, %v1753_v57  ;;  %v1156_v61 = vpack.c.bf16 %v1124_v58, %v1124_v58 }
 0x16f   : > { %v852_v59 = vpop.f32.mrf.mxu0 }
 0x170   : > { %1817 = vst [vmem:[%s2762_s22 + $0xcc] sm:$0xf] %v1785_v60  ;;  %v1480_v62 = vpop.f32.mrf.mxu2 }
 0x171   : > { %1188 = vst [vmem:[%s2762_s22 + $0xd0] sm:$0xf] %v1156_v61  ;;  %v1709_v63 = vpop.f32.mrf.mxu3  ;;  %v1081_v0 = vpop.f32.mrf.mxu1 }
 0x172   : > { %v1710_v1 = vadd.f32 %v1709_v63, %v1480_v62  ;;  %v1082_v2 = vadd.f32 %v1081_v0, %v852_v59 }
 0x174   : > { %v1754_v3 = vadd.f32 %v2771_v18, %v1710_v1  ;;  %v1125_v5 = vadd.f32 %v2750_v4, %v1082_v2 }
 0x176   : > { %v1786_v7 = vpack.c.bf16 %v1754_v3, %v1754_v3  ;;  %v1157_v8 = vpack.c.bf16 %v1125_v5, %v1125_v5 }
 0x177   : > { %v855_v6 = vpop.f32.mrf.mxu0 }
 0x178   : > { %1818 = vst [vmem:[%s2762_s22 + $0xd4] sm:$0xf] %v1786_v7  ;;  %v1482_v9 = vpop.f32.mrf.mxu2 }
 0x179   : > { %1189 = vst [vmem:[%s2762_s22 + $0xd8] sm:$0xf] %v1157_v8  ;;  %v1711_v10 = vpop.f32.mrf.mxu3  ;;  %v1084_v11 = vpop.f32.mrf.mxu1 }
 0x17a   : > { %v1712_v12 = vadd.f32 %v1711_v10, %v1482_v9  ;;  %v1085_v13 = vadd.f32 %v1084_v11, %v855_v6 }
 0x17c   : > { %v1755_v14 = vadd.f32 %v2771_v18, %v1712_v12  ;;  %v1126_v15 = vadd.f32 %v2750_v4, %v1085_v13 }
 0x17e   : > { %v1787_v17 = vpack.c.bf16 %v1755_v14, %v1755_v14  ;;  %v1158_v19 = vpack.c.bf16 %v1126_v15, %v1126_v15 }
 0x17f   : > { %v857_v16 = vpop.f32.mrf.mxu0 }
 0x180   : > { %1819 = vst [vmem:[%s2762_s22 + $0xdc] sm:$0xf] %v1787_v17  ;;  %v1485_v20 = vpop.f32.mrf.mxu2 }
 0x181   : > { %1190 = vst [vmem:[%s2762_s22 + $0xe0] sm:$0xf] %v1158_v19  ;;  %v1714_v21 = vpop.f32.mrf.mxu3  ;;  %v1086_v22 = vpop.f32.mrf.mxu1 }
 0x182   : > { %v1715_v23 = vadd.f32 %v1714_v21, %v1485_v20  ;;  %v1087_v24 = vadd.f32 %v1086_v22, %v857_v16 }
 0x184   : > { %v1756_v25 = vadd.f32 %v2771_v18, %v1715_v23  ;;  %v1127_v26 = vadd.f32 %v2750_v4, %v1087_v24 }
 0x186   : > { %v1788_v28 = vpack.c.bf16 %v1756_v25, %v1756_v25  ;;  %v1159_v29 = vpack.c.bf16 %v1127_v26, %v1127_v26 }
 0x187   : > { %v860_v27 = vpop.f32.mrf.mxu0 }
 0x188   : > { %1820 = vst [vmem:[%s2762_s22 + $0xe4] sm:$0xf] %v1788_v28  ;;  %v1487_v30 = vpop.f32.mrf.mxu2 }
 0x189   : > { %1191 = vst [vmem:[%s2762_s22 + $0xe8] sm:$0xf] %v1159_v29  ;;  %v1716_v31 = vpop.f32.mrf.mxu3  ;;  %v1089_v32 = vpop.f32.mrf.mxu1 }
 0x18a   : > { %v1717_v33 = vadd.f32 %v1716_v31, %v1487_v30  ;;  %v1090_v34 = vadd.f32 %v1089_v32, %v860_v27 }
 0x18c   : > { %v1757_v35 = vadd.f32 %v2771_v18, %v1717_v33  ;;  %v1128_v36 = vadd.f32 %v2750_v4, %v1090_v34 }
 0x18e   : > { %v1789_v37 = vpack.c.bf16 %v1757_v35, %v1757_v35  ;;  %v1160_v38 = vpack.c.bf16 %v1128_v36, %v1128_v36 }
 0x18f   : > { %v862_v39 = vpop.f32.mrf.mxu0 }
 0x190   : > { %1821 = vst [vmem:[%s2762_s22 + $0xec] sm:$0xf] %v1789_v37  ;;  %v1490_v40 = vpop.f32.mrf.mxu2 }
 0x191   : > { %1192 = vst [vmem:[%s2762_s22 + $0xf0] sm:$0xf] %v1160_v38  ;;  %v1719_v41 = vpop.f32.mrf.mxu3  ;;  %v1091_v42 = vpop.f32.mrf.mxu1 }
 0x192   : > { %v1720_v43 = vadd.f32 %v1719_v41, %v1490_v40  ;;  %v1092_v44 = vadd.f32 %v1091_v42, %v862_v39 }
 0x194   : > { %v1758_v45 = vadd.f32 %v2771_v18, %v1720_v43  ;;  %v1129_v46 = vadd.f32 %v2750_v4, %v1092_v44 }
 0x196   : > { %v1790_v47 = vpack.c.bf16 %v1758_v45, %v1758_v45  ;;  %v1161_v48 = vpack.c.bf16 %v1129_v46, %v1129_v46 }
 0x198   : > { %1822 = vst [vmem:[%s2762_s22 + $0xf4] sm:$0xf] %v1790_v47  ;;  %v1492_v49 = vpop.f32.mrf.mxu2 }
 0x199   : > { %1193 = vst [vmem:[%s2762_s22 + $0xf8] sm:$0xf] %v1161_v48  ;;  %v1721_v50 = vpop.f32.mrf.mxu3 }
 0x19a   : > { %v1722_v51 = vadd.f32 %v1721_v50, %v1492_v49 }
 0x19c   : > { %v1759_v52 = vadd.f32 %v2771_v18, %v1722_v51 }
 0x19e   : > { %v1791_v53 = vpack.c.bf16 %v1759_v52, %v1759_v52 }
 0x1a0   : > { %1823 = vst [vmem:[%s2762_s22 + $0xfc] sm:$0xf] %v1791_v53 }
 0x1a1 PF: > { %s19_s13 = sadd.s32 1, %s2559_s13   ;;  %s2980_s30 = smov %s2551_s11 }
 0x1a2   : > { %p16_p7 = scmp.ge.s32.totalorder %s19_s13, 6   ;;  %s2981_s10 = smov %s2555_s12 }
 0x1a3   : > { %s2982_s11 = smov %s2985_s14  ;;  %s2983_s12 = smov %s2989_s15 }
 0x1a4   :  { %18 = sbr.rel (!%p16_p7) target bundleno = 3 (0x3), region = 107 }

</bundles_post_ra>
